<compile_context>
chip_gen: v7x
topology: tpu7x:2x2x1
jax: 0.10.0
libtpu: 0.0.40
codegen_flags: <defaults>
</compile_context>

<pallas_src>
import functools

import jax
import jax.numpy as jnp
from jax.experimental import pallas as pl
from jax.experimental.pallas import tpu as pltpu

# Logical layer dims of the autoencoder (encoder then decoder).
DIMS = [784, 128, 64, 12, 3, 12, 64, 128, 784]
N_LAYERS = len(DIMS) - 1  # 8
# Lane-dense padded dims used inside the kernel.
PAD_IN = [784, 128, 128, 128, 128, 128, 128, 128]   # per-layer padded fan_in
PAD_OUT = [128, 128, 128, 128, 128, 128, 128, 896]  # per-layer padded fan_out
OUT_PAD = PAD_OUT[-1]                               # 896 = 7 * 128 lane-dense output


def _round_up(a, m):
    return ((a + m - 1) // m) * m


def autoencoder_kernel(x_ref, *refs):
    # refs = (w0..w7, b_pack, b_last, out_ref)
    out_ref = refs[-1]
    b_last_ref = refs[-2]        # (1, 896) f32
    b_pack_ref = refs[-3]        # (8, 128) f32, rows 0..6 = inner-layer biases
    w_refs = refs[:N_LAYERS]     # bf16, zero-padded

    h = x_ref[...].astype(jnp.bfloat16)  # (tile_b, 784), cast done in VMEM
    for layer in range(N_LAYERS):
        w = w_refs[layer][...]
        acc = jnp.dot(h, w, preferred_element_type=jnp.float32)  # f32 accumulation
        if layer == N_LAYERS - 1:
            acc = acc + b_last_ref[...]
            # sigmoid via EUP-friendly exp + approximate reciprocal
            sig = pl.reciprocal(1.0 + jnp.exp(-acc), approx=True)
            out_ref[...] = sig.astype(out_ref.dtype)  # bf16 store, 896 lanes unmasked
        else:
            acc = acc + b_pack_ref[layer:layer + 1, :]  # (1,128) broadcast over sublanes
            h = jnp.maximum(acc, 0.0).astype(jnp.bfloat16)


def make_params(key):
    """Deterministic PyTorch-style init: U(-1/sqrt(fan_in), 1/sqrt(fan_in)), f32 master copy."""
    params = []
    for i in range(N_LAYERS):
        fan_in, fan_out = DIMS[i], DIMS[i + 1]
        key, kw, kb = jax.random.split(key, 3)
        bound = 1.0 / (fan_in ** 0.5)
        w = jax.random.uniform(kw, (fan_in, fan_out), jnp.float32, -bound, bound)
        b = jax.random.uniform(kb, (1, fan_out), jnp.float32, -bound, bound)
        params.append((w, b))
    return params


def prepack_params(params):
    """One-time pack: bf16 weights zero-padded to lane-dense tiles + packed f32 biases."""
    ws = []
    for layer, (w, _) in enumerate(params):
        fi, fo = DIMS[layer], DIMS[layer + 1]
        pfi, pfo = PAD_IN[layer], PAD_OUT[layer]
        ws.append(jnp.pad(w.astype(jnp.bfloat16), ((0, pfi - fi), (0, pfo - fo))))
    # Inner biases (layers 0..6, fan_out <= 128) packed into one (8,128) f32 tile.
    b_pack = jnp.zeros((8, 128), jnp.float32)
    for layer in range(N_LAYERS - 1):
        b = params[layer][1][0]  # (fan_out,)
        b_pack = b_pack.at[layer, :DIMS[layer + 1]].set(b)
    # Final bias padded 784 -> 896 (padded lanes zero; sliced off after the kernel).
    b_last = jnp.pad(params[-1][1], ((0, 0), (0, OUT_PAD - DIMS[-1])))
    return tuple(ws), b_pack, b_last


def autoencoder_forward(x, ws, b_pack, b_last, *, tile_b=512):
    B, F = x.shape
    assert F == DIMS[0]

    # Aim for >= 4 grid steps (2 per TensorCore on v7x) when the batch allows it,
    # but never exceed the requested tile_b.  tile rounded to a sublane multiple.
    tb = min(tile_b, max(8, _round_up(-(-B // 4), 8)))
    Bp = _round_up(B, tb)
    x_p = x if Bp == B else jnp.pad(x, ((0, Bp - B), (0, 0)))

    in_specs = [pl.BlockSpec((tb, F), lambda i: (i, 0))]  # unpadded f32 input, batch-tiled
    for layer in range(N_LAYERS):
        pfi, pfo = PAD_IN[layer], PAD_OUT[layer]
        in_specs.append(pl.BlockSpec((pfi, pfo), lambda i: (0, 0)))  # resident weight
    in_specs.append(pl.BlockSpec((8, 128), lambda i: (0, 0)))        # packed inner biases
    in_specs.append(pl.BlockSpec((1, OUT_PAD), lambda i: (0, 0)))    # final bias

    out_spec = pl.BlockSpec((tb, OUT_PAD), lambda i: (i, 0))

    out_p = pl.pallas_call(
        autoencoder_kernel,
        out_shape=jax.ShapeDtypeStruct((Bp, OUT_PAD), jnp.bfloat16),  # bf16 output stream
        grid_spec=pltpu.PrefetchScalarGridSpec(
            num_scalar_prefetch=0,
            grid=(Bp // tb,),
            in_specs=in_specs,
            out_specs=out_spec,
        ),
        compiler_params=pltpu.CompilerParams(
            # Batch tiles are independent -> megacore sharding on v7x.
            dimension_semantics=("parallel",),
            # For tile_b >= 1024 (large production batches) also set
            # vmem_limit_bytes here (v5e default scoped limit is 16 MiB).
        ),
    )(x_p, *ws, b_pack, b_last)

    # Strip batch tail and the padded output lanes (they hold sigmoid(0)=0.5).
    # Under jit this slice fuses with the consumer.
    return out_p[:B, :DIMS[-1]]


def reference_forward(x, params):
    """Pure-JAX f32 reference matching the PyTorch module."""
    h = x
    for layer, (w, b) in enumerate(params):
        h = h @ w + b[0]
        h = jax.nn.sigmoid(h) if layer == N_LAYERS - 1 else jnp.maximum(h, 0.0)
    return h


if __name__ == "__main__":
    key = jax.random.PRNGKey(0)
    kx, kp = jax.random.split(key)

    B = 512  # -> tile_b 128, 4 grid steps (2 per TensorCore on v7x), pipelining active
    x = jax.random.normal(kx, (B, 784), jnp.float32)
    params = make_params(kp)

    # One-time weight/bias prepack (not on the per-call path).
    ws, b_pack, b_last = prepack_params(params)

    fwd = jax.jit(functools.partial(autoencoder_forward, tile_b=512))
    out = jax.block_until_ready(fwd(x, ws, b_pack, b_last))

    ref = reference_forward(x, params)
    assert out.shape == (B, 784)
    assert out.dtype == jnp.bfloat16
    # bf16 matmul operands + bf16 output + approx reciprocal vs f32 reference.
    err = jnp.abs(out.astype(jnp.float32) - ref)
    max_err = float(jnp.max(err))
    mean_err = float(jnp.mean(err))
    assert max_err < 4e-2, f"mismatch vs pure-JAX reference (max abs err {max_err})"
    assert mean_err < 1e-2, f"mismatch vs pure-JAX reference (mean abs err {mean_err})"

    print("KERNEL_OK")
</pallas_src>

<mosaic_0001>
module attributes {stable_mosaic.version = 11 : i64} {
  func.func @autoencoder_kernel(%arg0: i32, %arg1: memref<128x784xf32, #tpu.memory_space<vmem>>, %arg2: memref<784x128xbf16, #tpu.memory_space<vmem>>, %arg3: memref<128x128xbf16, #tpu.memory_space<vmem>>, %arg4: memref<128x128xbf16, #tpu.memory_space<vmem>>, %arg5: memref<128x128xbf16, #tpu.memory_space<vmem>>, %arg6: memref<128x128xbf16, #tpu.memory_space<vmem>>, %arg7: memref<128x128xbf16, #tpu.memory_space<vmem>>, %arg8: memref<128x128xbf16, #tpu.memory_space<vmem>>, %arg9: memref<128x896xbf16, #tpu.memory_space<vmem>>, %arg10: memref<8x128xf32, #tpu.memory_space<vmem>>, %arg11: memref<1x896xf32, #tpu.memory_space<vmem>>, %arg12: memref<128x896xbf16, #tpu.memory_space<vmem>>) attributes {dimension_semantics = [#tpu.dimension_semantics<parallel>], iteration_bounds = array<i64: 4>, scalar_prefetch = 0 : i64, scratch_operands = 0 : i64, tpu.core_type = #tpu.core_type<tc>, window_params = [{transform_indices = @transform_0, window_bounds = array<i64: 128, 784>}, {pipeline_mode = #tpu.pipeline_mode<synchronous>, transform_indices = @transform_1, window_bounds = array<i64: 784, 128>}, {pipeline_mode = #tpu.pipeline_mode<synchronous>, transform_indices = @transform_2, window_bounds = array<i64: 128, 128>}, {pipeline_mode = #tpu.pipeline_mode<synchronous>, transform_indices = @transform_3, window_bounds = array<i64: 128, 128>}, {pipeline_mode = #tpu.pipeline_mode<synchronous>, transform_indices = @transform_4, window_bounds = array<i64: 128, 128>}, {pipeline_mode = #tpu.pipeline_mode<synchronous>, transform_indices = @transform_5, window_bounds = array<i64: 128, 128>}, {pipeline_mode = #tpu.pipeline_mode<synchronous>, transform_indices = @transform_6, window_bounds = array<i64: 128, 128>}, {pipeline_mode = #tpu.pipeline_mode<synchronous>, transform_indices = @transform_7, window_bounds = array<i64: 128, 128>}, {pipeline_mode = #tpu.pipeline_mode<synchronous>, transform_indices = @transform_8, window_bounds = array<i64: 128, 896>}, {pipeline_mode = #tpu.pipeline_mode<synchronous>, transform_indices = @transform_9, window_bounds = array<i64: 8, 128>}, {pipeline_mode = #tpu.pipeline_mode<synchronous>, transform_indices = @transform_10, window_bounds = array<i64: 1, 896>}, {transform_indices = @transform_11, window_bounds = array<i64: 128, 896>}]} {
    %c0 = arith.constant 0 : index
    %c0_0 = arith.constant 0 : index
    %0 = vector.load %arg1[%c0, %c0_0] : memref<128x784xf32, #tpu.memory_space<vmem>>, vector<128x784xf32>
    %1 = arith.truncf %0 : vector<128x784xf32> to vector<128x784xbf16>
    %c0_1 = arith.constant 0 : index
    %c0_2 = arith.constant 0 : index
    %2 = vector.load %arg2[%c0_1, %c0_2] : memref<784x128xbf16, #tpu.memory_space<vmem>>, vector<784x128xbf16>
    %cst = arith.constant dense<0.000000e+00> : vector<128x128xf32>
    %3 = tpu.matmul %1, %2, %cst {dimension_numbers = #tpu.dot_dimension_numbers<[1], [0], [0], [1], [0, 0, 1, 1], [], []>} : vector<128x784xbf16>, vector<784x128xbf16>, vector<128x128xf32> -> vector<128x128xf32>
    %c0_3 = arith.constant 0 : index
    %c0_4 = arith.constant 0 : index
    %4 = vector.load %arg10[%c0_3, %c0_4] : memref<8x128xf32, #tpu.memory_space<vmem>>, vector<1x128xf32>
    %5 = vector.broadcast %4 : vector<1x128xf32> to vector<128x128xf32>
    %6 = arith.addf %3, %5 : vector<128x128xf32>
    %cst_5 = arith.constant 0.000000e+00 : f32
    %7 = vector.broadcast %cst_5 : f32 to vector<128x128xf32>
    %8 = arith.maximumf %6, %7 : vector<128x128xf32>
    %9 = arith.truncf %8 : vector<128x128xf32> to vector<128x128xbf16>
    %c0_6 = arith.constant 0 : index
    %c0_7 = arith.constant 0 : index
    %10 = vector.load %arg3[%c0_6, %c0_7] : memref<128x128xbf16, #tpu.memory_space<vmem>>, vector<128x128xbf16>
    %cst_8 = arith.constant dense<0.000000e+00> : vector<128x128xf32>
    %11 = tpu.matmul %9, %10, %cst_8 {dimension_numbers = #tpu.dot_dimension_numbers<[1], [0], [0], [1], [0, 0, 1, 1], [], []>} : vector<128x128xbf16>, vector<128x128xbf16>, vector<128x128xf32> -> vector<128x128xf32>
    %c1 = arith.constant 1 : index
    %c0_9 = arith.constant 0 : index
    %12 = vector.load %arg10[%c1, %c0_9] : memref<8x128xf32, #tpu.memory_space<vmem>>, vector<1x128xf32>
    %13 = vector.broadcast %12 : vector<1x128xf32> to vector<128x128xf32>
    %14 = arith.addf %11, %13 : vector<128x128xf32>
    %cst_10 = arith.constant 0.000000e+00 : f32
    %15 = vector.broadcast %cst_10 : f32 to vector<128x128xf32>
    %16 = arith.maximumf %14, %15 : vector<128x128xf32>
    %17 = arith.truncf %16 : vector<128x128xf32> to vector<128x128xbf16>
    %c0_11 = arith.constant 0 : index
    %c0_12 = arith.constant 0 : index
    %18 = vector.load %arg4[%c0_11, %c0_12] : memref<128x128xbf16, #tpu.memory_space<vmem>>, vector<128x128xbf16>
    %cst_13 = arith.constant dense<0.000000e+00> : vector<128x128xf32>
    %19 = tpu.matmul %17, %18, %cst_13 {dimension_numbers = #tpu.dot_dimension_numbers<[1], [0], [0], [1], [0, 0, 1, 1], [], []>} : vector<128x128xbf16>, vector<128x128xbf16>, vector<128x128xf32> -> vector<128x128xf32>
    %c2 = arith.constant 2 : index
    %c0_14 = arith.constant 0 : index
    %20 = vector.load %arg10[%c2, %c0_14] : memref<8x128xf32, #tpu.memory_space<vmem>>, vector<1x128xf32>
    %21 = vector.broadcast %20 : vector<1x128xf32> to vector<128x128xf32>
    %22 = arith.addf %19, %21 : vector<128x128xf32>
    %cst_15 = arith.constant 0.000000e+00 : f32
    %23 = vector.broadcast %cst_15 : f32 to vector<128x128xf32>
    %24 = arith.maximumf %22, %23 : vector<128x128xf32>
    %25 = arith.truncf %24 : vector<128x128xf32> to vector<128x128xbf16>
    %c0_16 = arith.constant 0 : index
    %c0_17 = arith.constant 0 : index
    %26 = vector.load %arg5[%c0_16, %c0_17] : memref<128x128xbf16, #tpu.memory_space<vmem>>, vector<128x128xbf16>
    %cst_18 = arith.constant dense<0.000000e+00> : vector<128x128xf32>
    %27 = tpu.matmul %25, %26, %cst_18 {dimension_numbers = #tpu.dot_dimension_numbers<[1], [0], [0], [1], [0, 0, 1, 1], [], []>} : vector<128x128xbf16>, vector<128x128xbf16>, vector<128x128xf32> -> vector<128x128xf32>
    %c3 = arith.constant 3 : index
    %c0_19 = arith.constant 0 : index
    %28 = vector.load %arg10[%c3, %c0_19] : memref<8x128xf32, #tpu.memory_space<vmem>>, vector<1x128xf32>
    %29 = vector.broadcast %28 : vector<1x128xf32> to vector<128x128xf32>
    %30 = arith.addf %27, %29 : vector<128x128xf32>
    %cst_20 = arith.constant 0.000000e+00 : f32
    %31 = vector.broadcast %cst_20 : f32 to vector<128x128xf32>
    %32 = arith.maximumf %30, %31 : vector<128x128xf32>
    %33 = arith.truncf %32 : vector<128x128xf32> to vector<128x128xbf16>
    %c0_21 = arith.constant 0 : index
    %c0_22 = arith.constant 0 : index
    %34 = vector.load %arg6[%c0_21, %c0_22] : memref<128x128xbf16, #tpu.memory_space<vmem>>, vector<128x128xbf16>
    %cst_23 = arith.constant dense<0.000000e+00> : vector<128x128xf32>
    %35 = tpu.matmul %33, %34, %cst_23 {dimension_numbers = #tpu.dot_dimension_numbers<[1], [0], [0], [1], [0, 0, 1, 1], [], []>} : vector<128x128xbf16>, vector<128x128xbf16>, vector<128x128xf32> -> vector<128x128xf32>
    %c4 = arith.constant 4 : index
    %c0_24 = arith.constant 0 : index
    %36 = vector.load %arg10[%c4, %c0_24] : memref<8x128xf32, #tpu.memory_space<vmem>>, vector<1x128xf32>
    %37 = vector.broadcast %36 : vector<1x128xf32> to vector<128x128xf32>
    %38 = arith.addf %35, %37 : vector<128x128xf32>
    %cst_25 = arith.constant 0.000000e+00 : f32
    %39 = vector.broadcast %cst_25 : f32 to vector<128x128xf32>
    %40 = arith.maximumf %38, %39 : vector<128x128xf32>
    %41 = arith.truncf %40 : vector<128x128xf32> to vector<128x128xbf16>
    %c0_26 = arith.constant 0 : index
    %c0_27 = arith.constant 0 : index
    %42 = vector.load %arg7[%c0_26, %c0_27] : memref<128x128xbf16, #tpu.memory_space<vmem>>, vector<128x128xbf16>
    %cst_28 = arith.constant dense<0.000000e+00> : vector<128x128xf32>
    %43 = tpu.matmul %41, %42, %cst_28 {dimension_numbers = #tpu.dot_dimension_numbers<[1], [0], [0], [1], [0, 0, 1, 1], [], []>} : vector<128x128xbf16>, vector<128x128xbf16>, vector<128x128xf32> -> vector<128x128xf32>
    %c5 = arith.constant 5 : index
    %c0_29 = arith.constant 0 : index
    %44 = vector.load %arg10[%c5, %c0_29] : memref<8x128xf32, #tpu.memory_space<vmem>>, vector<1x128xf32>
    %45 = vector.broadcast %44 : vector<1x128xf32> to vector<128x128xf32>
    %46 = arith.addf %43, %45 : vector<128x128xf32>
    %cst_30 = arith.constant 0.000000e+00 : f32
    %47 = vector.broadcast %cst_30 : f32 to vector<128x128xf32>
    %48 = arith.maximumf %46, %47 : vector<128x128xf32>
    %49 = arith.truncf %48 : vector<128x128xf32> to vector<128x128xbf16>
    %c0_31 = arith.constant 0 : index
    %c0_32 = arith.constant 0 : index
    %50 = vector.load %arg8[%c0_31, %c0_32] : memref<128x128xbf16, #tpu.memory_space<vmem>>, vector<128x128xbf16>
    %cst_33 = arith.constant dense<0.000000e+00> : vector<128x128xf32>
    %51 = tpu.matmul %49, %50, %cst_33 {dimension_numbers = #tpu.dot_dimension_numbers<[1], [0], [0], [1], [0, 0, 1, 1], [], []>} : vector<128x128xbf16>, vector<128x128xbf16>, vector<128x128xf32> -> vector<128x128xf32>
    %c6 = arith.constant 6 : index
    %c0_34 = arith.constant 0 : index
    %52 = vector.load %arg10[%c6, %c0_34] : memref<8x128xf32, #tpu.memory_space<vmem>>, vector<1x128xf32>
    %53 = vector.broadcast %52 : vector<1x128xf32> to vector<128x128xf32>
    %54 = arith.addf %51, %53 : vector<128x128xf32>
    %cst_35 = arith.constant 0.000000e+00 : f32
    %55 = vector.broadcast %cst_35 : f32 to vector<128x128xf32>
    %56 = arith.maximumf %54, %55 : vector<128x128xf32>
    %57 = arith.truncf %56 : vector<128x128xf32> to vector<128x128xbf16>
    %c0_36 = arith.constant 0 : index
    %c0_37 = arith.constant 0 : index
    %58 = vector.load %arg9[%c0_36, %c0_37] : memref<128x896xbf16, #tpu.memory_space<vmem>>, vector<128x896xbf16>
    %cst_38 = arith.constant dense<0.000000e+00> : vector<128x896xf32>
    %59 = tpu.matmul %57, %58, %cst_38 {dimension_numbers = #tpu.dot_dimension_numbers<[1], [0], [0], [1], [0, 0, 1, 1], [], []>} : vector<128x128xbf16>, vector<128x896xbf16>, vector<128x896xf32> -> vector<128x896xf32>
    %c0_39 = arith.constant 0 : index
    %c0_40 = arith.constant 0 : index
    %60 = vector.load %arg11[%c0_39, %c0_40] : memref<1x896xf32, #tpu.memory_space<vmem>>, vector<1x896xf32>
    %61 = vector.broadcast %60 : vector<1x896xf32> to vector<128x896xf32>
    %62 = arith.addf %59, %61 : vector<128x896xf32>
    %cst_41 = arith.constant 0.000000e+00 : f32
    %63 = vector.broadcast %cst_41 : f32 to vector<128x896xf32>
    %64 = arith.subf %63, %62 : vector<128x896xf32>
    %65 = math.exp %64 : vector<128x896xf32>
    %cst_42 = arith.constant 1.000000e+00 : f32
    %66 = vector.broadcast %cst_42 : f32 to vector<128x896xf32>
    %67 = arith.addf %66, %65 : vector<128x896xf32>
    %68 = tpu.reciprocal %67 {approx = true} : vector<128x896xf32> -> vector<128x896xf32>
    %69 = arith.truncf %68 : vector<128x896xf32> to vector<128x896xbf16>
    %c0_43 = arith.constant 0 : index
    %c0_44 = arith.constant 0 : index
    %70 = vector.load %arg12[%c0_43, %c0_44] : memref<128x896xbf16, #tpu.memory_space<vmem>>, vector<128x896xbf16>
    tpu.vector_store %arg12[%c0_43, %c0_44], %69 {strides = array<i32>} : memref<128x896xbf16, #tpu.memory_space<vmem>>, vector<128x896xbf16>,
    return
  }
  func.func @transform_0(%arg0: i32) -> (i32, i32) {
    %c0_i32 = arith.constant 0 : i32
    %c0_i32_0 = arith.constant 0 : i32
    return %arg0, %c0_i32 : i32, i32
  }
  func.func @transform_1(%arg0: i32) -> (i32, i32) {
    %c0_i32 = arith.constant 0 : i32
    %c0_i32_0 = arith.constant 0 : i32
    %c0_i32_1 = arith.constant 0 : i32
    return %c0_i32, %c0_i32_0 : i32, i32
  }
  func.func @transform_2(%arg0: i32) -> (i32, i32) {
    %c0_i32 = arith.constant 0 : i32
    %c0_i32_0 = arith.constant 0 : i32
    %c0_i32_1 = arith.constant 0 : i32
    return %c0_i32, %c0_i32_0 : i32, i32
  }
  func.func @transform_3(%arg0: i32) -> (i32, i32) {
    %c0_i32 = arith.constant 0 : i32
    %c0_i32_0 = arith.constant 0 : i32
    %c0_i32_1 = arith.constant 0 : i32
    return %c0_i32, %c0_i32_0 : i32, i32
  }
  func.func @transform_4(%arg0: i32) -> (i32, i32) {
    %c0_i32 = arith.constant 0 : i32
    %c0_i32_0 = arith.constant 0 : i32
    %c0_i32_1 = arith.constant 0 : i32
    return %c0_i32, %c0_i32_0 : i32, i32
  }
  func.func @transform_5(%arg0: i32) -> (i32, i32) {
    %c0_i32 = arith.constant 0 : i32
    %c0_i32_0 = arith.constant 0 : i32
    %c0_i32_1 = arith.constant 0 : i32
    return %c0_i32, %c0_i32_0 : i32, i32
  }
  func.func @transform_6(%arg0: i32) -> (i32, i32) {
    %c0_i32 = arith.constant 0 : i32
    %c0_i32_0 = arith.constant 0 : i32
    %c0_i32_1 = arith.constant 0 : i32
    return %c0_i32, %c0_i32_0 : i32, i32
  }
  func.func @transform_7(%arg0: i32) -> (i32, i32) {
    %c0_i32 = arith.constant 0 : i32
    %c0_i32_0 = arith.constant 0 : i32
    %c0_i32_1 = arith.constant 0 : i32
    return %c0_i32, %c0_i32_0 : i32, i32
  }
  func.func @transform_8(%arg0: i32) -> (i32, i32) {
    %c0_i32 = arith.constant 0 : i32
    %c0_i32_0 = arith.constant 0 : i32
    %c0_i32_1 = arith.constant 0 : i32
    return %c0_i32, %c0_i32_0 : i32, i32
  }
  func.func @transform_9(%arg0: i32) -> (i32, i32) {
    %c0_i32 = arith.constant 0 : i32
    %c0_i32_0 = arith.constant 0 : i32
    %c0_i32_1 = arith.constant 0 : i32
    return %c0_i32, %c0_i32_0 : i32, i32
  }
  func.func @transform_10(%arg0: i32) -> (i32, i32) {
    %c0_i32 = arith.constant 0 : i32
    %c0_i32_0 = arith.constant 0 : i32
    %c0_i32_1 = arith.constant 0 : i32
    return %c0_i32, %c0_i32_0 : i32, i32
  }
  func.func @transform_11(%arg0: i32) -> (i32, i32) {
    %c0_i32 = arith.constant 0 : i32
    %c0_i32_0 = arith.constant 0 : i32
    return %arg0, %c0_i32 : i32, i32
  }
}

</mosaic_0001>

<bundles_post_ra>
// kernel: autoencoder_forward.1
= control target key start
LH: loop header
LB: loop body
LE: loop exit
PB: predicated region body
PF: predicated region fallthrough
CT: control target
= control target key end

     0   :  { %s5965_s17 = smov 0   ;;  %s7265_s0 = inlined_call_operand.vmem [shape: f32[512,784], index: 0, kind: input, shape index: {}]   ;;  %s7266_s1 = inlined_call_operand.vmem [shape: bf16[784,128], index: 1, kind: input, shape index: {}]   ;;  %s7267_s2 = inlined_call_operand.vmem [shape: bf16[128,128], index: 2, kind: input, shape index: {}]   ;;  %s7268_s3 = inlined_call_operand.vmem [shape: bf16[128,128], index: 3, kind: input, shape index: {}]   ;;  %s7269_s4 = inlined_call_operand.vmem [shape: bf16[128,128], index: 4, kind: input, shape index: {}]   ;;  %s7270_s5 = inlined_call_operand.vmem [shape: bf16[128,128], index: 5, kind: input, shape index: {}]   ;;  %s7271_s6 = inlined_call_operand.vmem [shape: bf16[128,128], index: 6, kind: input, shape index: {}]   ;;  %s7272_s7 = inlined_call_operand.vmem [shape: bf16[128,128], index: 7, kind: input, shape index: {}]   ;;  %s7273_s8 = inlined_call_operand.vmem [shape: bf16[128,896], index: 8, kind: input, shape index: {}]   ;;  %s7274_s9 = inlined_call_operand.vmem [shape: f32[8,128], index: 9, kind: input, shape index: {}]   ;;  %s7275_s10 = inlined_call_operand.vmem [shape: f32[1,896], index: 10, kind: input, shape index: {}]   ;;  %s7276_s11 = inlined_call_operand.vmem [shape: bf16[512,896], index: 11, kind: output, shape index: {}]  }
   0x1 LB: > { %s4397_s18 = sadd.s32 4294967295, %s5902_s17   ;;  %p4401_p0 = scmp.ge.s32.totalorder %s5902_s17, 1  ;;  %s5902_s17 = sphi %s5965_s17, %s21_s17  }
   0x2   : > { %p339_p1 = scmp.lt.s32.totalorder %s5902_s17, 5 }
   0x4   : > { %p340_p2 = pnand %p4401_p0, %p339_p1 }
   0x6   : > { %343 = sbr.rel (%p340_p2) target bundleno = 2138 (0x85a), region = 64 }
   0xd   : > { %v5270_v0 = vld [vmem:[%s7266_s1 + $0x40] sm:$0xff]   ;;  %v5274_v4 = vld [vmem:[%s7266_s1 + $0x48] sm:$0xff]   ;;  %v5278_v8 = vld [vmem:[%s7266_s1 + $0x50] sm:$0xff]   ;;  %s4402_s30 = sshll.u32 %s4397_s18, 4  ;;  %vm961_vm0 = vcmask 130048  }
   0xe   : > { %v5271_v1 = vld [vmem:[%s7266_s1] sm:$0xff]   ;;  %4704 = vmatprep.subr.bf16.mxu0 %v5270_v0  ;;  %v5275_v5 = vld [vmem:[%s7266_s1 + $0x8] sm:$0xff]   ;;  %v5279_v9 = vld [vmem:[%s7266_s1 + $0x10] sm:$0xff]   ;;  %p382_p3 = scmp.lt.s32.totalorder %s4402_s30, 63 }
   0xf   : > { %v5272_v2 = vld [vmem:[%s7266_s1 + $0xc0] sm:$0xff]   ;;  %4705 = vmatpush3.bf16.msra.mxu0 %v5271_v1  ;;  %v5276_v6 = vld [vmem:[%s7266_s1 + $0xc8] sm:$0xff]   ;;  %v5280_v10 = vld [vmem:[%s7266_s1 + $0xd0] sm:$0xff]  }
  0x10   : > { %v5273_v3 = vld [vmem:[%s7266_s1 + $0x80] sm:$0xff]   ;;  %4768 = vmatprep.subr.bf16.mxu1 %v5272_v2  ;;  %4706 = vmatprep.subr.bf16.mxu0 %v5274_v4  ;;  %v5277_v7 = vld [vmem:[%s7266_s1 + $0x88] sm:$0xff]   ;;  %v5281_v11 = vld [vmem:[%s7266_s1 + $0x90] sm:$0xff]   ;;  %s7298_s30 = smov (!%p382_p3, %s4402_s30), 63 }
  0x11   : > { %4769 = vmatpush3.bf16.msra.mxu1 %v5273_v3  ;;  %v5282_v12 = vld [vmem:[%s7266_s1 + $0x58] sm:$0xff]   ;;  %v5286_v16 = vld [vmem:[%s7266_s1 + $0x60] sm:$0xff]   ;;  %v5290_v20 = vld [vmem:[%s7266_s1 + $0x68] sm:$0xff]   ;;  %s5259_s19 = smul.u32 56, %s7298_s30 }
  0x12   : > { %4770 = vmatprep.subr.bf16.mxu1 %v5276_v6  ;;  %v5283_v13 = vld [vmem:[%s7266_s1 + $0x18] sm:$0xff]   ;;  %v5287_v17 = vld [vmem:[%s7266_s1 + $0x20] sm:$0xff]   ;;  %v5291_v21 = vld [vmem:[%s7266_s1 + $0x28] sm:$0xff]   ;;  %s5260_s24 = smul.u32 28, %s7298_s30 }
  0x13   : > { %4707 = vmatpush3.bf16.msra.mxu0 %v5275_v5  ;;  %v5284_v14 = vld [vmem:[%s7266_s1 + $0xd8] sm:$0xff]   ;;  %v5288_v18 = vld [vmem:[%s7266_s1 + $0xe0] sm:$0xff]   ;;  %v5292_v22 = vld [vmem:[%s7266_s1 + $0xe8] sm:$0xff]   ;;  %s6068_s29 = scalar_lea.vmem %s7265_s0, %s5259_s19 }
  0x14   : > { %4708 = vmatprep.subr.bf16.mxu0 %v5278_v8  ;;  %v5285_v15 = vld [vmem:[%s7266_s1 + $0x98] sm:$0xff]   ;;  %v5289_v19 = vld [vmem:[%s7266_s1 + $0xa0] sm:$0xff]   ;;  %v5293_v23 = vld [vmem:[%s7266_s1 + $0xa8] sm:$0xff]   ;;  %s6793_s26 = scalar_lea.vmem %s7276_s11, %s5260_s24 }
  0x15   : > { %4771 = vmatpush3.bf16.msra.mxu1 %v5277_v7  ;;  %v5294_v24 = vld [vmem:[%s7266_s1 + $0x70] sm:$0xff]   ;;  %v5298_v28 = vld [vmem:[%s7266_s1 + $0x78] sm:$0xff]   ;;  %v397_v31 = vld [vmem:[%s6068_s29 + $0x8] sm:$0xff] }
  0x16   : > { %4772 = vmatprep.subr.bf16.mxu1 %v5280_v10  ;;  %v5295_v25 = vld [vmem:[%s7266_s1 + $0x30] sm:$0xff]   ;;  %v5299_v29 = vld [vmem:[%s7266_s1 + $0x38] sm:$0xff]   ;;  %v404_v32 = vld [vmem:[%s6068_s29 + $0x40] sm:$0xff] }
  0x17   : > { %4709 = vmatpush3.bf16.msra.mxu0 %v5279_v9  ;;  %v5296_v26 = vld [vmem:[%s7266_s1 + $0xf0] sm:$0xff]   ;;  %v5300_v30 = vld [vmem:[%s7266_s1 + $0xf8] sm:$0xff]   ;;  %v509_v33 = vpack.c.bf16 %v404_v32, %v397_v31  ;;  %v396_v35 = vld [vmem:[%s6068_s29] sm:$0xff] }
  0x18   : > { %4710 = vmatprep.subr.bf16.mxu0 %v5282_v12  ;;  %v5297_v27 = vld [vmem:[%s7266_s1 + $0xb0] sm:$0xff]   ;;  %v5301_v34 = vld [vmem:[%s7266_s1 + $0xb8] sm:$0xff]   ;;  %v5302_v38 = vld [vmem:[%s7266_s1 + $0x140] sm:$0xff]  }
  0x19   : > { %4773 = vmatpush3.bf16.msra.mxu1 %v5281_v11  ;;  %v403_v36 = vld [vmem:[%s6068_s29 + $0x38] sm:$0xff]  ;;  %1018 = vmatprep.mubr.bf16.mxu0 %v509_v33  ;;  %v406_v40 = vld [vmem:[%s6068_s29 + $0x50] sm:$0xff]  ;;  %v5303_v42 = vld [vmem:[%s7266_s1 + $0x100] sm:$0xff]  }
  0x1a   : > { %4774 = vmatprep.subr.bf16.mxu1 %v5284_v14  ;;  %v508_v37 = vpack.c.bf16 %v403_v36, %v396_v35  ;;  %v399_v39 = vld [vmem:[%s6068_s29 + $0x18] sm:$0xff]  ;;  %v398_v43 = vld [vmem:[%s6068_s29 + $0x10] sm:$0xff]  ;;  %v405_v44 = vld [vmem:[%s6068_s29 + $0x48] sm:$0xff] }
  0x1b   : > { %4711 = vmatpush3.bf16.msra.mxu0 %v5283_v13  ;;  %v511_v41 = vpack.c.bf16 %v406_v40, %v399_v39  ;;  %v411_v45 = vld [vmem:[%s6068_s29 + $0x78] sm:$0xff]  ;;  %v510_v46 = vpack.c.bf16 %v405_v44, %v398_v43  ;;  %v418_v47 = vld [vmem:[%s6068_s29 + $0xb0] sm:$0xff]  ;;  %v417_v49 = vld [vmem:[%s6068_s29 + $0xa8] sm:$0xff] }
  0x1c   : > { %4712 = vmatprep.subr.bf16.mxu0 %v5286_v16  ;;  %v410_v48 = vld [vmem:[%s6068_s29 + $0x70] sm:$0xff]  ;;  %v516_v50 = vpack.c.bf16 %v418_v47, %v411_v45  ;;  %v5304_v51 = vld [vmem:[%s7266_s1 + $0x148] sm:$0xff]   ;;  %v420_v53 = vld [vmem:[%s6068_s29 + $0xc0] sm:$0xff] }
  0x1d   : > { %4775 = vmatpush3.bf16.msra.mxu1 %v5285_v15  ;;  %1115 = vmatprep.mubr.bf16.mxu1 %v511_v41  ;;  %v413_v52 = vld [vmem:[%s6068_s29 + $0x88] sm:$0xff]  ;;  %v515_v54 = vpack.c.bf16 %v417_v49, %v410_v48  ;;  %v412_v57 = vld [vmem:[%s6068_s29 + $0x80] sm:$0xff]  ;;  %v419_v58 = vld [vmem:[%s6068_s29 + $0xb8] sm:$0xff] }
  0x1e   : > { %4776 = vmatprep.subr.bf16.mxu1 %v5288_v18  ;;  %v518_v55 = vpack.c.bf16 %v420_v53, %v413_v52  ;;  %v5305_v56 = vld [vmem:[%s7266_s1 + $0x108] sm:$0xff]   ;;  %v5306_v59 = vld [vmem:[%s7266_s1 + $0x180] sm:$0xff]   ;;  %v517_v62 = vpack.c.bf16 %v419_v58, %v412_v57  ;;  %v431_v1 = vld [vmem:[%s6068_s29 + $0x118] sm:$0xff] }
  0x1f   : > { %4713 = vmatpush3.bf16.msra.mxu0 %v5287_v17  ;;  %v425_v60 = vld [vmem:[%s6068_s29 + $0xe8] sm:$0xff]  ;;  %v432_v61 = vld [vmem:[%s6068_s29 + $0x120] sm:$0xff]  ;;  %v5307_v2 = vld [vmem:[%s7266_s1 + $0x150] sm:$0xff]  }
  0x20   : > { %4714 = vmatprep.subr.bf16.mxu0 %v5290_v20  ;;  %v523_v63 = vpack.c.bf16 %v432_v61, %v425_v60  ;;  %v424_v0 = vld [vmem:[%s6068_s29 + $0xe0] sm:$0xff]  ;;  %v427_v3 = vld [vmem:[%s6068_s29 + $0xf8] sm:$0xff]  ;;  %v434_v4 = vld [vmem:[%s6068_s29 + $0x130] sm:$0xff] }
  0x21   : > { %4777 = vmatpush3.bf16.msra.mxu1 %v5289_v19  ;;  %v525_v5 = vpack.c.bf16 %v434_v4, %v427_v3  ;;  %v5308_v6 = vld [vmem:[%s7266_s1 + $0x110] sm:$0xff]   ;;  %v439_v8 = vld [vmem:[%s6068_s29 + $0x158] sm:$0xff]  ;;  %v522_v10 = vpack.c.bf16 %v431_v1, %v424_v0  ;;  %v433_v11 = vld [vmem:[%s6068_s29 + $0x128] sm:$0xff] }
  0x22   : > { %4778 = vmatprep.subr.bf16.mxu1 %v5292_v22  ;;  %v426_v7 = vld [vmem:[%s6068_s29 + $0xf0] sm:$0xff]  ;;  %v5309_v13 = vld [vmem:[%s7266_s1 + $0x158] sm:$0xff]   ;;  %v441_v14 = vld [vmem:[%s6068_s29 + $0x168] sm:$0xff] }
  0x23   : > { %4715 = vmatpush3.bf16.msra.mxu0 %v5291_v21  ;;  %v446_v9 = vld [vmem:[%s6068_s29 + $0x190] sm:$0xff]  ;;  %v448_v15 = vld [vmem:[%s6068_s29 + $0x1a0] sm:$0xff]  ;;  %v5310_v16 = vld [vmem:[%s7266_s1 + $0x118] sm:$0xff]   ;;  %v524_v17 = vpack.c.bf16 %v433_v11, %v426_v7 }
  0x24   : > { %4716 = vmatprep.subr.bf16.mxu0 %v5294_v24  ;;  %v530_v12 = vpack.c.bf16 %v446_v9, %v439_v8  ;;  %v438_v18 = vld [vmem:[%s6068_s29 + $0x150] sm:$0xff]  ;;  %v445_v19 = vld [vmem:[%s6068_s29 + $0x188] sm:$0xff]  ;;  %v532_v20 = vpack.c.bf16 %v448_v15, %v441_v14  ;;  %v5311_v21 = vld [vmem:[%s7266_s1 + $0x160] sm:$0xff]  }
  0x25   : > { %4779 = vmatpush3.bf16.msra.mxu1 %v5293_v23  ;;  %v453_v22 = vld [vmem:[%s6068_s29 + $0x1c8] sm:$0xff]  ;;  %v460_v23 = vld [vmem:[%s6068_s29 + $0x200] sm:$0xff]  ;;  %v459_v36 = vld [vmem:[%s6068_s29 + $0x1f8] sm:$0xff] }
  0x26   : > { %4780 = vmatprep.subr.bf16.mxu1 %v5296_v26  ;;  %v5312_v24 = vld [vmem:[%s7266_s1 + $0x120] sm:$0xff]   ;;  %v5313_v31 = vld [vmem:[%s7266_s1 + $0x168] sm:$0xff]   ;;  %v454_v39 = vld [vmem:[%s6068_s29 + $0x1d0] sm:$0xff] }
  0x27   : > { %4717 = vmatpush3.bf16.msra.mxu0 %v5295_v25  ;;  %v529_v25 = vpack.c.bf16 %v445_v19, %v438_v18  ;;  %v440_v26 = vld [vmem:[%s6068_s29 + $0x160] sm:$0xff]  ;;  %v461_v40 = vld [vmem:[%s6068_s29 + $0x208] sm:$0xff]  ;;  %v5315_v41 = vld [vmem:[%s7266_s1 + $0x170] sm:$0xff]  }
  0x28   : > { %4718 = vmatprep.subr.bf16.mxu0 %v5298_v28  ;;  %v537_v28 = vpack.c.bf16 %v460_v23, %v453_v22  ;;  %v452_v35 = vld [vmem:[%s6068_s29 + $0x1c0] sm:$0xff]  ;;  %v5316_v43 = vld [vmem:[%s7266_s1 + $0x130] sm:$0xff]   ;;  %v469_v45 = vld [vmem:[%s6068_s29 + $0x248] sm:$0xff]  ;;  %v538_v47 = vpack.c.bf16 %v461_v40, %v454_v39 }
  0x29   : > { %4781 = vmatpush3.bf16.msra.mxu1 %v5297_v27  ;;  %v447_v27 = vld [vmem:[%s6068_s29 + $0x198] sm:$0xff]  ;;  %v466_v49 = vld [vmem:[%s6068_s29 + $0x230] sm:$0xff]  ;;  %v481_v53 = vld [vmem:[%s6068_s29 + $0x2a8] sm:$0xff] }
  0x2a   : > { %4782 = vmatprep.subr.bf16.mxu1 %v5300_v30  ;;  %v462_v30 = vld [vmem:[%s6068_s29 + $0x210] sm:$0xff]  ;;  %v531_v32 = vpack.c.bf16 %v447_v27, %v440_v26  ;;  %v5317_v48 = vld [vmem:[%s7266_s1 + $0x178] sm:$0xff]   ;;  %v497_v7 = vld [vmem:[%s6068_s29 + $0x328] sm:$0xff] }
  0x2b   : > { %4719 = vmatpush3.bf16.msra.mxu0 %v5299_v29  ;;  %v455_v29 = vld [vmem:[%s6068_s29 + $0x1d8] sm:$0xff]  ;;  %v490_v60 = vld [vmem:[%s6068_s29 + $0x2f0] sm:$0xff]  ;;  %v504_v8 = vld [vmem:[%s6068_s29 + $0x360] sm:$0xff] }
  0x2c   : > { %4832 = vmatprep.subr.bf16.mxu0 %v5302_v38  ;;  %v539_v33 = vpack.c.bf16 %v462_v30, %v455_v29  ;;  %v474_v38 = vld [vmem:[%s6068_s29 + $0x270] sm:$0xff]  ;;  %v5318_v52 = vld [vmem:[%s7266_s1 + $0x138] sm:$0xff]   ;;  %v496_v14 = vld [vmem:[%s6068_s29 + $0x320] sm:$0xff] }
  0x2d   : > { %4783 = vmatpush3.bf16.msra.mxu1 %v5301_v34  ;;  %v5314_v34 = vld [vmem:[%s7266_s1 + $0x128] sm:$0xff]   ;;  %v475_v57 = vld [vmem:[%s6068_s29 + $0x278] sm:$0xff]  ;;  %v482_v4 = vld [vmem:[%s6068_s29 + $0x2b0] sm:$0xff] }
  0x2e   : > { %1019 = vmatmul.mubr.bf16.vlgmr.msra.gmra.mrb[0].mxu0 %v508_v37  ;;  %5017 = vmatprep.subr.bf16.mxu1 %v5306_v59  ;;  %v467_v37 = vld [vmem:[%s6068_s29 + $0x238] sm:$0xff]  ;;  %v494_v11 = vld [vmem:[%s6068_s29 + $0x310] sm:$0xff]  ;;  %v409_v18 = vld [vmem:[%s6068_s29 + $0x68] sm:$0xff] }
  0x2f   : > { %4833 = vmatpush3.bf16.msra.mxu0 %v5303_v42  ;;  %1026 = vmatprep.mubr.bf16.mxu0 %v516_v50  ;;  %v536_v42 = vpack.c.bf16 %v459_v36, %v452_v35  ;;  %v544_v44 = vpack.c.bf16 %v474_v38, %v467_v37  ;;  %v487_v0 = vld [vmem:[%s6068_s29 + $0x2d8] sm:$0xff]  ;;  %v400_v22 = vld [vmem:[%s6068_s29 + $0x20] sm:$0xff]  ;;  %v422_v26 = vld [vmem:[%s6068_s29 + $0xd0] sm:$0xff] }
  0x30   : > { %1116 = vmatmul.mubr.bf16.vlgmr.msra.gmra.mrb[0].mxu1 %v510_v46  ;;  %4834 = vmatprep.subr.bf16.mxu0 %v5304_v51  ;;  %v476_v46 = vld [vmem:[%s6068_s29 + $0x280] sm:$0xff]  ;;  %v473_v51 = vld [vmem:[%s6068_s29 + $0x268] sm:$0xff]  ;;  %v495_v1 = vld [vmem:[%s6068_s29 + $0x318] sm:$0xff] }
  0x31   : > { %1123 = vmatprep.mubr.bf16.mxu1 %v518_v55  ;;  %5018 = vmatpush3.bf16.msra.mxu1 %v5306_v59  ;;  %v546_v50 = vpack.c.bf16 %v476_v46, %v469_v45  ;;  %v543_v55 = vpack.c.bf16 %v473_v51, %v466_v49  ;;  %v483_v59 = vld [vmem:[%s6068_s29 + $0x2b8] sm:$0xff]  ;;  %v416_v27 = vld [vmem:[%s6068_s29 + $0xa0] sm:$0xff]  ;;  %v430_v29 = vld [vmem:[%s6068_s29 + $0x110] sm:$0xff] }
  0x32   : > { %v503_v15 = vld [vmem:[%s6068_s29 + $0x358] sm:$0xff]  ;;  %v437_v30 = vld [vmem:[%s6068_s29 + $0x148] sm:$0xff]  ;;  %v436_v37 = vld [vmem:[%s6068_s29 + $0x140] sm:$0xff] }
  0x33   : > { %4835 = vmatpush3.bf16.msra.mxu0 %v5305_v56  ;;  %v468_v56 = vld [vmem:[%s6068_s29 + $0x240] sm:$0xff]  ;;  %v407_v23 = vld [vmem:[%s6068_s29 + $0x58] sm:$0xff]  ;;  %v421_v35 = vld [vmem:[%s6068_s29 + $0xc8] sm:$0xff]  ;;  %v528_v38 = vpack.c.bf16 %v437_v30, %v430_v29 }
  0x34   : > { %4836 = vmatprep.subr.bf16.mxu0 %v5307_v2  ;;  %v545_v61 = vpack.c.bf16 %v475_v57, %v468_v56  ;;  %v502_v2 = vld [vmem:[%s6068_s29 + $0x350] sm:$0xff]  ;;  %v429_v36 = vld [vmem:[%s6068_s29 + $0x108] sm:$0xff]  ;;  %v444_v39 = vld [vmem:[%s6068_s29 + $0x180] sm:$0xff] }
  0x35   : > { %v451_v40 = vld [vmem:[%s6068_s29 + $0x1b8] sm:$0xff]  ;;  %v428_v45 = vld [vmem:[%s6068_s29 + $0x100] sm:$0xff]  ;;  %v450_v49 = vld [vmem:[%s6068_s29 + $0x1b0] sm:$0xff] }
  0x36   : > { %1027 = vmatmul.mubr.bf16.gmra.mrb[4].mxu0 %v515_v54  ;;  %v488_v54 = vld [vmem:[%s6068_s29 + $0x2e0] sm:$0xff]  ;;  %v435_v46 = vld [vmem:[%s6068_s29 + $0x138] sm:$0xff]  ;;  %v442_v57 = vld [vmem:[%s6068_s29 + $0x170] sm:$0xff] }
  0x37   : > { %1034 = vmatprep.mubr.bf16.mxu0 %v523_v63  ;;  %4837 = vmatpush3.bf16.msra.mxu0 %v5308_v6  ;;  %v551_v58 = vpack.c.bf16 %v488_v54, %v481_v53  ;;  %v480_v63 = vld [vmem:[%s6068_s29 + $0x2a0] sm:$0xff]  ;;  %v558_v6 = vpack.c.bf16 %v502_v2, %v495_v1  ;;  %v486_v53 = vld [vmem:[%s6068_s29 + $0x2d0] sm:$0xff]  ;;  %v493_v54 = vld [vmem:[%s6068_s29 + $0x308] sm:$0xff] }
  0x38   : > { %1124 = vmatmul.mubr.bf16.gmra.mrb[4].mxu1 %v517_v62  ;;  %4838 = vmatprep.subr.bf16.mxu0 %v5309_v13  ;;  %v553_v62 = vpack.c.bf16 %v490_v60, %v483_v59  ;;  %v550_v3 = vpack.c.bf16 %v487_v0, %v480_v63  ;;  %v401_v13 = vld [vmem:[%s6068_s29 + $0x28] sm:$0xff]  ;;  %v472_v51 = vld [vmem:[%s6068_s29 + $0x260] sm:$0xff]  ;;  %v507_v0 = vld [vmem:[%s6068_s29 + $0x378] sm:$0xff] }
  0x39   : > { %1131 = vmatprep.mubr.bf16.mxu1 %v525_v5  ;;  %v489_v5 = vld [vmem:[%s6068_s29 + $0x2e8] sm:$0xff]  ;;  %v500_v63 = vld [vmem:[%s6068_s29 + $0x340] sm:$0xff] }
  0x3a   : > { %v552_v9 = vpack.c.bf16 %v489_v5, %v482_v4  ;;  %v457_v60 = vld [vmem:[%s6068_s29 + $0x1e8] sm:$0xff]  ;;  %v463_v4 = vld [vmem:[%s6068_s29 + $0x218] sm:$0xff]  ;;  %v563_v5 = vpack.c.bf16 %v507_v0, %v500_v63  ;;  %v5323_v29 = vld [vmem:[%s7267_s2 + $0x20] sm:$0xff]  }
  0x3b   : > { %4839 = vmatpush3.bf16.msra.mxu0 %v5310_v16  ;;  %v408_v16 = vld [vmem:[%s6068_s29 + $0x60] sm:$0xff]  ;;  %v5324_v30 = vld [vmem:[%s7267_s2 + $0x28] sm:$0xff]  }
  0x3c   : > { %4840 = vmatprep.subr.bf16.mxu0 %v5311_v21  ;;  %v559_v21 = vpack.c.bf16 %v503_v15, %v496_v14 }
  0x3e   : > { %1035 = vmatmul.mubr.bf16.gmra.mrb[8].mxu0 %v522_v10  ;;  %v560_v10 = vpack.c.bf16 %v504_v8, %v497_v7  ;;  %v478_v7 = vld [vmem:[%s6068_s29 + $0x290] sm:$0xff] }
  0x3f   : > { %1042 = vmatprep.mubr.bf16.mxu0 %v530_v12  ;;  %4841 = vmatpush3.bf16.msra.mxu0 %v5312_v24  ;;  %v501_v12 = vld [vmem:[%s6068_s29 + $0x348] sm:$0xff] }
  0x40   : > { %1132 = vmatmul.mubr.bf16.gmra.mrb[8].mxu1 %v524_v17  ;;  %4842 = vmatprep.subr.bf16.mxu0 %v5313_v31  ;;  %v402_v17 = vld [vmem:[%s6068_s29 + $0x30] sm:$0xff]  ;;  %v557_v19 = vpack.c.bf16 %v501_v12, %v494_v11  ;;  %v512_v31 = vpack.c.bf16 %v407_v23, %v400_v22  ;;  %v477_v11 = vld [vmem:[%s6068_s29 + $0x288] sm:$0xff] }
  0x41   : > { %1139 = vmatprep.mubr.bf16.mxu1 %v532_v20  ;;  %v513_v20 = vpack.c.bf16 %v408_v16, %v401_v13  ;;  %v514_v24 = vpack.c.bf16 %v409_v18, %v402_v17  ;;  %v485_v12 = vld [vmem:[%s6068_s29 + $0x2c8] sm:$0xff]  ;;  %v492_v13 = vld [vmem:[%s6068_s29 + $0x300] sm:$0xff]  ;;  %v491_v17 = vld [vmem:[%s6068_s29 + $0x2f8] sm:$0xff] }
  0x42   : > { %v555_v15 = vpack.c.bf16 %v492_v13, %v485_v12  ;;  %v484_v16 = vld [vmem:[%s6068_s29 + $0x2c0] sm:$0xff]  ;;  %v499_v18 = vld [vmem:[%s6068_s29 + $0x338] sm:$0xff]  ;;  %v498_v22 = vld [vmem:[%s6068_s29 + $0x330] sm:$0xff] }
  0x43   : > { %4843 = vmatpush3.bf16.msra.mxu0 %v5314_v34  ;;  %v414_v34 = vld [vmem:[%s6068_s29 + $0x90] sm:$0xff]  ;;  %v505_v23 = vld [vmem:[%s6068_s29 + $0x368] sm:$0xff] }
  0x44   : > { %4844 = vmatprep.subr.bf16.mxu0 %v5315_v41  ;;  %v458_v41 = vld [vmem:[%s6068_s29 + $0x1f0] sm:$0xff] }
  0x46   : > { %1043 = vmatmul.mubr.bf16.gmra.mrb[12].mxu0 %v529_v25  ;;  %v415_v25 = vld [vmem:[%s6068_s29 + $0x98] sm:$0xff] }
  0x47   : > { %1050 = vmatprep.mubr.bf16.mxu0 %v537_v28  ;;  %4845 = vmatpush3.bf16.msra.mxu0 %v5316_v43  ;;  %v423_v28 = vld [vmem:[%s6068_s29 + $0xd8] sm:$0xff]  ;;  %v519_v43 = vpack.c.bf16 %v421_v35, %v414_v34  ;;  %v6277_v34 = vld [vmem:[%s7274_s9] ss:$0 sm:$0xff] }
  0x48   : > { %1140 = vmatmul.mubr.bf16.gmra.mrb[12].mxu1 %v531_v32  ;;  %4846 = vmatprep.subr.bf16.mxu0 %v5317_v48  ;;  %v520_v32 = vpack.c.bf16 %v422_v26, %v415_v25  ;;  %v443_v48 = vld [vmem:[%s6068_s29 + $0x178] sm:$0xff]  ;;  %v5319_v25 = vld [vmem:[%s7267_s2] sm:$0xff]   ;;  %v5320_v26 = vld [vmem:[%s7267_s2 + $0x8] sm:$0xff]  }
  0x49   : > { %1147 = vmatprep.mubr.bf16.mxu1 %v539_v33  ;;  %v521_v33 = vpack.c.bf16 %v423_v28, %v416_v27  ;;  %v534_v56 = vpack.c.bf16 %v450_v49, %v443_v48  ;;  %5035 = vmatprep.subr.bf16.mxu1 %v5319_v25  ;;  %v5321_v27 = vld [vmem:[%s7267_s2 + $0x10] sm:$0xff]   ;;  %v5322_v28 = vld [vmem:[%s7267_s2 + $0x18] sm:$0xff]   ;;  %v5328_v48 = vld [vmem:[%s7268_s3 + $0x8] sm:$0xff]  }
  0x4b   : > { %4847 = vmatpush3.bf16.msra.mxu0 %v5318_v52  ;;  %v479_v52 = vld [vmem:[%s6068_s29 + $0x298] sm:$0xff] }
  0x4c   : > { %v549_v59 = vpack.c.bf16 %v479_v52, %v472_v51 }
  0x4e   : > { %1051 = vmatmul.mubr.bf16.gmra.mrb[16].mxu0 %v536_v42  ;;  %v465_v42 = vld [vmem:[%s6068_s29 + $0x228] sm:$0xff] }
  0x4f   : > { %1058 = vmatprep.mubr.bf16.mxu0 %v544_v44  ;;  %v527_v44 = vpack.c.bf16 %v436_v37, %v429_v36 }
  0x50   : > { %1148 = vmatmul.mubr.bf16.gmra.mrb[16].mxu1 %v538_v47  ;;  %v535_v47 = vpack.c.bf16 %v451_v40, %v444_v39 }
  0x51   : > { %1155 = vmatprep.mubr.bf16.mxu1 %v546_v50  ;;  %v542_v50 = vpack.c.bf16 %v465_v42, %v458_v41 }
  0x56   : > { %1059 = vmatmul.mubr.bf16.gmra.mrb[20].mxu0 %v543_v55  ;;  %v526_v55 = vpack.c.bf16 %v435_v46, %v428_v45 }
  0x57   : > { %1066 = vmatprep.mubr.bf16.mxu0 %v551_v58  ;;  %v449_v58 = vld [vmem:[%s6068_s29 + $0x1a8] sm:$0xff] }
  0x58   : > { %1156 = vmatmul.mubr.bf16.gmra.mrb[20].mxu1 %v545_v61  ;;  %v464_v61 = vld [vmem:[%s6068_s29 + $0x220] sm:$0xff]  ;;  %v533_v1 = vpack.c.bf16 %v449_v58, %v442_v57 }
  0x59   : > { %1163 = vmatprep.mubr.bf16.mxu1 %v553_v62  ;;  %v556_v62 = vpack.c.bf16 %v493_v54, %v486_v53  ;;  %v541_v2 = vpack.c.bf16 %v464_v61, %v457_v60 }
  0x5e   : > { %1067 = vmatmul.mubr.bf16.gmra.mrb[24].mxu0 %v550_v3  ;;  %v456_v3 = vld [vmem:[%s6068_s29 + $0x1e0] sm:$0xff] }
  0x5f   : > { %1074 = vmatprep.mubr.bf16.mxu0 %v558_v6  ;;  %v471_v6 = vld [vmem:[%s6068_s29 + $0x258] sm:$0xff]  ;;  %v540_v8 = vpack.c.bf16 %v463_v4, %v456_v3 }
  0x60   : > { %1164 = vmatmul.mubr.bf16.gmra.mrb[24].mxu1 %v552_v9  ;;  %v548_v9 = vpack.c.bf16 %v478_v7, %v471_v6 }
  0x61   : > { %1171 = vmatprep.mubr.bf16.mxu1 %v560_v10  ;;  %v470_v10 = vld [vmem:[%s6068_s29 + $0x250] sm:$0xff] }
  0x62   : > { %v547_v14 = vpack.c.bf16 %v477_v11, %v470_v10  ;;  %v5331_v10 = vld [vmem:[%s7268_s3 + $0x20] sm:$0xff]  }
  0x66   : > { %1075 = vmatmul.mubr.bf16.gmra.mrb[28].mxu0 %v557_v19  ;;  %v506_v19 = vld [vmem:[%s6068_s29 + $0x370] sm:$0xff] }
  0x67   : > { %1212 = vmatprep.mubr.bf16.mxu0 %v513_v20  ;;  %v554_v20 = vpack.c.bf16 %v491_v17, %v484_v16 }
  0x68   : > { %1172 = vmatmul.mubr.bf16.gmra.mrb[28].mxu1 %v559_v21  ;;  %v562_v21 = vpack.c.bf16 %v506_v19, %v499_v18 }
  0x69   : > { %5019 = vmatprep.mubr.msk.bf16.mxu1 %vm961_vm0, %v514_v24  ;;  %v561_v24 = vpack.c.bf16 %v505_v23, %v498_v22 }
  0x6e   : > { %1213 = vmatmul.mubr.bf16.vlgmr.msra.gmra.mrb[32].mxu0 %v512_v31  ;;  %v5325_v31 = vld [vmem:[%s7267_s2 + $0x30] sm:$0xff]  }
  0x6f   : > { %1220 = vmatprep.mubr.bf16.mxu0 %v520_v32  ;;  %v5326_v32 = vld [vmem:[%s7267_s2 + $0x38] sm:$0xff]  }
  0x70   : > { %5020 = vmatmul.mubr.msk.bf16.vlgmr.msra.gmra.mrb[32].mxu1 %vm961_vm0, %v521_v33 }
  0x71   : > { %5023 = vmatprep.mubr.msk.bf16.mxu1 %vm961_vm0, %v528_v38  ;;  %5036 = vmatpush3.bf16.msra.mxu1 %v5319_v25 }
  0x72   : > { %5037 = vmatprep.subr.bf16.mxu1 %v5320_v26 }
  0x75   : > { %5038 = vmatpush3.bf16.msra.mxu1 %v5320_v26 }
  0x76   : > { %1221 = vmatmul.mubr.bf16.gmra.mrb[36].mxu0 %v519_v43  ;;  %5039 = vmatprep.subr.bf16.mxu1 %v5321_v27 }
  0x77   : > { %1228 = vmatprep.mubr.bf16.mxu0 %v527_v44 }
  0x78   : > { %5024 = vmatmul.mubr.msk.bf16.gmra.mrb[36].mxu1 %vm961_vm0, %v535_v47  ;;  %v5327_v47 = vld [vmem:[%s7268_s3] sm:$0xff]  }
  0x79   : > { %5027 = vmatprep.mubr.msk.bf16.mxu1 %vm961_vm0, %v542_v50  ;;  %5040 = vmatpush3.bf16.msra.mxu1 %v5321_v27 }
  0x7a   : > { %5041 = vmatprep.subr.bf16.mxu1 %v5322_v28  ;;  %5067 = vmatprep.subr.bf16.mxu0 %v5327_v47 }
  0x7b   : > { %5068 = vmatpush3.bf16.msra.mxu0 %v5327_v47 }
  0x7c   : > { %5069 = vmatprep.subr.bf16.mxu0 %v5328_v48 }
  0x7d   : > { %5042 = vmatpush3.bf16.msra.mxu1 %v5322_v28  ;;  %v5333_v28 = vld [vmem:[%s7268_s3 + $0x30] sm:$0xff]  }
  0x7e   : > { %1229 = vmatmul.mubr.bf16.gmra.mrb[40].mxu0 %v526_v55  ;;  %5043 = vmatprep.subr.bf16.mxu1 %v5323_v29 }
  0x7f   : > { %1236 = vmatprep.mubr.bf16.mxu0 %v534_v56  ;;  %v5329_v56 = vld [vmem:[%s7268_s3 + $0x10] sm:$0xff]   ;;  %5070 = vmatpush3.bf16.msra.mxu0 %v5328_v48 }
  0x80   : > { %5028 = vmatmul.mubr.msk.bf16.gmra.mrb[40].mxu1 %vm961_vm0, %v549_v59  ;;  %5071 = vmatprep.subr.bf16.mxu0 %v5329_v56 }
  0x81   : > { %5031 = vmatprep.mubr.msk.bf16.mxu1 %vm961_vm0, %v556_v62  ;;  %5044 = vmatpush3.bf16.msra.mxu1 %v5323_v29 }
  0x82   : > { %5045 = vmatprep.subr.bf16.mxu1 %v5324_v30 }
  0x83   : > { %5072 = vmatpush3.bf16.msra.mxu0 %v5329_v56 }
  0x85   : > { %5046 = vmatpush3.bf16.msra.mxu1 %v5324_v30 }
  0x86   : > { %1237 = vmatmul.mubr.bf16.gmra.mrb[44].mxu0 %v533_v1  ;;  %5047 = vmatprep.subr.bf16.mxu1 %v5325_v31 }
  0x87   : > { %1244 = vmatprep.mubr.bf16.mxu0 %v541_v2  ;;  %v5330_v2 = vld [vmem:[%s7268_s3 + $0x18] sm:$0xff]  }
  0x88   : > { %5032 = vmatmul.mubr.msk.bf16.gmra.mrb[44].mxu1 %vm961_vm0, %v563_v5  ;;  %5073 = vmatprep.subr.bf16.mxu0 %v5330_v2 }
  0x89   : > { %5048 = vmatpush3.bf16.msra.mxu1 %v5325_v31  ;;  %5074 = vmatpush3.bf16.msra.mxu0 %v5330_v2 }
  0x8a   : > { %5049 = vmatprep.subr.bf16.mxu1 %v5326_v32  ;;  %5075 = vmatprep.subr.bf16.mxu0 %v5331_v10 }
  0x8d   : > { %5050 = vmatpush3.bf16.msra.mxu1 %v5326_v32  ;;  %5076 = vmatpush3.bf16.msra.mxu0 %v5331_v10 }
  0x8e   : > { %1245 = vmatmul.mubr.bf16.gmra.mrb[48].mxu0 %v540_v8 }
  0x8f   : > { %1252 = vmatprep.mubr.bf16.mxu0 %v548_v9 }
  0x96   : > { %1253 = vmatmul.mubr.bf16.gmra.mrb[52].mxu0 %v547_v14 }
  0x97   : > { %1260 = vmatprep.mubr.bf16.mxu0 %v555_v15 }
  0x9e   : > { %1261 = vmatmul.mubr.bf16.gmra.mrb[56].mxu0 %v554_v20  ;;  %v5332_v20 = vld [vmem:[%s7268_s3 + $0x28] sm:$0xff]  }
  0x9f   : > { %1268 = vmatprep.mubr.bf16.mxu0 %v562_v21  ;;  %5077 = vmatprep.subr.bf16.mxu0 %v5332_v20 }
  0xa0   : > { %5078 = vmatpush3.bf16.msra.mxu0 %v5332_v20 }
  0xa1   : > { %5079 = vmatprep.subr.bf16.mxu0 %v5333_v28 }
  0xa4   : > { %5080 = vmatpush3.bf16.msra.mxu0 %v5333_v28 }
  0xa6   : > { %1269 = vmatmul.mubr.bf16.gmra.mrb[60].mxu0 %v561_v24 }
 0x101   : > { %v4720_v33 = vpop.f32.mrb[0].mxu0 }
 0x102   : > { %v4721_v35 = vpop.f32.mrb[1].mxu0 }
 0x103   : > { %v4722_v36 = vadd.f32 %v4721_v35, %v4720_v33  ;;  %v4723_v37 = vpop.f32.mrb[2].mxu0  ;;  %v4784_v38 = vpop.f32.mrb[0].mxu1 }
 0x104   : > { %v4724_v39 = vpop.f32.mrb[3].mxu0  ;;  %v4785_v42 = vpop.f32.mrb[1].mxu1 }
 0x105   : > { %v1021_v40 = vadd.f32 %v4722_v36, %v6277_v34  ;;  %v4725_v41 = vadd.f32 %v4724_v39, %v4723_v37  ;;  %v4786_v43 = vadd.f32 %v4785_v42, %v4784_v38  ;;  %v4787_v44 = vpop.f32.mrb[2].mxu1 }
 0x106   : > { %v4788_v46 = vpop.f32.mrb[3].mxu1 }
 0x107   : > { %v1024_v45 = vadd.f32 %v4725_v41, %v6277_v34  ;;  %v6287_v49 = vadd.f32 %v4786_v43, %v1021_v40  ;;  %v4789_v50 = vadd.f32 %v4788_v46, %v4787_v44 }
 0x109   : > { %v4726_v51 = vpop.f32.mrb[4].mxu0  ;;  %v6289_v52 = vadd.f32 %v4789_v50, %v1024_v45 }
 0x10a   : > { %v4727_v53 = vpop.f32.mrb[5].mxu0 }
 0x10b   : > { %v4728_v54 = vadd.f32 %v4727_v53, %v4726_v51  ;;  %v4729_v55 = vpop.f32.mrb[6].mxu0  ;;  %v4790_v57 = vpop.f32.mrb[4].mxu1 }
 0x10c   : > { %v4730_v58 = vpop.f32.mrb[7].mxu0  ;;  %v4791_v61 = vpop.f32.mrb[5].mxu1 }
 0x10d   : > { %v1029_v59 = vadd.f32 %v4728_v54, %v6277_v34  ;;  %v4731_v60 = vadd.f32 %v4730_v58, %v4729_v55  ;;  %v4792_v62 = vadd.f32 %v4791_v61, %v4790_v57  ;;  %v4793_v63 = vpop.f32.mrb[6].mxu1 }
 0x10e   : > { %v4794_v1 = vpop.f32.mrb[7].mxu1 }
 0x10f   : > { %v1032_v0 = vadd.f32 %v4731_v60, %v6277_v34  ;;  %v6299_v3 = vadd.f32 %v4792_v62, %v1029_v59  ;;  %v4795_v4 = vadd.f32 %v4794_v1, %v4793_v63 }
 0x111   : > { %v4732_v5 = vpop.f32.mrb[8].mxu0  ;;  %v6301_v6 = vadd.f32 %v4795_v4, %v1032_v0 }
 0x112   : > { %v4733_v7 = vpop.f32.mrb[9].mxu0 }
 0x113   : > { %v4734_v8 = vadd.f32 %v4733_v7, %v4732_v5  ;;  %v4735_v9 = vpop.f32.mrb[10].mxu0  ;;  %v4796_v11 = vpop.f32.mrb[8].mxu1 }
 0x114   : > { %v4736_v12 = vpop.f32.mrb[11].mxu0  ;;  %v4797_v15 = vpop.f32.mrb[9].mxu1 }
 0x115   : > { %v1037_v13 = vadd.f32 %v4734_v8, %v6277_v34  ;;  %v4737_v14 = vadd.f32 %v4736_v12, %v4735_v9  ;;  %v4798_v16 = vadd.f32 %v4797_v15, %v4796_v11  ;;  %v4799_v17 = vpop.f32.mrb[10].mxu1 }
 0x116   : > { %v4800_v19 = vpop.f32.mrb[11].mxu1 }
 0x117   : > { %v1040_v18 = vadd.f32 %v4737_v14, %v6277_v34  ;;  %v6311_v21 = vadd.f32 %v4798_v16, %v1037_v13  ;;  %v4801_v22 = vadd.f32 %v4800_v19, %v4799_v17 }
 0x119   : > { %v4738_v23 = vpop.f32.mrb[12].mxu0  ;;  %v6313_v24 = vadd.f32 %v4801_v22, %v1040_v18 }
 0x11a   : > { %v4739_v25 = vpop.f32.mrb[13].mxu0 }
 0x11b   : > { %v4740_v26 = vadd.f32 %v4739_v25, %v4738_v23  ;;  %v4741_v27 = vpop.f32.mrb[14].mxu0  ;;  %v4802_v29 = vpop.f32.mrb[12].mxu1 }
 0x11c   : > { %v4742_v30 = vpop.f32.mrb[15].mxu0  ;;  %v4803_v33 = vpop.f32.mrb[13].mxu1 }
 0x11d   : > { %v1045_v31 = vadd.f32 %v4740_v26, %v6277_v34  ;;  %v4743_v32 = vadd.f32 %v4742_v30, %v4741_v27  ;;  %v4804_v35 = vadd.f32 %v4803_v33, %v4802_v29  ;;  %v4805_v36 = vpop.f32.mrb[14].mxu1 }
 0x11e   : > { %v4806_v38 = vpop.f32.mrb[15].mxu1 }
 0x11f   : > { %v1048_v37 = vadd.f32 %v4743_v32, %v6277_v34  ;;  %v6320_v39 = vadd.f32 %v4804_v35, %v1045_v31  ;;  %v4807_v40 = vadd.f32 %v4806_v38, %v4805_v36 }
 0x121   : > { %v4744_v41 = vpop.f32.mrb[16].mxu0  ;;  %v6322_v42 = vadd.f32 %v4807_v40, %v1048_v37 }
 0x122   : > { %v4745_v43 = vpop.f32.mrb[17].mxu0 }
 0x123   : > { %v4746_v44 = vadd.f32 %v4745_v43, %v4744_v41  ;;  %v4747_v45 = vpop.f32.mrb[18].mxu0  ;;  %v4808_v46 = vpop.f32.mrb[16].mxu1 }
 0x124   : > { %v4748_v47 = vpop.f32.mrb[19].mxu0  ;;  %v4809_v51 = vpop.f32.mrb[17].mxu1 }
 0x125   : > { %v1053_v48 = vadd.f32 %v4746_v44, %v6277_v34  ;;  %v4749_v50 = vadd.f32 %v4748_v47, %v4747_v45  ;;  %v4810_v53 = vadd.f32 %v4809_v51, %v4808_v46  ;;  %v4811_v54 = vpop.f32.mrb[18].mxu1 }
 0x126   : > { %v4812_v56 = vpop.f32.mrb[19].mxu1 }
 0x127   : > { %v1056_v55 = vadd.f32 %v4749_v50, %v6277_v34  ;;  %v6326_v57 = vadd.f32 %v4810_v53, %v1053_v48  ;;  %v4813_v58 = vadd.f32 %v4812_v56, %v4811_v54 }
 0x129   : > { %v4750_v59 = vpop.f32.mrb[20].mxu0  ;;  %v6328_v60 = vadd.f32 %v4813_v58, %v1056_v55 }
 0x12a   : > { %v4751_v61 = vpop.f32.mrb[21].mxu0 }
 0x12b   : > { %v4752_v62 = vadd.f32 %v4751_v61, %v4750_v59  ;;  %v4753_v63 = vpop.f32.mrb[22].mxu0  ;;  %v4814_v0 = vpop.f32.mrb[20].mxu1 }
 0x12c   : > { %v4754_v1 = vpop.f32.mrb[23].mxu0  ;;  %v4815_v5 = vpop.f32.mrb[21].mxu1 }
 0x12d   : > { %v1061_v2 = vadd.f32 %v4752_v62, %v6277_v34  ;;  %v4755_v4 = vadd.f32 %v4754_v1, %v4753_v63  ;;  %v4816_v7 = vadd.f32 %v4815_v5, %v4814_v0  ;;  %v4817_v8 = vpop.f32.mrb[22].mxu1 }
 0x12e   : > { %v4818_v10 = vpop.f32.mrb[23].mxu1 }
 0x12f   : > { %v1064_v9 = vadd.f32 %v4755_v4, %v6277_v34  ;;  %v6332_v11 = vadd.f32 %v4816_v7, %v1061_v2  ;;  %v4819_v12 = vadd.f32 %v4818_v10, %v4817_v8 }
 0x131   : > { %v4756_v13 = vpop.f32.mrb[24].mxu0  ;;  %v6334_v14 = vadd.f32 %v4819_v12, %v1064_v9 }
 0x132   : > { %v4757_v15 = vpop.f32.mrb[25].mxu0 }
 0x133   : > { %v4758_v16 = vadd.f32 %v4757_v15, %v4756_v13  ;;  %v4759_v17 = vpop.f32.mrb[26].mxu0  ;;  %v4820_v18 = vpop.f32.mrb[24].mxu1 }
 0x134   : > { %v4760_v19 = vpop.f32.mrb[27].mxu0  ;;  %v4821_v23 = vpop.f32.mrb[25].mxu1 }
 0x135   : > { %v1069_v20 = vadd.f32 %v4758_v16, %v6277_v34  ;;  %v4761_v22 = vadd.f32 %v4760_v19, %v4759_v17  ;;  %v4822_v25 = vadd.f32 %v4821_v23, %v4820_v18  ;;  %v4823_v26 = vpop.f32.mrb[26].mxu1 }
 0x136   : > { %v4824_v28 = vpop.f32.mrb[27].mxu1 }
 0x137   : > { %v1072_v27 = vadd.f32 %v4761_v22, %v6277_v34  ;;  %v6338_v29 = vadd.f32 %v4822_v25, %v1069_v20  ;;  %v4825_v30 = vadd.f32 %v4824_v28, %v4823_v26 }
 0x139   : > { %v4762_v31 = vpop.f32.mrb[28].mxu0  ;;  %v6340_v32 = vadd.f32 %v4825_v30, %v1072_v27 }
 0x13a   : > { %v4763_v33 = vpop.f32.mrb[29].mxu0 }
 0x13b   : > { %v4764_v35 = vadd.f32 %v4763_v33, %v4762_v31  ;;  %v4765_v36 = vpop.f32.mrb[30].mxu0  ;;  %v4826_v37 = vpop.f32.mrb[28].mxu1 }
 0x13c   : > { %v4766_v38 = vpop.f32.mrb[31].mxu0  ;;  %v4827_v43 = vpop.f32.mrb[29].mxu1 }
 0x13d   : > { %v1077_v40 = vadd.f32 %v4764_v35, %v6277_v34  ;;  %v4767_v41 = vadd.f32 %v4766_v38, %v4765_v36  ;;  %v4828_v44 = vadd.f32 %v4827_v43, %v4826_v37  ;;  %v4829_v45 = vpop.f32.mrb[30].mxu1 }
 0x13e   : > { %v4830_v47 = vpop.f32.mrb[31].mxu1 }
 0x13f   : > { %v1080_v46 = vadd.f32 %v4767_v41, %v6277_v34  ;;  %v6344_v48 = vadd.f32 %v4828_v44, %v1077_v40  ;;  %v4831_v50 = vadd.f32 %v4830_v47, %v4829_v45 }
 0x141   : > { %v4848_v51 = vpop.f32.mrb[32].mxu0  ;;  %v6346_v53 = vadd.f32 %v4831_v50, %v1080_v46 }
 0x142   : > { %v4849_v54 = vpop.f32.mrb[33].mxu0 }
 0x143   : > { %v4850_v55 = vadd.f32 %v4849_v54, %v4848_v51  ;;  %v4851_v56 = vpop.f32.mrb[34].mxu0  ;;  %v5021_v59 = vpop.f32.mrb[32].mxu1 }
 0x144   : > { %v4852_v58 = vpop.f32.mrb[35].mxu0  ;;  %v1311_v63 = vpop.f32.mrb[33].mxu1 }
 0x145   : > { %v4853_v61 = vadd.f32 %v4852_v58, %v4851_v56  ;;  %v1215_v62 = vadd.f32 %v4850_v55, %v6287_v49  ;;  %v5022_v0 = vpop.f32.mrb[34].mxu1 }
 0x146   : > { %v1314_v2 = vpop.f32.mrb[35].mxu1 }
 0x147   : > { %v1312_v1 = vadd.f32 %v1311_v63, %v1215_v62  ;;  %v1218_v34 = vadd.f32 %v4853_v61, %v6289_v52 }
 0x149   : > { %v1315_v4 = vadd.f32 %v1314_v2, %v1218_v34  ;;  %v4854_v5 = vpop.f32.mrb[36].mxu0  ;;  %v1374_v8 = vmax.f32 %v1312_v1, 0.0 }
 0x14a   : > { %v4855_v7 = vpop.f32.mrb[37].mxu0 }
 0x14b   : > { %v1375_v9 = vmax.f32 %v1315_v4, 0.0  ;;  %v4856_v10 = vadd.f32 %v4855_v7, %v4854_v5  ;;  %v4857_v12 = vpop.f32.mrb[38].mxu0  ;;  %v5025_v15 = vpop.f32.mrb[36].mxu1 }
 0x14c   : > { %v4858_v13 = vpop.f32.mrb[39].mxu0  ;;  %v1327_v49 = vpop.f32.mrb[37].mxu1 }
 0x14d   : > { %v1390_v16 = vpack.c.bf16 %v1375_v9, %v1374_v8  ;;  %v1223_v17 = vadd.f32 %v4856_v10, %v6299_v3  ;;  %v4859_v18 = vadd.f32 %v4858_v13, %v4857_v12  ;;  %v5026_v19 = vpop.f32.mrb[38].mxu1 }
 0x14e   : > { %v1330_v52 = vpop.f32.mrb[39].mxu1 }
 0x14f   : > { %v1320_v20 = vadd.f32 %v5021_v59, %v1223_v17  ;;  %v1226_v22 = vadd.f32 %v4859_v18, %v6301_v6  ;;  %5051 = vmatprep.mubr.bf16.mxu1 %v1390_v16 }
 0x151   : > { %v1323_v23 = vadd.f32 %v5022_v0, %v1226_v22  ;;  %v4860_v25 = vpop.f32.mrb[40].mxu0  ;;  %v1376_v27 = vmax.f32 %v1320_v20, 0.0 }
 0x152   : > { %v4861_v26 = vpop.f32.mrb[41].mxu0 }
 0x153   : > { %v1377_v28 = vmax.f32 %v1323_v23, 0.0  ;;  %v4862_v30 = vadd.f32 %v4861_v26, %v4860_v25  ;;  %v4863_v31 = vpop.f32.mrb[42].mxu0  ;;  %v5029_v35 = vpop.f32.mrb[40].mxu1 }
 0x154   : > { %v4864_v33 = vpop.f32.mrb[43].mxu0  ;;  %v1343_v38 = vpop.f32.mrb[41].mxu1 }
 0x155   : > { %v1391_v36 = vpack.c.bf16 %v1377_v28, %v1376_v27  ;;  %v4865_v37 = vadd.f32 %v4864_v33, %v4863_v31  ;;  %v1231_v3 = vadd.f32 %v4862_v30, %v6311_v21  ;;  %v5030_v40 = vpop.f32.mrb[42].mxu1 }
 0x156   : > { %v1346_v43 = vpop.f32.mrb[43].mxu1 }
 0x157   : > { %v1328_v41 = vadd.f32 %v1327_v49, %v1231_v3  ;;  %5052 = vmatmul.mubr.bf16.vlgmr.msra.gmra.mrb[48].mxu1 %v1391_v36  ;;  %v1234_v6 = vadd.f32 %v4865_v37, %v6313_v24 }
 0x159   : > { %v1331_v44 = vadd.f32 %v1330_v52, %v1234_v6  ;;  %v4866_v45 = vpop.f32.mrb[44].mxu0  ;;  %v1378_v47 = vmax.f32 %v1328_v41, 0.0 }
 0x15a   : > { %v4867_v46 = vpop.f32.mrb[45].mxu0 }
 0x15b   : > { %v1379_v50 = vmax.f32 %v1331_v44, 0.0  ;;  %v4868_v51 = vadd.f32 %v4867_v46, %v4866_v45  ;;  %v4869_v54 = vpop.f32.mrb[46].mxu0  ;;  %v6354_v56 = vpop.f32.mrb[44].mxu1 }
 0x15c   : > { %v4870_v55 = vpop.f32.mrb[47].mxu0  ;;  %v1359_v61 = vpop.f32.mrb[45].mxu1 }
 0x15d   : > { %v1392_v58 = vpack.c.bf16 %v1379_v50, %v1378_v47  ;;  %v1239_v21 = vadd.f32 %v4868_v51, %v6320_v39  ;;  %v4871_v59 = vadd.f32 %v4870_v55, %v4869_v54  ;;  %v5034_v62 = vpop.f32.mrb[46].mxu1 }
 0x15e   : > { %v1362_v0 = vpop.f32.mrb[47].mxu1 }
 0x15f   : > { %v1336_v63 = vadd.f32 %v5025_v15, %v1239_v21  ;;  %v1242_v24 = vadd.f32 %v4871_v59, %v6322_v42  ;;  %5055 = vmatprep.mubr.bf16.mxu1 %v1392_v58 }
 0x161   : > { %v1339_v1 = vadd.f32 %v5026_v19, %v1242_v24  ;;  %v4872_v34 = vpop.f32.mrb[48].mxu0  ;;  %v1380_v4 = vmax.f32 %v1336_v63, 0.0  ;;  %v5339_v63 = vld [vmem:[%s7269_s4 + $0x20] sm:$0xff]   ;;  %v5340_v24 = vld [vmem:[%s7269_s4 + $0x28] sm:$0xff]  }
 0x162   : > { %v4873_v2 = vpop.f32.mrb[49].mxu0 }
 0x163   : > { %v1381_v5 = vmax.f32 %v1339_v1, 0.0  ;;  %v4874_v7 = vadd.f32 %v4873_v2, %v4872_v34  ;;  %v4875_v8 = vpop.f32.mrb[50].mxu0 }
 0x164   : > { %v4876_v9 = vpop.f32.mrb[51].mxu0 }
 0x165   : > { %v4877_v10 = vadd.f32 %v4876_v9, %v4875_v8  ;;  %v1247_v12 = vadd.f32 %v4874_v7, %v6326_v57  ;;  %v1393_v39 = vpack.c.bf16 %v1381_v5, %v1380_v4 }
 0x167   : > { %v1344_v13 = vadd.f32 %v1343_v38, %v1247_v12  ;;  %5056 = vmatmul.mubr.bf16.gmra.mrb[52].mxu1 %v1393_v39  ;;  %v1250_v15 = vadd.f32 %v4877_v10, %v6328_v60 }
 0x169   : > { %v1347_v16 = vadd.f32 %v1346_v43, %v1250_v15  ;;  %v4878_v42 = vpop.f32.mrb[52].mxu0  ;;  %v1382_v18 = vmax.f32 %v1344_v13, 0.0 }
 0x16a   : > { %v4879_v17 = vpop.f32.mrb[53].mxu0 }
 0x16b   : > { %v1383_v49 = vmax.f32 %v1347_v16, 0.0  ;;  %v4880_v19 = vadd.f32 %v4879_v17, %v4878_v42  ;;  %v4881_v20 = vpop.f32.mrb[54].mxu0 }
 0x16c   : > { %v4882_v22 = vpop.f32.mrb[55].mxu0 }
 0x16d   : > { %v1394_v52 = vpack.c.bf16 %v1383_v49, %v1382_v18  ;;  %v1255_v23 = vadd.f32 %v4880_v19, %v6332_v11  ;;  %v4883_v25 = vadd.f32 %v4882_v22, %v4881_v20 }
 0x16f   : > { %v1352_v26 = vadd.f32 %v5029_v35, %v1255_v23  ;;  %v1258_v57 = vadd.f32 %v4883_v25, %v6334_v14  ;;  %5059 = vmatprep.mubr.bf16.mxu1 %v1394_v52 }
 0x171   : > { %v1355_v27 = vadd.f32 %v5030_v40, %v1258_v57  ;;  %v4884_v28 = vpop.f32.mrb[56].mxu0  ;;  %v1384_v60 = vmax.f32 %v1352_v26, 0.0 }
 0x172   : > { %v4885_v30 = vpop.f32.mrb[57].mxu0 }
 0x173   : > { %v1385_v31 = vmax.f32 %v1355_v27, 0.0  ;;  %v4886_v33 = vadd.f32 %v4885_v30, %v4884_v28  ;;  %v4887_v36 = vpop.f32.mrb[58].mxu0 }
 0x174   : > { %v4888_v37 = vpop.f32.mrb[59].mxu0 }
 0x175   : > { %v4889_v3 = vadd.f32 %v4888_v37, %v4887_v36  ;;  %v1263_v38 = vadd.f32 %v4886_v33, %v6338_v29  ;;  %v1395_v41 = vpack.c.bf16 %v1385_v31, %v1384_v60 }
 0x177   : > { %v1360_v6 = vadd.f32 %v1359_v61, %v1263_v38  ;;  %5060 = vmatmul.mubr.bf16.gmra.mrb[56].mxu1 %v1395_v41  ;;  %v1266_v11 = vadd.f32 %v4889_v3, %v6340_v32  ;;  %v5334_v61 = vld [vmem:[%s7268_s3 + $0x38] sm:$0xff]  }
 0x178   : > { %5081 = vmatprep.subr.bf16.mxu0 %v5334_v61 }
 0x179   : > { %v1363_v35 = vadd.f32 %v1362_v0, %v1266_v11  ;;  %v4890_v43 = vpop.f32.mrb[60].mxu0  ;;  %v1386_v44 = vmax.f32 %v1360_v6, 0.0  ;;  %5082 = vmatpush3.bf16.msra.mxu0 %v5334_v61  ;;  %v4464_v0 = vld [vmem:[%s7274_s9 + $0x1] ss:$0 sm:$0xff]  ;;  %v5341_v61 = vld [vmem:[%s7269_s4 + $0x30] sm:$0xff]  }
 0x17a   : > { %v4891_v14 = vpop.f32.mrb[61].mxu0 }
 0x17b   : > { %v1387_v40 = vmax.f32 %v1363_v35, 0.0  ;;  %v4892_v45 = vadd.f32 %v4891_v14, %v4890_v43  ;;  %v4893_v46 = vpop.f32.mrb[62].mxu0 }
 0x17c   : > { %v4894_v47 = vpop.f32.mrb[63].mxu0 }
 0x17d   : > { %v1396_v50 = vpack.c.bf16 %v1387_v40, %v1386_v44  ;;  %v1271_v51 = vadd.f32 %v4892_v45, %v6344_v48  ;;  %v4895_v54 = vadd.f32 %v4894_v47, %v4893_v46  ;;  %v5335_v48 = vld [vmem:[%s7269_s4] sm:$0xff]  }
 0x17e   : > { %5099 = vmatprep.subr.bf16.mxu1 %v5335_v48 }
 0x17f   : > { %v1368_v55 = vadd.f32 %v6354_v56, %v1271_v51  ;;  %v1274_v29 = vadd.f32 %v4895_v54, %v6346_v53  ;;  %5063 = vmatprep.mubr.bf16.mxu1 %v1396_v50  ;;  %v5336_v53 = vld [vmem:[%s7269_s4 + $0x8] sm:$0xff]   ;;  %5100 = vmatpush3.bf16.msra.mxu1 %v5335_v48  ;;  %v5337_v56 = vld [vmem:[%s7269_s4 + $0x10] sm:$0xff]   ;;  %v5342_v48 = vld [vmem:[%s7269_s4 + $0x38] sm:$0xff]  }
 0x180   : > { %5101 = vmatprep.subr.bf16.mxu1 %v5336_v53 }
 0x181   : > { %v1371_v58 = vadd.f32 %v5034_v62, %v1274_v29  ;;  %v1388_v21 = vmax.f32 %v1368_v55, 0.0  ;;  %v5338_v62 = vld [vmem:[%s7269_s4 + $0x18] sm:$0xff]  }
 0x183   : > { %v1389_v32 = vmax.f32 %v1371_v58, 0.0  ;;  %5102 = vmatpush3.bf16.msra.mxu1 %v5336_v53  ;;  %v5343_v53 = vld [vmem:[%s7270_s5] sm:$0xff]  }
 0x184   : > { %5103 = vmatprep.subr.bf16.mxu1 %v5337_v56  ;;  %5131 = vmatprep.subr.bf16.mxu0 %v5343_v53 }
 0x185   : > { %v1397_v59 = vpack.c.bf16 %v1389_v32, %v1388_v21 }
 0x187   : > { %5064 = vmatmul.mubr.bf16.gmra.mrb[60].mxu1 %v1397_v59 }
 0x188   : > { %5104 = vmatpush3.bf16.msra.mxu1 %v5337_v56  ;;  %v5344_v56 = vld [vmem:[%s7270_s5 + $0x8] sm:$0xff]  }
 0x189   : > { %5105 = vmatprep.subr.bf16.mxu1 %v5338_v62 }
 0x18c   : > { %5106 = vmatpush3.bf16.msra.mxu1 %v5338_v62  ;;  %v5345_v62 = vld [vmem:[%s7270_s5 + $0x10] sm:$0xff]  }
 0x18d   : > { %5107 = vmatprep.subr.bf16.mxu1 %v5339_v63 }
 0x190   : > { %5108 = vmatpush3.bf16.msra.mxu1 %v5339_v63  ;;  %v5346_v63 = vld [vmem:[%s7270_s5 + $0x18] sm:$0xff]  }
 0x191   : > { %5109 = vmatprep.subr.bf16.mxu1 %v5340_v24 }
 0x194   : > { %5110 = vmatpush3.bf16.msra.mxu1 %v5340_v24  ;;  %v5347_v24 = vld [vmem:[%s7270_s5 + $0x20] sm:$0xff]  }
 0x195   : > { %5111 = vmatprep.subr.bf16.mxu1 %v5341_v61 }
 0x198   : > { %5112 = vmatpush3.bf16.msra.mxu1 %v5341_v61 }
 0x199   : > { %5113 = vmatprep.subr.bf16.mxu1 %v5342_v48 }
 0x19c   : > { %5114 = vmatpush3.bf16.msra.mxu1 %v5342_v48  ;;  %v5349_v48 = vld [vmem:[%s7270_s5 + $0x30] sm:$0xff]  }
 0x22a   : > { %v5053_v1 = vpop.f32.mrb[48].mxu1 }
 0x22b   : > { %v1510_v34 = vadd.f32 %v5053_v1, %v4464_v0  ;;  %v1501_v2 = vpop.f32.mrb[49].mxu1  ;;  %v4473_v1 = vld [vmem:[%s7274_s9 + $0x2] ss:$0 sm:$0xff] }
 0x22c   : > { %v1502_v4 = vadd.f32 %v4464_v0, %v1501_v2  ;;  %v5054_v5 = vpop.f32.mrb[50].mxu1 }
 0x22d   : > { %v1513_v7 = vadd.f32 %v5054_v5, %v4464_v0  ;;  %v1504_v8 = vpop.f32.mrb[51].mxu1  ;;  %v1566_v10 = vmax.f32 %v1510_v34, 0.0 }
 0x22e   : > { %v1505_v9 = vadd.f32 %v4464_v0, %v1504_v8  ;;  %v1564_v39 = vmax.f32 %v1502_v4, 0.0 }
 0x22f   : > { %v1567_v12 = vmax.f32 %v1513_v7, 0.0 }
 0x230   : > { %v1565_v13 = vmax.f32 %v1505_v9, 0.0 }
 0x231   : > { %v1581_v15 = vpack.c.bf16 %v1567_v12, %v1566_v10 }
 0x232   : > { %v1580_v16 = vpack.c.bf16 %v1565_v13, %v1564_v39 }
 0x234   : > { %5083 = vmatprep.mubr.bf16.mxu0 %v1580_v16 }
 0x235   : > { %5084 = vmatmul.mubr.bf16.vlgmr.msra.gmra.mrb[64].mxu0 %v1581_v15 }
 0x236   : > { %5132 = vmatpush3.bf16.msra.mxu0 %v5343_v53  ;;  %v5350_v53 = vld [vmem:[%s7270_s5 + $0x38] sm:$0xff]  }
 0x237   : > { %5133 = vmatprep.subr.bf16.mxu0 %v5344_v56 }
 0x23a   : > { %v5057_v42 = vpop.f32.mrb[52].mxu1  ;;  %5134 = vmatpush3.bf16.msra.mxu0 %v5344_v56  ;;  %v5351_v56 = vld [vmem:[%s7271_s6] sm:$0xff]  }
 0x23b   : > { %v1526_v17 = vadd.f32 %v5057_v42, %v4464_v0  ;;  %v1517_v18 = vpop.f32.mrb[53].mxu1  ;;  %5135 = vmatprep.subr.bf16.mxu0 %v5345_v62  ;;  %5163 = vmatprep.subr.bf16.mxu1 %v5351_v56 }
 0x23c   : > { %v1518_v49 = vadd.f32 %v4464_v0, %v1517_v18  ;;  %v5058_v19 = vpop.f32.mrb[54].mxu1 }
 0x23d   : > { %v1529_v20 = vadd.f32 %v5058_v19, %v4464_v0  ;;  %v1520_v22 = vpop.f32.mrb[55].mxu1  ;;  %v1570_v23 = vmax.f32 %v1526_v17, 0.0 }
 0x23e   : > { %v1521_v52 = vadd.f32 %v4464_v0, %v1520_v22  ;;  %v1568_v26 = vmax.f32 %v1518_v49, 0.0  ;;  %5136 = vmatpush3.bf16.msra.mxu0 %v5345_v62  ;;  %v5352_v62 = vld [vmem:[%s7271_s6 + $0x8] sm:$0xff]  }
 0x23f   : > { %v1571_v25 = vmax.f32 %v1529_v20, 0.0  ;;  %5137 = vmatprep.subr.bf16.mxu0 %v5346_v63 }
 0x240   : > { %v1569_v57 = vmax.f32 %v1521_v52, 0.0 }
 0x241   : > { %v1583_v27 = vpack.c.bf16 %v1571_v25, %v1570_v23 }
 0x242   : > { %v1582_v28 = vpack.c.bf16 %v1569_v57, %v1568_v26  ;;  %5138 = vmatpush3.bf16.msra.mxu0 %v5346_v63  ;;  %v5353_v63 = vld [vmem:[%s7271_s6 + $0x10] sm:$0xff]  }
 0x243   : > { %5139 = vmatprep.subr.bf16.mxu0 %v5347_v24 }
 0x244   : > { %5087 = vmatprep.mubr.bf16.mxu0 %v1582_v28 }
 0x245   : > { %5088 = vmatmul.mubr.bf16.gmra.mrb[68].mxu0 %v1583_v27 }
 0x246   : > { %5140 = vmatpush3.bf16.msra.mxu0 %v5347_v24  ;;  %v5354_v24 = vld [vmem:[%s7271_s6 + $0x18] sm:$0xff]  }
 0x24a   : > { %v5061_v30 = vpop.f32.mrb[56].mxu1 }
 0x24b   : > { %v1542_v60 = vadd.f32 %v5061_v30, %v4464_v0  ;;  %v1533_v31 = vpop.f32.mrb[57].mxu1 }
 0x24c   : > { %v1534_v33 = vadd.f32 %v4464_v0, %v1533_v31  ;;  %v5062_v36 = vpop.f32.mrb[58].mxu1 }
 0x24d   : > { %v1545_v37 = vadd.f32 %v5062_v36, %v4464_v0  ;;  %v1536_v3 = vpop.f32.mrb[59].mxu1  ;;  %v1574_v41 = vmax.f32 %v1542_v60, 0.0 }
 0x24e   : > { %v1537_v38 = vadd.f32 %v4464_v0, %v1536_v3  ;;  %v1572_v11 = vmax.f32 %v1534_v33, 0.0 }
 0x24f   : > { %v1575_v6 = vmax.f32 %v1545_v37, 0.0 }
 0x250   : > { %v1573_v35 = vmax.f32 %v1537_v38, 0.0 }
 0x251   : > { %v1585_v43 = vpack.c.bf16 %v1575_v6, %v1574_v41 }
 0x252   : > { %v1584_v14 = vpack.c.bf16 %v1573_v35, %v1572_v11 }
 0x254   : > { %5091 = vmatprep.mubr.bf16.mxu0 %v1584_v14 }
 0x255   : > { %5092 = vmatmul.mubr.bf16.gmra.mrb[72].mxu0 %v1585_v43 }
 0x25a   : > { %v5065_v44 = vpop.f32.mrb[60].mxu1 }
 0x25b   : > { %v1558_v40 = vadd.f32 %v5065_v44, %v4464_v0  ;;  %v1549_v45 = vpop.f32.mrb[61].mxu1 }
 0x25c   : > { %v1550_v46 = vadd.f32 %v4464_v0, %v1549_v45  ;;  %v5066_v47 = vpop.f32.mrb[62].mxu1 }
 0x25d   : > { %v1561_v50 = vadd.f32 %v5066_v47, %v4464_v0  ;;  %v1552_v51 = vpop.f32.mrb[63].mxu1  ;;  %v1578_v55 = vmax.f32 %v1558_v40, 0.0 }
 0x25e   : > { %v1553_v54 = vadd.f32 %v4464_v0, %v1552_v51  ;;  %v1576_v58 = vmax.f32 %v1550_v46, 0.0  ;;  %v5348_v0 = vld [vmem:[%s7270_s5 + $0x28] sm:$0xff]  }
 0x25f   : > { %v1579_v29 = vmax.f32 %v1561_v50, 0.0  ;;  %5141 = vmatprep.subr.bf16.mxu0 %v5348_v0 }
 0x260   : > { %v1577_v21 = vmax.f32 %v1553_v54, 0.0  ;;  %5142 = vmatpush3.bf16.msra.mxu0 %v5348_v0  ;;  %v5355_v0 = vld [vmem:[%s7271_s6 + $0x20] sm:$0xff]  }
 0x261   : > { %v1587_v32 = vpack.c.bf16 %v1579_v29, %v1578_v55  ;;  %5143 = vmatprep.subr.bf16.mxu0 %v5349_v48 }
 0x262   : > { %v1586_v59 = vpack.c.bf16 %v1577_v21, %v1576_v58 }
 0x264   : > { %5095 = vmatprep.mubr.bf16.mxu0 %v1586_v59  ;;  %5144 = vmatpush3.bf16.msra.mxu0 %v5349_v48 }
 0x265   : > { %5096 = vmatmul.mubr.bf16.gmra.mrb[76].mxu0 %v1587_v32  ;;  %5145 = vmatprep.subr.bf16.mxu0 %v5350_v53 }
 0x268   : > { %5146 = vmatpush3.bf16.msra.mxu0 %v5350_v53  ;;  %v5357_v53 = vld [vmem:[%s7271_s6 + $0x30] sm:$0xff]  }
 0x308   : > { %v5085_v34 = vpop.f32.mrb[64].mxu0 }
 0x309   : > { %v1700_v2 = vadd.f32 %v5085_v34, %v4473_v1  ;;  %v1691_v4 = vpop.f32.mrb[65].mxu0  ;;  %v4482_v34 = vld [vmem:[%s7274_s9 + $0x3] ss:$0 sm:$0xff] }
 0x30a   : > { %v1692_v5 = vadd.f32 %v4473_v1, %v1691_v4  ;;  %v5086_v7 = vpop.f32.mrb[66].mxu0 }
 0x30b   : > { %v1703_v8 = vadd.f32 %v5086_v7, %v4473_v1  ;;  %v1694_v9 = vpop.f32.mrb[67].mxu0  ;;  %v1756_v12 = vmax.f32 %v1700_v2, 0.0 }
 0x30c   : > { %v1695_v10 = vadd.f32 %v4473_v1, %v1694_v9  ;;  %v1754_v13 = vmax.f32 %v1692_v5, 0.0 }
 0x30d   : > { %v1757_v39 = vmax.f32 %v1703_v8, 0.0 }
 0x30e   : > { %v1755_v15 = vmax.f32 %v1695_v10, 0.0 }
 0x30f   : > { %v1771_v16 = vpack.c.bf16 %v1757_v39, %v1756_v12 }
 0x310   : > { %v1770_v42 = vpack.c.bf16 %v1755_v15, %v1754_v13 }
 0x312   : > { %5115 = vmatprep.mubr.bf16.mxu1 %v1770_v42 }
 0x313   : > { %5116 = vmatmul.mubr.bf16.vlgmr.msra.gmra.mrb[64].mxu1 %v1771_v16 }
 0x314   : > { %5164 = vmatpush3.bf16.msra.mxu1 %v5351_v56  ;;  %v5358_v56 = vld [vmem:[%s7271_s6 + $0x38] sm:$0xff]  }
 0x315   : > { %5165 = vmatprep.subr.bf16.mxu1 %v5352_v62 }
 0x318   : > { %v5089_v17 = vpop.f32.mrb[68].mxu0  ;;  %5166 = vmatpush3.bf16.msra.mxu1 %v5352_v62  ;;  %v5359_v62 = vld [vmem:[%s7272_s7] sm:$0xff]  }
 0x319   : > { %v1716_v18 = vadd.f32 %v5089_v17, %v4473_v1  ;;  %v1707_v49 = vpop.f32.mrb[69].mxu0  ;;  %5167 = vmatprep.subr.bf16.mxu1 %v5353_v63  ;;  %5195 = vmatprep.subr.bf16.mxu0 %v5359_v62 }
 0x31a   : > { %v1708_v19 = vadd.f32 %v4473_v1, %v1707_v49  ;;  %v5090_v20 = vpop.f32.mrb[70].mxu0 }
 0x31b   : > { %v1719_v22 = vadd.f32 %v5090_v20, %v4473_v1  ;;  %v1710_v52 = vpop.f32.mrb[71].mxu0  ;;  %v1760_v25 = vmax.f32 %v1716_v18, 0.0 }
 0x31c   : > { %v1711_v23 = vadd.f32 %v4473_v1, %v1710_v52  ;;  %v1758_v57 = vmax.f32 %v1708_v19, 0.0  ;;  %5168 = vmatpush3.bf16.msra.mxu1 %v5353_v63  ;;  %v5360_v63 = vld [vmem:[%s7272_s7 + $0x8] sm:$0xff]  }
 0x31d   : > { %v1761_v26 = vmax.f32 %v1719_v22, 0.0  ;;  %5169 = vmatprep.subr.bf16.mxu1 %v5354_v24 }
 0x31e   : > { %v1759_v27 = vmax.f32 %v1711_v23, 0.0 }
 0x31f   : > { %v1773_v28 = vpack.c.bf16 %v1761_v26, %v1760_v25 }
 0x320   : > { %v1772_v30 = vpack.c.bf16 %v1759_v27, %v1758_v57  ;;  %5170 = vmatpush3.bf16.msra.mxu1 %v5354_v24  ;;  %v5361_v24 = vld [vmem:[%s7272_s7 + $0x10] sm:$0xff]  }
 0x321   : > { %5171 = vmatprep.subr.bf16.mxu1 %v5355_v0 }
 0x322   : > { %5119 = vmatprep.mubr.bf16.mxu1 %v1772_v30 }
 0x323   : > { %5120 = vmatmul.mubr.bf16.gmra.mrb[68].mxu1 %v1773_v28 }
 0x324   : > { %5172 = vmatpush3.bf16.msra.mxu1 %v5355_v0  ;;  %v5362_v0 = vld [vmem:[%s7272_s7 + $0x18] sm:$0xff]  }
 0x328   : > { %v5093_v60 = vpop.f32.mrb[72].mxu0 }
 0x329   : > { %v1732_v31 = vadd.f32 %v5093_v60, %v4473_v1  ;;  %v1723_v33 = vpop.f32.mrb[73].mxu0 }
 0x32a   : > { %v1724_v36 = vadd.f32 %v4473_v1, %v1723_v33  ;;  %v5094_v37 = vpop.f32.mrb[74].mxu0 }
 0x32b   : > { %v1735_v3 = vadd.f32 %v5094_v37, %v4473_v1  ;;  %v1726_v38 = vpop.f32.mrb[75].mxu0  ;;  %v1764_v6 = vmax.f32 %v1732_v31, 0.0 }
 0x32c   : > { %v1727_v41 = vadd.f32 %v4473_v1, %v1726_v38  ;;  %v1762_v35 = vmax.f32 %v1724_v36, 0.0 }
 0x32d   : > { %v1765_v11 = vmax.f32 %v1735_v3, 0.0 }
 0x32e   : > { %v1763_v43 = vmax.f32 %v1727_v41, 0.0 }
 0x32f   : > { %v1775_v14 = vpack.c.bf16 %v1765_v11, %v1764_v6 }
 0x330   : > { %v1774_v44 = vpack.c.bf16 %v1763_v43, %v1762_v35 }
 0x332   : > { %5123 = vmatprep.mubr.bf16.mxu1 %v1774_v44 }
 0x333   : > { %5124 = vmatmul.mubr.bf16.gmra.mrb[72].mxu1 %v1775_v14 }
 0x338   : > { %v5097_v40 = vpop.f32.mrb[76].mxu0 }
 0x339   : > { %v1748_v45 = vadd.f32 %v5097_v40, %v4473_v1  ;;  %v1739_v46 = vpop.f32.mrb[77].mxu0 }
 0x33a   : > { %v1740_v47 = vadd.f32 %v4473_v1, %v1739_v46  ;;  %v5098_v50 = vpop.f32.mrb[78].mxu0 }
 0x33b   : > { %v1751_v51 = vadd.f32 %v5098_v50, %v4473_v1  ;;  %v1742_v54 = vpop.f32.mrb[79].mxu0  ;;  %v1768_v29 = vmax.f32 %v1748_v45, 0.0 }
 0x33c   : > { %v1743_v55 = vadd.f32 %v4473_v1, %v1742_v54  ;;  %v1766_v21 = vmax.f32 %v1740_v47, 0.0  ;;  %v5356_v1 = vld [vmem:[%s7271_s6 + $0x28] sm:$0xff]  }
 0x33d   : > { %v1769_v58 = vmax.f32 %v1751_v51, 0.0  ;;  %5173 = vmatprep.subr.bf16.mxu1 %v5356_v1 }
 0x33e   : > { %v1767_v32 = vmax.f32 %v1743_v55, 0.0  ;;  %5174 = vmatpush3.bf16.msra.mxu1 %v5356_v1  ;;  %v5363_v1 = vld [vmem:[%s7272_s7 + $0x20] sm:$0xff]  }
 0x33f   : > { %v1777_v59 = vpack.c.bf16 %v1769_v58, %v1768_v29  ;;  %5175 = vmatprep.subr.bf16.mxu1 %v5357_v53 }
 0x340   : > { %v1776_v61 = vpack.c.bf16 %v1767_v32, %v1766_v21 }
 0x342   : > { %5127 = vmatprep.mubr.bf16.mxu1 %v1776_v61  ;;  %5176 = vmatpush3.bf16.msra.mxu1 %v5357_v53 }
 0x343   : > { %5128 = vmatmul.mubr.bf16.gmra.mrb[76].mxu1 %v1777_v59  ;;  %5177 = vmatprep.subr.bf16.mxu1 %v5358_v56 }
 0x346   : > { %5178 = vmatpush3.bf16.msra.mxu1 %v5358_v56  ;;  %v5365_v56 = vld [vmem:[%s7272_s7 + $0x30] sm:$0xff]  }
 0x3e6   : > { %v5117_v2 = vpop.f32.mrb[64].mxu1 }
 0x3e7   : > { %v1890_v4 = vadd.f32 %v5117_v2, %v4482_v34  ;;  %v1881_v5 = vpop.f32.mrb[65].mxu1  ;;  %v4491_v2 = vld [vmem:[%s7274_s9 + $0x4] ss:$0 sm:$0xff] }
 0x3e8   : > { %v1882_v7 = vadd.f32 %v4482_v34, %v1881_v5  ;;  %v5118_v8 = vpop.f32.mrb[66].mxu1 }
 0x3e9   : > { %v1893_v9 = vadd.f32 %v5118_v8, %v4482_v34  ;;  %v1884_v10 = vpop.f32.mrb[67].mxu1  ;;  %v1946_v39 = vmax.f32 %v1890_v4, 0.0 }
 0x3ea   : > { %v1885_v12 = vadd.f32 %v4482_v34, %v1884_v10  ;;  %v1944_v15 = vmax.f32 %v1882_v7, 0.0 }
 0x3eb   : > { %v1947_v13 = vmax.f32 %v1893_v9, 0.0 }
 0x3ec   : > { %v1945_v16 = vmax.f32 %v1885_v12, 0.0 }
 0x3ed   : > { %v1961_v42 = vpack.c.bf16 %v1947_v13, %v1946_v39 }
 0x3ee   : > { %v1960_v17 = vpack.c.bf16 %v1945_v16, %v1944_v15 }
 0x3f0   : > { %5147 = vmatprep.mubr.bf16.mxu0 %v1960_v17 }
 0x3f1   : > { %5148 = vmatmul.mubr.bf16.vlgmr.msra.gmra.mrb[80].mxu0 %v1961_v42 }
 0x3f2   : > { %5196 = vmatpush3.bf16.msra.mxu0 %v5359_v62  ;;  %v5366_v62 = vld [vmem:[%s7272_s7 + $0x38] sm:$0xff]  }
 0x3f3   : > { %5197 = vmatprep.subr.bf16.mxu0 %v5360_v63 }
 0x3f6   : > { %v5121_v18 = vpop.f32.mrb[68].mxu1  ;;  %5198 = vmatpush3.bf16.msra.mxu0 %v5360_v63  ;;  %v5367_v63 = vld [vmem:[%s7273_s8] ss:$28 sps:$4 sm:$0xff]  }
 0x3f7   : > { %v1906_v49 = vadd.f32 %v5121_v18, %v4482_v34  ;;  %v1897_v19 = vpop.f32.mrb[69].mxu1  ;;  %5199 = vmatprep.subr.bf16.mxu0 %v5361_v24 }
 0x3f8   : > { %v1898_v20 = vadd.f32 %v4482_v34, %v1897_v19  ;;  %v5122_v22 = vpop.f32.mrb[70].mxu1 }
 0x3f9   : > { %v1909_v52 = vadd.f32 %v5122_v22, %v4482_v34  ;;  %v1900_v23 = vpop.f32.mrb[71].mxu1  ;;  %v1950_v26 = vmax.f32 %v1906_v49, 0.0 }
 0x3fa   : > { %v1901_v25 = vadd.f32 %v4482_v34, %v1900_v23  ;;  %v1948_v27 = vmax.f32 %v1898_v20, 0.0  ;;  %5200 = vmatpush3.bf16.msra.mxu0 %v5361_v24  ;;  %v5369_v24 = vld [vmem:[%s7273_s8 + $0x4] ss:$28 sps:$4 sm:$0xff]  }
 0x3fb   : > { %v1951_v57 = vmax.f32 %v1909_v52, 0.0  ;;  %5201 = vmatprep.subr.bf16.mxu0 %v5362_v0  ;;  %2927 = vmatprep.subr.bf16.mxu1 %v5369_v24 }
 0x3fc   : > { %v1949_v28 = vmax.f32 %v1901_v25, 0.0 }
 0x3fd   : > { %v1963_v30 = vpack.c.bf16 %v1951_v57, %v1950_v26 }
 0x3fe   : > { %v1962_v60 = vpack.c.bf16 %v1949_v28, %v1948_v27  ;;  %5202 = vmatpush3.bf16.msra.mxu0 %v5362_v0  ;;  %v5372_v0 = vld [vmem:[%s7273_s8 + $0xc] ss:$28 sps:$4 sm:$0xff]  }
 0x3ff   : > { %5203 = vmatprep.subr.bf16.mxu0 %v5363_v1 }
 0x400   : > { %5151 = vmatprep.mubr.bf16.mxu0 %v1962_v60 }
 0x401   : > { %5152 = vmatmul.mubr.bf16.gmra.mrb[84].mxu0 %v1963_v30 }
 0x402   : > { %5204 = vmatpush3.bf16.msra.mxu0 %v5363_v1  ;;  %v5375_v1 = vld [vmem:[%s7273_s8 + $0x3c] ss:$28 sps:$4 sm:$0xff]  }
 0x406   : > { %v5125_v31 = vpop.f32.mrb[72].mxu1 }
 0x407   : > { %v1922_v33 = vadd.f32 %v5125_v31, %v4482_v34  ;;  %v1913_v36 = vpop.f32.mrb[73].mxu1 }
 0x408   : > { %v1914_v37 = vadd.f32 %v4482_v34, %v1913_v36  ;;  %v5126_v3 = vpop.f32.mrb[74].mxu1 }
 0x409   : > { %v1925_v38 = vadd.f32 %v5126_v3, %v4482_v34  ;;  %v1916_v41 = vpop.f32.mrb[75].mxu1  ;;  %v1954_v11 = vmax.f32 %v1922_v33, 0.0 }
 0x40a   : > { %v1917_v6 = vadd.f32 %v4482_v34, %v1916_v41  ;;  %v1952_v43 = vmax.f32 %v1914_v37, 0.0 }
 0x40b   : > { %v1955_v35 = vmax.f32 %v1925_v38, 0.0 }
 0x40c   : > { %v1953_v14 = vmax.f32 %v1917_v6, 0.0 }
 0x40d   : > { %v1965_v44 = vpack.c.bf16 %v1955_v35, %v1954_v11 }
 0x40e   : > { %v1964_v40 = vpack.c.bf16 %v1953_v14, %v1952_v43 }
 0x410   : > { %5155 = vmatprep.mubr.bf16.mxu0 %v1964_v40 }
 0x411   : > { %5156 = vmatmul.mubr.bf16.gmra.mrb[88].mxu0 %v1965_v44 }
 0x416   : > { %v5129_v45 = vpop.f32.mrb[76].mxu1 }
 0x417   : > { %v1938_v46 = vadd.f32 %v5129_v45, %v4482_v34  ;;  %v1929_v47 = vpop.f32.mrb[77].mxu1 }
 0x418   : > { %v1930_v50 = vadd.f32 %v4482_v34, %v1929_v47  ;;  %v5130_v51 = vpop.f32.mrb[78].mxu1 }
 0x419   : > { %v1941_v54 = vadd.f32 %v5130_v51, %v4482_v34  ;;  %v1932_v55 = vpop.f32.mrb[79].mxu1  ;;  %v1958_v58 = vmax.f32 %v1938_v46, 0.0 }
 0x41a   : > { %v1933_v29 = vadd.f32 %v4482_v34, %v1932_v55  ;;  %v1956_v32 = vmax.f32 %v1930_v50, 0.0  ;;  %v5364_v34 = vld [vmem:[%s7272_s7 + $0x28] sm:$0xff]  }
 0x41b   : > { %v1959_v21 = vmax.f32 %v1941_v54, 0.0  ;;  %5205 = vmatprep.subr.bf16.mxu0 %v5364_v34 }
 0x41c   : > { %v1957_v59 = vmax.f32 %v1933_v29, 0.0  ;;  %5206 = vmatpush3.bf16.msra.mxu0 %v5364_v34  ;;  %v5373_v34 = vld [vmem:[%s7273_s8 + $0x38] ss:$28 sps:$4 sm:$0xff]  }
 0x41d   : > { %v1967_v61 = vpack.c.bf16 %v1959_v21, %v1958_v58  ;;  %5207 = vmatprep.subr.bf16.mxu0 %v5365_v56 }
 0x41e   : > { %v1966_v48 = vpack.c.bf16 %v1957_v59, %v1956_v32 }
 0x420   : > { %5159 = vmatprep.mubr.bf16.mxu0 %v1966_v48  ;;  %5208 = vmatpush3.bf16.msra.mxu0 %v5365_v56 }
 0x421   : > { %5160 = vmatmul.mubr.bf16.gmra.mrb[92].mxu0 %v1967_v61  ;;  %5209 = vmatprep.subr.bf16.mxu0 %v5366_v62 }
 0x424   : > { %5210 = vmatpush3.bf16.msra.mxu0 %v5366_v62 }
 0x425   : > { %3040 = vmatprep.subr.bf16.mxu0 %v5372_v0 }
 0x4c4   : > { %v5149_v4 = vpop.f32.mrb[80].mxu0 }
 0x4c5   : > { %v2080_v5 = vadd.f32 %v5149_v4, %v4491_v2  ;;  %v2071_v7 = vpop.f32.mrb[81].mxu0  ;;  %v5379_v4 = vld [vmem:[%s7273_s8 + $0x70] ss:$28 sps:$4 sm:$0xff]  }
 0x4c6   : > { %v2072_v8 = vadd.f32 %v4491_v2, %v2071_v7  ;;  %v5150_v9 = vpop.f32.mrb[82].mxu0  ;;  %v5385_v7 = vld [vmem:[%s7273_s8 + $0xa8] ss:$28 sps:$4 sm:$0xff]  }
 0x4c7   : > { %v2083_v10 = vadd.f32 %v5150_v9, %v4491_v2  ;;  %v2074_v12 = vpop.f32.mrb[83].mxu0  ;;  %v2136_v13 = vmax.f32 %v2080_v5, 0.0  ;;  %v5387_v5 = vld [vmem:[%s7273_s8 + $0xac] ss:$28 sps:$4 sm:$0xff]   ;;  %v5391_v9 = vld [vmem:[%s7273_s8 + $0xe0] ss:$28 sps:$4 sm:$0xff]  }
 0x4c8   : > { %v2075_v39 = vadd.f32 %v4491_v2, %v2074_v12  ;;  %v2134_v16 = vmax.f32 %v2072_v8, 0.0  ;;  %v5393_v8 = vld [vmem:[%s7273_s8 + $0xe4] ss:$28 sps:$4 sm:$0xff]   ;;  %v5397_v12 = vld [vmem:[%s7273_s8 + $0x118] ss:$28 sps:$4 sm:$0xff]  }
 0x4c9   : > { %v2137_v15 = vmax.f32 %v2083_v10, 0.0  ;;  %v5399_v10 = vld [vmem:[%s7273_s8 + $0x11c] ss:$28 sps:$4 sm:$0xff]  }
 0x4ca   : > { %v2135_v42 = vmax.f32 %v2075_v39, 0.0  ;;  %v6520_v39 = vld [vmem:[%s7274_s9 + $0x5] ss:$0 sm:$0xff] }
 0x4cb   : > { %v2151_v17 = vpack.c.bf16 %v2137_v15, %v2136_v13 }
 0x4cc   : > { %v2150_v18 = vpack.c.bf16 %v2135_v42, %v2134_v16 }
 0x4ce   : > { %5179 = vmatprep.mubr.bf16.mxu1 %v2150_v18 }
 0x4cf   : > { %5180 = vmatmul.mubr.bf16.vlgmr.msra.gmra.mrb[80].mxu1 %v2151_v17 }
 0x4d0   : > { %2928 = vmatpush1.bf16.msra.mxu1 %v5367_v63 }
 0x4d1   : > { %2929 = vmatprep.subr.bf16.mxu1 %v5375_v1 }
 0x4d4   : > { %v5153_v49 = vpop.f32.mrb[84].mxu0  ;;  %2930 = vmatpush1.bf16.msra.mxu1 %v5373_v34 }
 0x4d5   : > { %v2096_v19 = vadd.f32 %v5153_v49, %v4491_v2  ;;  %v2087_v20 = vpop.f32.mrb[85].mxu0 }
 0x4d6   : > { %v2088_v22 = vadd.f32 %v4491_v2, %v2087_v20  ;;  %v5154_v52 = vpop.f32.mrb[86].mxu0 }
 0x4d7   : > { %v2099_v23 = vadd.f32 %v5154_v52, %v4491_v2  ;;  %v2090_v25 = vpop.f32.mrb[87].mxu0  ;;  %v2140_v57 = vmax.f32 %v2096_v19, 0.0 }
 0x4d8   : > { %v2091_v26 = vadd.f32 %v4491_v2, %v2090_v25  ;;  %v2138_v28 = vmax.f32 %v2088_v22, 0.0 }
 0x4d9   : > { %v2141_v27 = vmax.f32 %v2099_v23, 0.0 }
 0x4da   : > { %v2139_v30 = vmax.f32 %v2091_v26, 0.0 }
 0x4db   : > { %v2153_v60 = vpack.c.bf16 %v2141_v27, %v2140_v57  ;;  %v5370_v57 = vld [vmem:[%s7273_s8 + $0x8] ss:$28 sps:$4 sm:$0xff]  }
 0x4dc   : > { %v2152_v31 = vpack.c.bf16 %v2139_v30, %v2138_v28  ;;  %v5378_v27 = vld [vmem:[%s7273_s8 + $0x44] ss:$28 sps:$4 sm:$0xff]   ;;  %v5384_v30 = vld [vmem:[%s7273_s8 + $0x7c] ss:$28 sps:$4 sm:$0xff]  }
 0x4dd   : > { %v5376_v28 = vld [vmem:[%s7273_s8 + $0x40] ss:$28 sps:$4 sm:$0xff]  }
 0x4de   : > { %5183 = vmatprep.mubr.bf16.mxu1 %v2152_v31  ;;  %v5382_v31 = vld [vmem:[%s7273_s8 + $0x78] ss:$28 sps:$4 sm:$0xff]  }
 0x4df   : > { %5184 = vmatmul.mubr.bf16.gmra.mrb[84].mxu1 %v2153_v60 }
 0x4e4   : > { %v5157_v33 = vpop.f32.mrb[88].mxu0 }
 0x4e5   : > { %v2112_v36 = vadd.f32 %v5157_v33, %v4491_v2  ;;  %v2103_v37 = vpop.f32.mrb[89].mxu0 }
 0x4e6   : > { %v2104_v3 = vadd.f32 %v4491_v2, %v2103_v37  ;;  %v5158_v38 = vpop.f32.mrb[90].mxu0  ;;  %v5390_v37 = vld [vmem:[%s7273_s8 + $0xb4] ss:$28 sps:$4 sm:$0xff]  }
 0x4e7   : > { %v2115_v41 = vadd.f32 %v5158_v38, %v4491_v2  ;;  %v2106_v6 = vpop.f32.mrb[91].mxu0  ;;  %v2144_v35 = vmax.f32 %v2112_v36, 0.0 }
 0x4e8   : > { %v2107_v11 = vadd.f32 %v4491_v2, %v2106_v6  ;;  %v2142_v14 = vmax.f32 %v2104_v3, 0.0 }
 0x4e9   : > { %v2145_v43 = vmax.f32 %v2115_v41, 0.0 }
 0x4ea   : > { %v2143_v44 = vmax.f32 %v2107_v11, 0.0 }
 0x4eb   : > { %v2155_v40 = vpack.c.bf16 %v2145_v43, %v2144_v35  ;;  %v5388_v35 = vld [vmem:[%s7273_s8 + $0xb0] ss:$28 sps:$4 sm:$0xff]  }
 0x4ec   : > { %v2154_v45 = vpack.c.bf16 %v2143_v44, %v2142_v14  ;;  %v5396_v44 = vld [vmem:[%s7273_s8 + $0xec] ss:$28 sps:$4 sm:$0xff]  }
 0x4ee   : > { %5187 = vmatprep.mubr.bf16.mxu1 %v2154_v45 }
 0x4ef   : > { %5188 = vmatmul.mubr.bf16.gmra.mrb[88].mxu1 %v2155_v40 }
 0x4f4   : > { %v5161_v46 = vpop.f32.mrb[92].mxu0 }
 0x4f5   : > { %v2128_v47 = vadd.f32 %v5161_v46, %v4491_v2  ;;  %v2119_v50 = vpop.f32.mrb[93].mxu0 }
 0x4f6   : > { %v2120_v51 = vadd.f32 %v4491_v2, %v2119_v50  ;;  %v5162_v54 = vpop.f32.mrb[94].mxu0  ;;  %v5394_v50 = vld [vmem:[%s7273_s8 + $0xe8] ss:$28 sps:$4 sm:$0xff]  }
 0x4f7   : > { %v2131_v55 = vadd.f32 %v5162_v54, %v4491_v2  ;;  %v2122_v29 = vpop.f32.mrb[95].mxu0  ;;  %v2148_v21 = vmax.f32 %v2128_v47, 0.0  ;;  %v5400_v54 = vld [vmem:[%s7273_s8 + $0x120] ss:$28 sps:$4 sm:$0xff]  }
 0x4f8   : > { %v2123_v58 = vadd.f32 %v4491_v2, %v2122_v29  ;;  %v2146_v59 = vmax.f32 %v2120_v51, 0.0  ;;  %v5381_v2 = vld [vmem:[%s7273_s8 + $0x74] ss:$28 sps:$4 sm:$0xff]   ;;  %v5402_v51 = vld [vmem:[%s7273_s8 + $0x124] ss:$28 sps:$4 sm:$0xff]  }
 0x4f9   : > { %v2149_v32 = vmax.f32 %v2131_v55, 0.0  ;;  %2931 = vmatprep.subr.bf16.mxu1 %v5381_v2 }
 0x4fa   : > { %v2147_v61 = vmax.f32 %v2123_v58, 0.0  ;;  %2932 = vmatpush1.bf16.msra.mxu1 %v5379_v4 }
 0x4fb   : > { %v2157_v48 = vpack.c.bf16 %v2149_v32, %v2148_v21  ;;  %2933 = vmatprep.subr.bf16.mxu1 %v5387_v5 }
 0x4fc   : > { %v2156_v53 = vpack.c.bf16 %v2147_v61, %v2146_v59 }
 0x4fe   : > { %5191 = vmatprep.mubr.bf16.mxu1 %v2156_v53  ;;  %2934 = vmatpush1.bf16.msra.mxu1 %v5385_v7 }
 0x4ff   : > { %5192 = vmatmul.mubr.bf16.gmra.mrb[92].mxu1 %v2157_v48  ;;  %2935 = vmatprep.subr.bf16.mxu1 %v5393_v8 }
 0x502   : > { %2936 = vmatpush1.bf16.msra.mxu1 %v5391_v9 }
 0x503   : > { %2937 = vmatprep.subr.bf16.mxu1 %v5399_v10 }
 0x506   : > { %2938 = vmatpush1.bf16.msra.mxu1 %v5397_v12 }
 0x5a2   : > { %v5181_v13 = vpop.f32.mrb[80].mxu1 }
 0x5a3   : > { %v2270_v15 = vadd.f32 %v5181_v13, %v6520_v39  ;;  %v2261_v16 = vpop.f32.mrb[81].mxu1 }
 0x5a4   : > { %v2262_v42 = vadd.f32 %v6520_v39, %v2261_v16  ;;  %v5182_v17 = vpop.f32.mrb[82].mxu1 }
 0x5a5   : > { %v2273_v18 = vadd.f32 %v5182_v17, %v6520_v39  ;;  %v2264_v49 = vpop.f32.mrb[83].mxu1  ;;  %v2326_v20 = vmax.f32 %v2270_v15, 0.0  ;;  %v5405_v17 = vld [vmem:[%s7273_s8 + $0x154] ss:$28 sps:$4 sm:$0xff]  }
 0x5a6   : > { %v2265_v19 = vadd.f32 %v6520_v39, %v2264_v49  ;;  %v2324_v52 = vmax.f32 %v2262_v42, 0.0  ;;  %v5406_v49 = vld [vmem:[%s7273_s8 + $0x158] ss:$28 sps:$4 sm:$0xff]   ;;  %2939 = vmatprep.subr.bf16.mxu1 %v5405_v17 }
 0x5a7   : > { %v2327_v22 = vmax.f32 %v2273_v18, 0.0  ;;  %v5408_v18 = vld [vmem:[%s7273_s8 + $0x15c] ss:$28 sps:$4 sm:$0xff]  }
 0x5a8   : > { %v2325_v23 = vmax.f32 %v2265_v19, 0.0  ;;  %v5411_v19 = vld [vmem:[%s7273_s8 + $0x18c] ss:$28 sps:$4 sm:$0xff]  }
 0x5a9   : > { %v2341_v25 = vpack.c.bf16 %v2327_v22, %v2326_v20  ;;  %v5414_v20 = vld [vmem:[%s7273_s8 + $0x194] ss:$28 sps:$4 sm:$0xff]   ;;  %v5409_v22 = vld [vmem:[%s7273_s8 + $0x188] ss:$28 sps:$4 sm:$0xff]  }
 0x5aa   : > { %v2340_v26 = vpack.c.bf16 %v2325_v23, %v2324_v52  ;;  %v5412_v52 = vld [vmem:[%s7273_s8 + $0x190] ss:$28 sps:$4 sm:$0xff]   ;;  %v5904_v23 = vmov 0  }
 0x5ab   : > { %2959 = vmatprep.mubr.bf16.mxu1 %v5904_v23 }
 0x5ac   : > { %5211 = vmatprep.mubr.bf16.mxu0 %v2340_v26  ;;  %v5430_v26 = vld [vmem:[%s7273_s8 + $0x18] ss:$28 sps:$4 sm:$0xff]  }
 0x5ad   : > { %5212 = vmatmul.mubr.bf16.vlgmr.msra.gmra.mrb[96].mxu0 %v2341_v25  ;;  %v5417_v25 = vld [vmem:[%s7273_s8 + $0x14] ss:$28 sps:$4 sm:$0xff]  }
 0x5ae   : > { %3041 = vmatpush1.bf16.msra.mxu0 %v5370_v57  ;;  %v6606_v57 = vld [vmem:[%s7274_s9 + $0x6] ss:$0 sm:$0xff] }
 0x5af   : > { %3042 = vmatprep.subr.bf16.mxu0 %v5378_v27 }
 0x5b2   : > { %v5185_v60 = vpop.f32.mrb[84].mxu1  ;;  %3043 = vmatpush1.bf16.msra.mxu0 %v5376_v28 }
 0x5b3   : > { %v2286_v33 = vadd.f32 %v5185_v60, %v6520_v39  ;;  %v2277_v36 = vpop.f32.mrb[85].mxu1  ;;  %3044 = vmatprep.subr.bf16.mxu0 %v5384_v30 }
 0x5b4   : > { %v2278_v3 = vadd.f32 %v6520_v39, %v2277_v36  ;;  %v5186_v38 = vpop.f32.mrb[86].mxu1 }
 0x5b5   : > { %v2289_v41 = vadd.f32 %v5186_v38, %v6520_v39  ;;  %v2280_v6 = vpop.f32.mrb[87].mxu1  ;;  %v2330_v43 = vmax.f32 %v2286_v33, 0.0 }
 0x5b6   : > { %v2281_v11 = vadd.f32 %v6520_v39, %v2280_v6  ;;  %3045 = vmatpush1.bf16.msra.mxu0 %v5382_v31  ;;  %v2328_v40 = vmax.f32 %v2278_v3, 0.0 }
 0x5b7   : > { %v2331_v14 = vmax.f32 %v2289_v41, 0.0  ;;  %3046 = vmatprep.subr.bf16.mxu0 %v5390_v37 }
 0x5b8   : > { %v2329_v45 = vmax.f32 %v2281_v11, 0.0 }
 0x5b9   : > { %v2343_v46 = vpack.c.bf16 %v2331_v14, %v2330_v43  ;;  %v5420_v14 = vld [vmem:[%s7273_s8 + $0x4c] ss:$28 sps:$4 sm:$0xff]  }
 0x5ba   : > { %v2342_v47 = vpack.c.bf16 %v2329_v45, %v2328_v40  ;;  %3047 = vmatpush1.bf16.msra.mxu0 %v5388_v35  ;;  %v5415_v35 = vld [vmem:[%s7273_s8 + $0x10] ss:$28 sps:$4 sm:$0xff]   ;;  %v5418_v40 = vld [vmem:[%s7273_s8 + $0x48] ss:$28 sps:$4 sm:$0xff]  }
 0x5bb   : > { %3048 = vmatprep.subr.bf16.mxu0 %v5396_v44  ;;  %v5431_v44 = vld [vmem:[%s7273_s8 + $0x50] ss:$28 sps:$4 sm:$0xff]   ;;  %v5423_v45 = vld [vmem:[%s7273_s8 + $0x84] ss:$28 sps:$4 sm:$0xff]  }
 0x5bc   : > { %5215 = vmatprep.mubr.bf16.mxu0 %v2342_v47  ;;  %v5421_v47 = vld [vmem:[%s7273_s8 + $0x80] ss:$28 sps:$4 sm:$0xff]  }
 0x5bd   : > { %5216 = vmatmul.mubr.bf16.gmra.mrb[100].mxu0 %v2343_v46 }
 0x5be   : > { %3049 = vmatpush1.bf16.msra.mxu0 %v5394_v50  ;;  %v5435_v50 = vld [vmem:[%s7273_s8 + $0x88] ss:$28 sps:$4 sm:$0xff]  }
 0x5bf   : > { %3050 = vmatprep.subr.bf16.mxu0 %v5402_v51 }
 0x5c2   : > { %v5189_v55 = vpop.f32.mrb[88].mxu1  ;;  %3051 = vmatpush1.bf16.msra.mxu0 %v5400_v54 }
 0x5c3   : > { %v2302_v29 = vadd.f32 %v5189_v55, %v6520_v39  ;;  %v2293_v58 = vpop.f32.mrb[89].mxu1  ;;  %3052 = vmatprep.subr.bf16.mxu0 %v5408_v18  ;;  %v5426_v55 = vld [vmem:[%s7273_s8 + $0xbc] ss:$28 sps:$4 sm:$0xff]  }
 0x5c4   : > { %v2294_v21 = vadd.f32 %v6520_v39, %v2293_v58  ;;  %v5190_v32 = vpop.f32.mrb[90].mxu1  ;;  %v5446_v18 = vld [vmem:[%s7273_s8 + $0x1a0] ss:$28 sps:$4 sm:$0xff]  }
 0x5c5   : > { %v2305_v59 = vadd.f32 %v5190_v32, %v6520_v39  ;;  %v2296_v61 = vpop.f32.mrb[91].mxu1  ;;  %v2334_v53 = vmax.f32 %v2302_v29, 0.0 }
 0x5c6   : > { %v2297_v48 = vadd.f32 %v6520_v39, %v2296_v61  ;;  %v2332_v62 = vmax.f32 %v2294_v21, 0.0  ;;  %3053 = vmatpush1.bf16.msra.mxu0 %v5406_v49  ;;  %v5436_v21 = vld [vmem:[%s7273_s8 + $0xc0] ss:$28 sps:$4 sm:$0xff]  }
 0x5c7   : > { %v2335_v56 = vmax.f32 %v2305_v59, 0.0  ;;  %3054 = vmatprep.subr.bf16.mxu0 %v5414_v20  ;;  %v5442_v20 = vld [vmem:[%s7273_s8 + $0x198] ss:$28 sps:$4 sm:$0xff]  }
 0x5c8   : > { %v2333_v63 = vmax.f32 %v2297_v48, 0.0  ;;  %v5424_v48 = vld [vmem:[%s7273_s8 + $0xb8] ss:$28 sps:$4 sm:$0xff]  }
 0x5c9   : > { %v2345_v24 = vpack.c.bf16 %v2335_v56, %v2334_v53 }
 0x5ca   : > { %v2344_v0 = vpack.c.bf16 %v2333_v63, %v2332_v62  ;;  %3055 = vmatpush1.bf16.msra.mxu0 %v5412_v52  ;;  %v5429_v62 = vld [vmem:[%s7273_s8 + $0xf4] ss:$28 sps:$4 sm:$0xff]  }
 0x5cb   : > { %5227 = vmatprep.subr.bf16.mxu0 %v5430_v26 }
 0x5cc   : > { %5219 = vmatprep.mubr.bf16.mxu0 %v2344_v0 }
 0x5cd   : > { %5220 = vmatmul.mubr.bf16.gmra.mrb[104].mxu0 %v2345_v24 }
 0x5d2   : > { %v5193_v1 = vpop.f32.mrb[92].mxu1 }
 0x5d3   : > { %v2318_v34 = vadd.f32 %v5193_v1, %v6520_v39  ;;  %v2309_v2 = vpop.f32.mrb[93].mxu1 }
 0x5d4   : > { %v2310_v4 = vadd.f32 %v6520_v39, %v2309_v2  ;;  %v5194_v5 = vpop.f32.mrb[94].mxu1  ;;  %v5440_v2 = vld [vmem:[%s7273_s8 + $0xf8] ss:$28 sps:$4 sm:$0xff]  }
 0x5d5   : > { %v2321_v7 = vadd.f32 %v5194_v5, %v6520_v39  ;;  %v2312_v8 = vpop.f32.mrb[95].mxu1  ;;  %v2338_v10 = vmax.f32 %v2318_v34, 0.0  ;;  %v5427_v34 = vld [vmem:[%s7273_s8 + $0xf0] ss:$28 sps:$4 sm:$0xff]  }
 0x5d6   : > { %v2313_v9 = vadd.f32 %v6520_v39, %v2312_v8  ;;  %v2336_v13 = vmax.f32 %v2310_v4, 0.0  ;;  %v5403_v39 = vld [vmem:[%s7273_s8 + $0x150] ss:$28 sps:$4 sm:$0xff]   ;;  %v5439_v8 = vld [vmem:[%s7273_s8 + $0x164] ss:$28 sps:$4 sm:$0xff]  }
 0x5d7   : > { %v2339_v12 = vmax.f32 %v2321_v7, 0.0  ;;  %2940 = vmatpush1.bf16.msra.mxu1 %v5403_v39  ;;  %v5434_v4 = vld [vmem:[%s7273_s8 + $0x12c] ss:$28 sps:$4 sm:$0xff]  }
 0x5d8   : > { %v2337_v15 = vmax.f32 %v2313_v9, 0.0  ;;  %2941 = vmatprep.subr.bf16.mxu1 %v5411_v19  ;;  %v5441_v5 = vld [vmem:[%s7273_s8 + $0x130] ss:$28 sps:$4 sm:$0xff]   ;;  %v5432_v7 = vld [vmem:[%s7273_s8 + $0x128] ss:$28 sps:$4 sm:$0xff]  }
 0x5d9   : > { %v2347_v16 = vpack.c.bf16 %v2339_v12, %v2338_v10  ;;  %v5437_v10 = vld [vmem:[%s7273_s8 + $0x160] ss:$28 sps:$4 sm:$0xff]   ;;  %v5445_v12 = vld [vmem:[%s7273_s8 + $0x168] ss:$28 sps:$4 sm:$0xff]  }
 0x5da   : > { %v2346_v42 = vpack.c.bf16 %v2337_v15, %v2336_v13 }
 0x5db   : > { %2942 = vmatpush1.bf16.msra.mxu1 %v5409_v22 }
 0x5dc   : > { %5223 = vmatprep.mubr.bf16.mxu0 %v2346_v42  ;;  %3153 = vmatprep.subr.bf16.mxu1 %v5417_v25 }
 0x5dd   : > { %5224 = vmatmul.mubr.bf16.gmra.mrb[108].mxu0 %v2347_v16  ;;  %v5444_v16 = vld [vmem:[%s7273_s8 + $0x19c] ss:$28 sps:$4 sm:$0xff]  }
 0x5de   : > { %3072 = vmatprep.mubr.bf16.mxu0 %v5904_v23 }
 0x680   : > { %v5213_v27 = vpop.f32.mrb[96].mxu0 }
 0x681   : > { %v2460_v28 = vadd.f32 %v5213_v27, %v6606_v57  ;;  %v2451_v30 = vpop.f32.mrb[97].mxu0 }
 0x682   : > { %v2452_v60 = vadd.f32 %v6606_v57, %v2451_v30  ;;  %v5214_v31 = vpop.f32.mrb[98].mxu0 }
 0x683   : > { %v2463_v33 = vadd.f32 %v5214_v31, %v6606_v57  ;;  %v2454_v36 = vpop.f32.mrb[99].mxu0  ;;  %v2516_v3 = vmax.f32 %v2460_v28, 0.0 }
 0x684   : > { %v2455_v37 = vadd.f32 %v6606_v57, %v2454_v36  ;;  %v2514_v41 = vmax.f32 %v2452_v60, 0.0 }
 0x685   : > { %v2517_v38 = vmax.f32 %v2463_v33, 0.0 }
 0x686   : > { %v2515_v6 = vmax.f32 %v2455_v37, 0.0 }
 0x687   : > { %v6612_v11 = vpack.c.bf16 %v2517_v38, %v2516_v3 }
 0x688   : > { %v6617_v43 = vpack.c.bf16 %v2515_v6, %v2514_v41 }
 0x68a   : > { %2960 = vmatmul.mubr.bf16.vlgmr.msra.gmra.mrb[96].mxu1 %v6617_v43  ;;  %3073 = vmatmul.mubr.bf16.vlgmr.msra.gmra.mrb[112].mxu0 %v6617_v43 }
 0x68b   : > { %3154 = vmatpush1.bf16.msra.mxu1 %v5415_v35  ;;  %2969 = vmatprep.mubr.bf16.mxu1 %v5904_v23 }
 0x68c   : > { %3082 = vmatprep.mubr.bf16.mxu0 %v5904_v23  ;;  %3155 = vmatprep.subr.bf16.mxu1 %v5420_v14 }
 0x68d   : > { %5228 = vmatpush3.bf16.msra.mxu0 %v5430_v26 }
 0x68e   : > { %5229 = vmatprep.subr.bf16.mxu0 %v5431_v44 }
 0x68f   : > { %3156 = vmatpush1.bf16.msra.mxu1 %v5418_v40 }
 0x690   : > { %v5217_v46 = vpop.f32.mrb[100].mxu0  ;;  %3157 = vmatprep.subr.bf16.mxu1 %v5423_v45 }
 0x691   : > { %v2476_v51 = vadd.f32 %v5217_v46, %v6606_v57  ;;  %v2467_v54 = vpop.f32.mrb[101].mxu0  ;;  %5230 = vmatpush3.bf16.msra.mxu0 %v5431_v44  ;;  %v2602_v46 = vld [vmem:[%s7275_s10] sm:$0xff] }
 0x692   : > { %v2468_v29 = vadd.f32 %v6606_v57, %v2467_v54  ;;  %v5218_v58 = vpop.f32.mrb[102].mxu0  ;;  %2970 = vmatmul.mubr.bf16.gmra.mrb[100].mxu1 %v6612_v11  ;;  %3083 = vmatmul.mubr.bf16.gmra.mrb[116].mxu0 %v6612_v11 }
 0x693   : > { %v2479_v32 = vadd.f32 %v5218_v58, %v6606_v57  ;;  %v2470_v59 = vpop.f32.mrb[103].mxu0  ;;  %2979 = vmatprep.mubr.bf16.mxu1 %v5904_v23  ;;  %3092 = vmatprep.mubr.bf16.mxu0 %v5904_v23  ;;  %v2520_v53 = vmax.f32 %v2476_v51, 0.0 }
 0x694   : > { %v2471_v61 = vadd.f32 %v6606_v57, %v2470_v59  ;;  %3158 = vmatpush1.bf16.msra.mxu1 %v5421_v47  ;;  %5231 = vmatprep.subr.bf16.mxu0 %v5435_v50  ;;  %v2518_v63 = vmax.f32 %v2468_v29, 0.0 }
 0x695   : > { %v2521_v56 = vmax.f32 %v2479_v32, 0.0  ;;  %3159 = vmatprep.subr.bf16.mxu1 %v5426_v55  ;;  %5232 = vmatpush3.bf16.msra.mxu0 %v5435_v50 }
 0x696   : > { %v2519_v24 = vmax.f32 %v2471_v61, 0.0  ;;  %5233 = vmatprep.subr.bf16.mxu0 %v5436_v21 }
 0x697   : > { %v6661_v0 = vpack.c.bf16 %v2521_v56, %v2520_v53 }
 0x698   : > { %v6663_v1 = vpack.c.bf16 %v2519_v24, %v2518_v63  ;;  %3160 = vmatpush1.bf16.msra.mxu1 %v5424_v48 }
 0x699   : > { %3161 = vmatprep.subr.bf16.mxu1 %v5429_v62  ;;  %5234 = vmatpush3.bf16.msra.mxu0 %v5436_v21 }
 0x69a   : > { %2980 = vmatmul.mubr.bf16.gmra.mrb[104].mxu1 %v6663_v1  ;;  %3093 = vmatmul.mubr.bf16.gmra.mrb[120].mxu0 %v6663_v1 }
 0x69b   : > { %2989 = vmatprep.mubr.bf16.mxu1 %v5904_v23  ;;  %3102 = vmatprep.mubr.bf16.mxu0 %v5904_v23 }
 0x69c   : > { %3162 = vmatpush1.bf16.msra.mxu1 %v5427_v34  ;;  %5235 = vmatprep.subr.bf16.mxu0 %v5440_v2 }
 0x69d   : > { %3163 = vmatprep.subr.bf16.mxu1 %v5434_v4  ;;  %5236 = vmatpush3.bf16.msra.mxu0 %v5440_v2 }
 0x69e   : > { %5237 = vmatprep.subr.bf16.mxu0 %v5441_v5 }
 0x6a0   : > { %v5221_v9 = vpop.f32.mrb[104].mxu0  ;;  %3164 = vmatpush1.bf16.msra.mxu1 %v5432_v7 }
 0x6a1   : > { %v2492_v13 = vadd.f32 %v5221_v9, %v6606_v57  ;;  %v2483_v15 = vpop.f32.mrb[105].mxu0  ;;  %3165 = vmatprep.subr.bf16.mxu1 %v5439_v8  ;;  %5238 = vmatpush3.bf16.msra.mxu0 %v5441_v5 }
 0x6a2   : > { %v2484_v42 = vadd.f32 %v6606_v57, %v2483_v15  ;;  %v5222_v17 = vpop.f32.mrb[106].mxu0  ;;  %2990 = vmatmul.mubr.bf16.gmra.mrb[108].mxu1 %v6661_v0  ;;  %3103 = vmatmul.mubr.bf16.gmra.mrb[124].mxu0 %v6661_v0 }
 0x6a3   : > { %v2495_v39 = vadd.f32 %v5222_v17, %v6606_v57  ;;  %v2486_v49 = vpop.f32.mrb[107].mxu0  ;;  %2999 = vmatprep.mubr.bf16.mxu1 %v5904_v23  ;;  %3112 = vmatprep.mubr.bf16.mxu0 %v5904_v23  ;;  %v2524_v22 = vmax.f32 %v2492_v13, 0.0 }
 0x6a4   : > { %v2487_v19 = vadd.f32 %v6606_v57, %v2486_v49  ;;  %3166 = vmatpush1.bf16.msra.mxu1 %v5437_v10  ;;  %5239 = vmatprep.subr.bf16.mxu0 %v5445_v12  ;;  %v2522_v25 = vmax.f32 %v2484_v42, 0.0 }
 0x6a5   : > { %v2525_v52 = vmax.f32 %v2495_v39, 0.0  ;;  %3167 = vmatprep.subr.bf16.mxu1 %v5444_v16  ;;  %5240 = vmatpush3.bf16.msra.mxu0 %v5445_v12 }
 0x6a6   : > { %v2523_v26 = vmax.f32 %v2487_v19, 0.0  ;;  %5241 = vmatprep.subr.bf16.mxu0 %v5446_v18 }
 0x6a7   : > { %v2535_v27 = vpack.c.bf16 %v2525_v52, %v2524_v22 }
 0x6a8   : > { %v2534_v28 = vpack.c.bf16 %v2523_v26, %v2522_v25  ;;  %3168 = vmatpush1.bf16.msra.mxu1 %v5442_v20 }
 0x6a9   : > { %5242 = vmatpush3.bf16.msra.mxu0 %v5446_v18 }
 0x6aa   : > { %3000 = vmatmul.mubr.bf16.gmra.mrb[112].mxu1 %v2534_v28  ;;  %3113 = vmatmul.mubr.bf16.gmra.mrb[128].mxu0 %v2534_v28 }
 0x6ab   : > { %3009 = vmatprep.mubr.bf16.mxu1 %v5904_v23  ;;  %3122 = vmatprep.mubr.bf16.mxu0 %v5904_v23 }
 0x6b0   : > { %v5225_v30 = vpop.f32.mrb[108].mxu0 }
 0x6b1   : > { %v2508_v60 = vadd.f32 %v5225_v30, %v6606_v57  ;;  %v2499_v31 = vpop.f32.mrb[109].mxu0 }
 0x6b2   : > { %v2500_v33 = vadd.f32 %v6606_v57, %v2499_v31  ;;  %v5226_v36 = vpop.f32.mrb[110].mxu0  ;;  %3010 = vmatmul.mubr.bf16.gmra.mrb[116].mxu1 %v2535_v27  ;;  %3123 = vmatmul.mubr.bf16.gmra.mrb[132].mxu0 %v2535_v27 }
 0x6b3   : > { %v2511_v37 = vadd.f32 %v5226_v36, %v6606_v57  ;;  %v2502_v3 = vpop.f32.mrb[111].mxu0  ;;  %3019 = vmatprep.mubr.bf16.mxu1 %v5904_v23  ;;  %3132 = vmatprep.mubr.bf16.mxu0 %v5904_v23  ;;  %v2528_v41 = vmax.f32 %v2508_v60, 0.0 }
 0x6b4   : > { %v2503_v38 = vadd.f32 %v6606_v57, %v2502_v3  ;;  %v2526_v35 = vmax.f32 %v2500_v33, 0.0  ;;  %v2604_v57 = vlaneseq }
 0x6b5   : > { %v2529_v6 = vmax.f32 %v2511_v37, 0.0 }
 0x6b6   : > { %v2527_v14 = vmax.f32 %v2503_v38, 0.0 }
 0x6b7   : > { %v2537_v44 = vpack.c.bf16 %v2529_v6, %v2528_v41 }
 0x6b8   : > { %v2536_v40 = vpack.c.bf16 %v2527_v14, %v2526_v35 }
 0x6ba   : > { %3020 = vmatmul.mubr.bf16.gmra.mrb[120].mxu1 %v2536_v40  ;;  %3133 = vmatmul.mubr.bf16.gmra.mrb[136].mxu0 %v2536_v40 }
 0x6bb   : > { %3029 = vmatprep.mubr.bf16.mxu1 %v5904_v23  ;;  %3142 = vmatprep.mubr.bf16.mxu0 %v5904_v23 }
 0x6c2   : > { %3030 = vmatmul.mubr.bf16.gmra.mrb[124].mxu1 %v2537_v44  ;;  %3143 = vmatmul.mubr.bf16.gmra.mrb[140].mxu0 %v2537_v44 }
 0x6c3   : > { %5243 = vmatprep.mubr.bf16.mxu0 %v6617_v43  ;;  %3185 = vmatprep.mubr.bf16.mxu1 %v5904_v23 }
 0x6ca   : > { %3186 = vmatmul.mubr.bf16.vlgmr.msra.gmra.mrb[128].mxu1 %v6617_v43  ;;  %5244 = vmatmul.mubr.bf16.vlgmr.msra.gmra.mrb[144].mxu0 %v6612_v11 }
 0x6cb   : > { %5247 = vmatprep.mubr.bf16.mxu0 %v6663_v1  ;;  %3195 = vmatprep.mubr.bf16.mxu1 %v5904_v23 }
 0x6d2   : > { %3196 = vmatmul.mubr.bf16.gmra.mrb[132].mxu1 %v6612_v11  ;;  %5248 = vmatmul.mubr.bf16.gmra.mrb[148].mxu0 %v6661_v0  ;;  %v6736_v11 = vshrl.u32 %v2604_v57, 7 }
 0x6d3   : > { %5251 = vmatprep.mubr.bf16.mxu0 %v2534_v28  ;;  %3205 = vmatprep.mubr.bf16.mxu1 %v5904_v23 }
 0x6d4   : > { %v2606_v43 = vsub.s32 0, %v6736_v11  ;;  %v2614_v45 = vsub.s32 2, %v6736_v11  ;;  %v2610_v47 = vsub.s32 1, %v6736_v11  ;;  %v2618_v50 = vsub.s32 3, %v6736_v11 }
 0x6d6   : > { %v6745_v51 = vrot.slane %v2602_v46, %v2606_v43  ;;  %v6747_v54 = vrot.slane %v2602_v46, %v2614_v45  ;;  %v6751_v55 = vrot.slane %v2602_v46, %v2618_v50 }
 0x6da   : > { %3206 = vmatmul.mubr.bf16.gmra.mrb[136].mxu1 %v6663_v1  ;;  %5252 = vmatmul.mubr.bf16.gmra.mrb[152].mxu0 %v2535_v27 }
 0x6db   : > { %5255 = vmatprep.mubr.bf16.mxu0 %v2536_v40  ;;  %3215 = vmatprep.mubr.bf16.mxu1 %v5904_v23 }
 0x6e2   : > { %3216 = vmatmul.mubr.bf16.gmra.mrb[140].mxu1 %v6661_v0  ;;  %5256 = vmatmul.mubr.bf16.gmra.mrb[156].mxu0 %v2537_v44 }
 0x6e3   : > { %3225 = vmatprep.mubr.bf16.mxu1 %v5904_v23 }
 0x6ea   : > { %3226 = vmatmul.mubr.bf16.gmra.mrb[144].mxu1 %v2534_v28 }
 0x6eb   : > { %3235 = vmatprep.mubr.bf16.mxu1 %v5904_v23 }
 0x6f2   : > { %3236 = vmatmul.mubr.bf16.gmra.mrb[148].mxu1 %v2535_v27 }
 0x6f3   : > { %3245 = vmatprep.mubr.bf16.mxu1 %v5904_v23 }
 0x6fa   : > { %3246 = vmatmul.mubr.bf16.gmra.mrb[152].mxu1 %v2536_v40 }
 0x6fb   : > { %3255 = vmatprep.mubr.bf16.mxu1 %v5904_v23  ;;  %v6749_v23 = vrot.slane %v2602_v46, %v2610_v47 }
 0x702   : > { %3256 = vmatmul.mubr.bf16.gmra.mrb[156].mxu1 %v2537_v44 }
 0x75d   : > { %v2961_v29 = vpop.f32.mrb[96].mxu1  ;;  %v3074_v58 = vpop.f32.mrb[112].mxu0 }
 0x75e   : > { %v2962_v21 = vadd.f32 %v2961_v29, %v6745_v51  ;;  %v3075_v32 = vadd.f32 %v3074_v58, %v6747_v54  ;;  %v2963_v59 = vpop.f32.mrb[97].mxu1  ;;  %v3076_v61 = vpop.f32.mrb[113].mxu0 }
 0x75f   : > { %v2964_v48 = vadd.f32 %v2963_v59, %v6749_v23  ;;  %v3077_v53 = vadd.f32 %v3076_v61, %v6751_v55  ;;  %v2965_v56 = vpop.f32.mrb[98].mxu1  ;;  %v3078_v62 = vpop.f32.mrb[114].mxu0 }
 0x760   : > { %v3363_v63 = vsub.f32 0.0, %v2962_v21  ;;  %v3365_v24 = vsub.f32 0.0, %v3075_v32  ;;  %v2966_v0 = vadd.f32 %v2965_v56, %v6745_v51  ;;  %v3079_v1 = vadd.f32 %v3078_v62, %v6747_v54  ;;  %v2967_v34 = vpop.f32.mrb[99].mxu1  ;;  %v3080_v2 = vpop.f32.mrb[115].mxu0 }
 0x761   : > { %v3364_v4 = vsub.f32 0.0, %v2964_v48  ;;  %v3366_v5 = vsub.f32 0.0, %v3077_v53  ;;  %v2968_v7 = vadd.f32 %v2967_v34, %v6749_v23  ;;  %v3081_v8 = vadd.f32 %v3080_v2, %v6751_v55 }
 0x762   : > { %v3475_v9 = vmul.f32 1.442695, %v3363_v63  ;;  %v3479_v10 = vmul.f32 1.442695, %v3365_v24  ;;  %v3370_v12 = vsub.f32 0.0, %v2966_v0  ;;  %v3372_v13 = vsub.f32 0.0, %v3079_v1 }
 0x763   : > { %v3477_v15 = vmul.f32 1.442695, %v3364_v4  ;;  %v3481_v16 = vmul.f32 1.442695, %v3366_v5  ;;  %v3371_v42 = vsub.f32 0.0, %v2968_v7  ;;  %v3373_v17 = vsub.f32 0.0, %v3081_v8 }
 0x764   : > { %5447 = vpow2.f32 %v3475_v9  ;;  %v3489_v18 = vmul.f32 1.442695, %v3370_v12  ;;  %v3493_v39 = vmul.f32 1.442695, %v3372_v13 }
 0x765   : > { %5449 = vpow2.f32 %v3479_v10  ;;  %v2971_v49 = vpop.f32.mrb[100].mxu1  ;;  %v3084_v19 = vpop.f32.mrb[116].mxu0  ;;  %v3491_v20 = vmul.f32 1.442695, %v3371_v42  ;;  %v3495_v27 = vmul.f32 1.442695, %v3373_v17 }
 0x766   : > { %5451 = vpow2.f32 %v3477_v15  ;;  %v2972_v22 = vadd.f32 %v2971_v49, %v6745_v51  ;;  %v3085_v52 = vadd.f32 %v3084_v19, %v6747_v54  ;;  %v2973_v25 = vpop.f32.mrb[101].mxu1  ;;  %v3086_v26 = vpop.f32.mrb[117].mxu0 }
 0x767   : > { %5453 = vpow2.f32 %v3481_v16  ;;  %v2974_v28 = vadd.f32 %v2973_v25, %v6749_v23  ;;  %v3087_v30 = vadd.f32 %v3086_v26, %v6751_v55  ;;  %v2975_v60 = vpop.f32.mrb[102].mxu1  ;;  %v3088_v31 = vpop.f32.mrb[118].mxu0 }
 0x768   : > { %5455 = vpow2.f32 %v3489_v18  ;;  %v3377_v33 = vsub.f32 0.0, %v2972_v22  ;;  %v3379_v36 = vsub.f32 0.0, %v3085_v52  ;;  %v2976_v37 = vadd.f32 %v2975_v60, %v6745_v51  ;;  %v2977_v3 = vpop.f32.mrb[103].mxu1  ;;  %v3090_v38 = vpop.f32.mrb[119].mxu0 }
 0x769   : > { %5457 = vpow2.f32 %v3493_v39  ;;  %v3378_v41 = vsub.f32 0.0, %v2974_v28  ;;  %v3380_v6 = vsub.f32 0.0, %v3087_v30  ;;  %v3089_v50 = vadd.f32 %v3088_v31, %v6747_v54 }
 0x76a   : > { %5459 = vpow2.f32 %v3491_v20  ;;  %v3503_v35 = vmul.f32 1.442695, %v3377_v33  ;;  %v3507_v14 = vmul.f32 1.442695, %v3379_v36  ;;  %v3384_v44 = vsub.f32 0.0, %v2976_v37 }
 0x76b   : > { %5461 = vpow2.f32 %v3495_v27  ;;  %v3505_v40 = vmul.f32 1.442695, %v3378_v41  ;;  %v3509_v57 = vmul.f32 1.442695, %v3380_v6  ;;  %v2978_v59 = vadd.f32 %v2977_v3, %v6749_v23 }
 0x76c   : > { %5463 = vpow2.f32 %v3503_v35  ;;  %v3517_v43 = vmul.f32 1.442695, %v3384_v44  ;;  %v3386_v2 = vsub.f32 0.0, %v3089_v50  ;;  %v3091_v4 = vadd.f32 %v3090_v38, %v6751_v55 }
 0x76d   : > { %5465 = vpow2.f32 %v3507_v14  ;;  %v2981_v45 = vpop.f32.mrb[104].mxu1  ;;  %v3094_v46 = vpop.f32.mrb[120].mxu0  ;;  %v3385_v8 = vsub.f32 0.0, %v2978_v59 }
 0x76e   : > { %v5448_v47 = vpop.eup %5447  ;;  %5467 = vpow2.f32 %v3505_v40  ;;  %v2983_v29 = vpop.f32.mrb[105].mxu1  ;;  %v2982_v12 = vadd.f32 %v2981_v45, %v6745_v51  ;;  %v3095_v16 = vadd.f32 %v3094_v46, %v6747_v54  ;;  %v3521_v49 = vmul.f32 1.442695, %v3386_v2 }
 0x76f   : > { %v3096_v58 = vpop.f32.mrb[121].mxu0  ;;  %v5450_v21 = vpop.eup %5449  ;;  %v3699_v32 = vadd.f32 1.0, %v5448_v47  ;;  %5469 = vpow2.f32 %v3509_v57  ;;  %v3387_v19 = vsub.f32 0.0, %v3091_v4  ;;  %v3519_v26 = vmul.f32 1.442695, %v3385_v8 }
 0x770   : > { %v2985_v61 = vpop.f32.mrb[106].mxu1  ;;  %v3098_v48 = vpop.f32.mrb[122].mxu0  ;;  %v3701_v56 = vadd.f32 1.0, %v5450_v21  ;;  %5471 = vpow2.f32 %v3517_v43  ;;  %v2984_v27 = vadd.f32 %v2983_v29, %v6749_v23  ;;  %v3391_v33 = vsub.f32 0.0, %v2982_v12 }
 0x771   : > { %v5452_v53 = vpop.eup %5451  ;;  %v2987_v62 = vpop.f32.mrb[107].mxu1  ;;  %5473 = vrcp.f32 %v3699_v32  ;;  %v3097_v36 = vadd.f32 %v3096_v58, %v6751_v55  ;;  %v3393_v6 = vsub.f32 0.0, %v3095_v16  ;;  %v2986_v35 = vadd.f32 %v2985_v61, %v6745_v51 }
 0x772   : > { %v5454_v63 = vpop.eup %5453  ;;  %v3700_v24 = vadd.f32 1.0, %v5452_v53  ;;  %v3100_v0 = vpop.f32.mrb[123].mxu0  ;;  %5475 = vrcp.f32 %v3701_v56  ;;  %v3523_v40 = vmul.f32 1.442695, %v3387_v19  ;;  %v3099_v57 = vadd.f32 %v3098_v48, %v6747_v54 }
 0x773   : > { %v5456_v1 = vpop.eup %5455  ;;  %v3702_v34 = vadd.f32 1.0, %v5454_v63  ;;  %v3392_v46 = vsub.f32 0.0, %v2984_v27  ;;  %v2988_v47 = vadd.f32 %v2987_v62, %v6749_v23  ;;  %v3531_v29 = vmul.f32 1.442695, %v3391_v33 }
 0x774   : > { %v5458_v5 = vpop.eup %5457  ;;  %5477 = vrcp.f32 %v3700_v24  ;;  %v3706_v7 = vadd.f32 1.0, %v5456_v1  ;;  %v3394_v58 = vsub.f32 0.0, %v3097_v36  ;;  %v3101_v21 = vadd.f32 %v3100_v0, %v6751_v55 }
 0x775   : > { %v5460_v9 = vpop.eup %5459  ;;  %5479 = vrcp.f32 %v3702_v34  ;;  %v3708_v10 = vadd.f32 1.0, %v5458_v5  ;;  %v2991_v42 = vpop.f32.mrb[108].mxu1  ;;  %v3535_v59 = vmul.f32 1.442695, %v3393_v6  ;;  %v3398_v61 = vsub.f32 0.0, %v2986_v35 }
 0x776   : > { %v5462_v13 = vpop.eup %5461  ;;  %5481 = vrcp.f32 %v3706_v7  ;;  %v3707_v15 = vadd.f32 1.0, %v5460_v9  ;;  %v3104_v17 = vpop.f32.mrb[124].mxu0  ;;  %v2992_v48 = vadd.f32 %v2991_v42, %v6745_v51  ;;  %v3400_v24 = vsub.f32 0.0, %v3099_v57 }
 0x777   : > { %v5464_v18 = vpop.eup %5463  ;;  %5483 = vrcp.f32 %v3708_v10  ;;  %v3709_v39 = vadd.f32 1.0, %v5462_v13  ;;  %v6771_v20 = vpop.f32.mrb[109].mxu1  ;;  %v3105_v0 = vadd.f32 %v3104_v17, %v6747_v54  ;;  %v3533_v5 = vmul.f32 1.442695, %v3392_v46 }
 0x778   : > { %v6773_v22 = vpop.f32.mrb[125].mxu0  ;;  %v5466_v52 = vpop.eup %5465  ;;  %5485 = vrcp.f32 %v3707_v15  ;;  %v3713_v25 = vadd.f32 1.0, %v5464_v18  ;;  %v3399_v7 = vsub.f32 0.0, %v2988_v47  ;;  %v3537_v12 = vmul.f32 1.442695, %v3394_v58 }
 0x779   : > { %v6776_v28 = vpop.f32.mrb[110].mxu1  ;;  %v6778_v30 = vpop.f32.mrb[126].mxu0  ;;  %5487 = vrcp.f32 %v3709_v39  ;;  %v3715_v31 = vadd.f32 1.0, %v5466_v52  ;;  %v3401_v13 = vsub.f32 0.0, %v3101_v21  ;;  %v3545_v42 = vmul.f32 1.442695, %v3398_v61 }
 0x77a   : > { %v5468_v60 = vpop.eup %5467  ;;  %v6781_v37 = vpop.f32.mrb[111].mxu1  ;;  %5489 = vrcp.f32 %v3713_v25  ;;  %v3405_v17 = vsub.f32 0.0, %v2992_v48  ;;  %v3549_v19 = vmul.f32 1.442695, %v3400_v24  ;;  %v3407_v52 = vsub.f32 0.0, %v3105_v0 }
 0x77b   : > { %v6783_v3 = vpop.f32.mrb[127].mxu0  ;;  %v5470_v38 = vpop.eup %5469  ;;  %v3714_v41 = vadd.f32 1.0, %v5468_v60  ;;  %5491 = vrcp.f32 %v3715_v31  ;;  %v3547_v27 = vmul.f32 1.442695, %v3399_v7  ;;  %v3551_v31 = vmul.f32 1.442695, %v3401_v13 }
 0x77c   : > { %v5472_v14 = vpop.eup %5471  ;;  %v3716_v44 = vadd.f32 1.0, %v5470_v38  ;;  %v3559_v36 = vmul.f32 1.442695, %v3405_v17 }
 0x77d   : > { %v5474_v43 = vpop.eup %5473  ;;  %5493 = vrcp.f32 %v3714_v41  ;;  %v3720_v45 = vadd.f32 1.0, %v5472_v14  ;;  %v6796_v53 = vpop.f32.mrb[112].mxu1  ;;  %v3563_v14 = vmul.f32 1.442695, %v3407_v52 }
 0x77e   : > { %v5476_v50 = vpop.eup %5475  ;;  %5495 = vrcp.f32 %v3716_v44  ;;  %v6798_v56 = vpop.f32.mrb[128].mxu0 }
 0x77f   : > { %v5478_v32 = vpop.eup %5477  ;;  %5497 = vrcp.f32 %v3720_v45  ;;  %v6801_v1 = vpop.f32.mrb[113].mxu1 }
 0x780   : > { %v5480_v62 = vpop.eup %5479  ;;  %v4640_v63 = vpack.c.bf16 %v5478_v32, %v5474_v43  ;;  %5499 = vpow2.f32 %v3521_v49  ;;  %v6803_v34 = vpop.f32.mrb[129].mxu0 }
 0x781   : > { %v5482_v2 = vpop.eup %5481  ;;  %v4641_v4 = vpack.c.bf16 %v5480_v62, %v5476_v50  ;;  %5501 = vpow2.f32 %v3519_v26  ;;  %v6805_v8 = vpop.f32.mrb[114].mxu1  ;;  %v2994_v50 = vadd.f32 %v6771_v20, %v6749_v23  ;;  %v2996_v20 = vadd.f32 %v6776_v28, %v6745_v51 }
 0x782   : > { %v6807_v9 = vpop.f32.mrb[130].mxu0  ;;  %v5484_v10 = vpop.eup %5483  ;;  %4275 = vst [vmem:[%s6793_s26] sm:$0xff] %v4640_v63  ;;  %5503 = vpow2.f32 %v3523_v40  ;;  %v2998_v28 = vadd.f32 %v6781_v37, %v6749_v23 }
 0x783   : > { %v6810_v15 = vpop.f32.mrb[115].mxu1  ;;  %v5486_v16 = vpop.eup %5485  ;;  %4276 = vst [vmem:[%s6793_s26 + $0x8] sm:$0xff] %v4641_v4  ;;  %5505 = vpow2.f32 %v3531_v29 }
 0x784   : > { %v6813_v18 = vpop.f32.mrb[131].mxu0  ;;  %v5488_v39 = vpop.eup %5487  ;;  %v4644_v49 = vpack.c.bf16 %v5486_v16, %v5482_v2  ;;  %5507 = vpow2.f32 %v3535_v59  ;;  %v3107_v59 = vadd.f32 %v6773_v22, %v6751_v55  ;;  %v3406_v2 = vsub.f32 0.0, %v2994_v50 }
 0x785   : > { %v5490_v25 = vpop.eup %5489  ;;  %v4645_v26 = vpack.c.bf16 %v5488_v39, %v5484_v10  ;;  %5509 = vpow2.f32 %v3533_v5  ;;  %v6817_v38 = vpop.f32.mrb[116].mxu1  ;;  %v3109_v16 = vadd.f32 %v6778_v30, %v6747_v54  ;;  %v3111_v30 = vadd.f32 %v6783_v3, %v6751_v55 }
 0x786   : > { %v5492_v60 = vpop.eup %5491  ;;  %4279 = vst [vmem:[%s6793_s26 + $0x1c] sm:$0xff] %v4644_v49  ;;  %5511 = vpow2.f32 %v3537_v12  ;;  %v6819_v41 = vpop.f32.mrb[132].mxu0  ;;  %v3408_v7 = vsub.f32 0.0, %v3107_v59  ;;  %v3413_v50 = vsub.f32 0.0, %v2998_v28  ;;  %v3115_v59 = vadd.f32 %v6798_v56, %v6747_v54 }
 0x787   : > { %v5494_v33 = vpop.eup %5493  ;;  %4280 = vst [vmem:[%s6793_s26 + $0x24] sm:$0xff] %v4645_v26  ;;  %5513 = vpow2.f32 %v3545_v42  ;;  %v6821_v44 = vpop.f32.mrb[117].mxu1 }
 0x788   : > { %v5496_v6 = vpop.eup %5495  ;;  %v4648_v35 = vpack.c.bf16 %v5494_v33, %v5490_v25  ;;  %5515 = vpow2.f32 %v3549_v19  ;;  %v6823_v40 = vpop.f32.mrb[133].mxu0  ;;  %v3412_v19 = vsub.f32 0.0, %v2996_v20 }
 0x789   : > { %v6825_v57 = vpop.eup %5497  ;;  %v4649_v43 = vpack.c.bf16 %v5496_v6, %v5492_v60  ;;  %5517 = vpow2.f32 %v3547_v27  ;;  %v6827_v45 = vpop.f32.mrb[118].mxu1  ;;  %v3561_v60 = vmul.f32 1.442695, %v3406_v2  ;;  %v3565_v6 = vmul.f32 1.442695, %v3408_v7 }
 0x78a   : > { %v6829_v46 = vpop.f32.mrb[134].mxu0  ;;  %v5500_v47 = vpop.eup %5499  ;;  %4283 = vst [vmem:[%s6793_s26 + $0x38] sm:$0xff] %v4648_v35  ;;  %5519 = vpow2.f32 %v3551_v31  ;;  %v3002_v35 = vadd.f32 %v6796_v53, %v6745_v51  ;;  %v3573_v3 = vmul.f32 1.442695, %v3412_v19  ;;  %v3575_v7 = vmul.f32 1.442695, %v3413_v50 }
 0x78b   : > { %v6834_v29 = vpop.f32.mrb[119].mxu1  ;;  %v6836_v58 = vpop.f32.mrb[135].mxu0  ;;  %4284 = vst [vmem:[%s6793_s26 + $0x40] sm:$0xff] %v4649_v43  ;;  %v3722_v32 = vadd.f32 1.0, %v5500_v47  ;;  %5521 = vpow2.f32 %v3559_v36  ;;  %v3414_v47 = vsub.f32 0.0, %v3109_v16 }
 0x78c   : > { %v5502_v21 = vpop.eup %5501  ;;  %5523 = vpow2.f32 %v3563_v14 }
 0x78d   : > { %v5504_v61 = vpop.eup %5503  ;;  %v3721_v48 = vadd.f32 1.0, %v5502_v21  ;;  %5525 = vrcp.f32 %v3722_v32  ;;  %v6843_v10 = vpop.f32.mrb[120].mxu1  ;;  %v3577_v56 = vmul.f32 1.442695, %v3414_v47 }
 0x78e   : > { %v5506_v62 = vpop.eup %5505  ;;  %v3723_v63 = vadd.f32 1.0, %v5504_v61  ;;  %v6845_v22 = vpop.f32.mrb[136].mxu0 }
 0x78f   : > { %v5508_v24 = vpop.eup %5507  ;;  %5527 = vrcp.f32 %v3721_v48  ;;  %v3727_v0 = vadd.f32 1.0, %v5506_v62  ;;  %v6851_v42 = vpop.f32.mrb[121].mxu1  ;;  %v3415_v62 = vsub.f32 0.0, %v3111_v30  ;;  %v3008_v30 = vadd.f32 %v6810_v15, %v6749_v23 }
 0x790   : > { %v5510_v4 = vpop.eup %5509  ;;  %5529 = vrcp.f32 %v3723_v63  ;;  %v3729_v5 = vadd.f32 1.0, %v5508_v24  ;;  %v6853_v17 = vpop.f32.mrb[137].mxu0  ;;  %v3004_v63 = vadd.f32 %v6801_v1, %v6749_v23  ;;  %v3419_v24 = vsub.f32 0.0, %v3002_v35 }
 0x791   : > { %v5512_v12 = vpop.eup %5511  ;;  %5531 = vrcp.f32 %v3727_v0  ;;  %v3728_v13 = vadd.f32 1.0, %v5510_v4  ;;  %v6855_v52 = vpop.f32.mrb[122].mxu1  ;;  %v3117_v0 = vadd.f32 %v6803_v34, %v6751_v55  ;;  %v3421_v34 = vsub.f32 0.0, %v3115_v59 }
 0x792   : > { %v5514_v39 = vpop.eup %5513  ;;  %5533 = vrcp.f32 %v3729_v5  ;;  %v3730_v49 = vadd.f32 1.0, %v5512_v12  ;;  %v6857_v25 = vpop.f32.mrb[138].mxu0  ;;  %v3006_v12 = vadd.f32 %v6805_v8, %v6745_v51 }
 0x793   : > { %v5516_v26 = vpop.eup %5515  ;;  %5535 = vrcp.f32 %v3728_v13  ;;  %v3734_v27 = vadd.f32 1.0, %v5514_v39  ;;  %v6861_v37 = vpop.f32.mrb[123].mxu1  ;;  %v3119_v39 = vadd.f32 %v6807_v9, %v6747_v54  ;;  %v3579_v9 = vmul.f32 1.442695, %v3415_v62 }
 0x794   : > { %v6863_v31 = vpop.f32.mrb[139].mxu0  ;;  %v5518_v33 = vpop.eup %5517  ;;  %5537 = vrcp.f32 %v3730_v49  ;;  %v3736_v36 = vadd.f32 1.0, %v5516_v26  ;;  %v3422_v35 = vsub.f32 0.0, %v3117_v0  ;;  %v3426_v47 = vsub.f32 0.0, %v3006_v12 }
 0x795   : > { %v5520_v14 = vpop.eup %5519  ;;  %5539 = vrcp.f32 %v3734_v27  ;;  %v3735_v43 = vadd.f32 1.0, %v5518_v33  ;;  %v6873_v2 = vpop.f32.mrb[124].mxu1  ;;  %v3420_v27 = vsub.f32 0.0, %v3004_v63  ;;  %v3591_v15 = vmul.f32 1.442695, %v3421_v34 }
 0x796   : > { %v5522_v21 = vpop.eup %5521  ;;  %5541 = vrcp.f32 %v3736_v36  ;;  %v3737_v32 = vadd.f32 1.0, %v5520_v14  ;;  %v6875_v4 = vpop.f32.mrb[140].mxu0  ;;  %v3593_v62 = vmul.f32 1.442695, %v3422_v35 }
 0x797   : > { %v5524_v61 = vpop.eup %5523  ;;  %5543 = vrcp.f32 %v3735_v43  ;;  %v3741_v48 = vadd.f32 1.0, %v5522_v21  ;;  %v6879_v13 = vpop.f32.mrb[125].mxu1  ;;  %v3587_v43 = vmul.f32 1.442695, %v3419_v24  ;;  %v3428_v21 = vsub.f32 0.0, %v3119_v39 }
 0x798   : > { %v5526_v53 = vpop.eup %5525  ;;  %5545 = vrcp.f32 %v3737_v32  ;;  %v3743_v20 = vadd.f32 1.0, %v5524_v61  ;;  %v6881_v1 = vpop.f32.mrb[141].mxu0  ;;  %v3589_v61 = vmul.f32 1.442695, %v3420_v27 }
 0x799   : > { %v5528_v5 = vpop.eup %5527  ;;  %5547 = vrcp.f32 %v3741_v48  ;;  %v6886_v49 = vpop.f32.mrb[126].mxu1  ;;  %v3427_v48 = vsub.f32 0.0, %v3008_v30 }
 0x79a   : > { %v5530_v16 = vpop.eup %5529  ;;  %v4652_v28 = vpack.c.bf16 %v5528_v5, %v6825_v57  ;;  %5549 = vrcp.f32 %v3743_v20  ;;  %v6888_v19 = vpop.f32.mrb[142].mxu0  ;;  %v3601_v20 = vmul.f32 1.442695, %v3426_v47 }
 0x79b   : > { %v5532_v26 = vpop.eup %5531  ;;  %v4653_v8 = vpack.c.bf16 %v5530_v16, %v5526_v53  ;;  %5551 = vpow2.f32 %v3561_v60  ;;  %v6892_v33 = vpop.f32.mrb[127].mxu1  ;;  %v3603_v39 = vmul.f32 1.442695, %v3427_v48 }
 0x79c   : > { %v6894_v57 = vpop.f32.mrb[143].mxu0  ;;  %v5534_v36 = vpop.eup %5533  ;;  %4287 = vst [vmem:[%s6793_s26 + $0x54] sm:$0xff] %v4652_v28  ;;  %5553 = vpow2.f32 %v3565_v6 }
 0x79d   : > { %v5536_v14 = vpop.eup %5535  ;;  %4288 = vst [vmem:[%s6793_s26 + $0x5c] sm:$0xff] %v4653_v8  ;;  %5555 = vpow2.f32 %v3573_v3  ;;  %v6899_v63 = vpop.f32.mrb[128].mxu1 }
 0x79e   : > { %v5538_v60 = vpop.eup %5537  ;;  %v4656_v50 = vpack.c.bf16 %v5536_v14, %v5532_v26  ;;  %5557 = vpow2.f32 %v3577_v56  ;;  %v6901_v3 = vpop.f32.mrb[144].mxu0  ;;  %v3012_v14 = vadd.f32 %v6817_v38, %v6745_v51 }
 0x79f   : > { %v5540_v32 = vpop.eup %5539  ;;  %v4657_v59 = vpack.c.bf16 %v5538_v60, %v5534_v36  ;;  %5559 = vpow2.f32 %v3575_v7  ;;  %v6904_v24 = vpop.f32.mrb[129].mxu1  ;;  %v3605_v7 = vmul.f32 1.442695, %v3428_v21  ;;  %v3121_v36 = vadd.f32 %v6813_v18, %v6751_v55 }
 0x7a0   : > { %v5542_v6 = vpop.eup %5541  ;;  %4291 = vst [vmem:[%s6793_s26 + $0x70] sm:$0xff] %v4656_v50  ;;  %5561 = vpow2.f32 %v3579_v9  ;;  %v6906_v0 = vpop.f32.mrb[145].mxu0  ;;  %v3125_v60 = vadd.f32 %v6819_v41, %v6747_v54  ;;  %v3014_v21 = vadd.f32 %v6821_v44, %v6749_v23  ;;  %v3433_v41 = vsub.f32 0.0, %v3012_v14 }
 0x7a1   : > { %v5544_v53 = vpop.eup %5543  ;;  %4292 = vst [vmem:[%s6793_s26 + $0x78] sm:$0xff] %v4657_v59  ;;  %5563 = vpow2.f32 %v3587_v43  ;;  %v6908_v12 = vpop.f32.mrb[130].mxu1 }
 0x7a2   : > { %v5546_v5 = vpop.eup %5545  ;;  %v4660_v56 = vpack.c.bf16 %v5544_v53, %v5540_v32  ;;  %5565 = vpow2.f32 %v3591_v15  ;;  %v6910_v16 = vpop.f32.mrb[146].mxu0 }
 0x7a3   : > { %v6912_v28 = vpop.eup %5547  ;;  %v4661_v34 = vpack.c.bf16 %v5546_v5, %v5542_v6  ;;  %5567 = vpow2.f32 %v3589_v61  ;;  %v6914_v26 = vpop.f32.mrb[131].mxu1  ;;  %v3429_v61 = vsub.f32 0.0, %v3121_v36  ;;  %v3434_v36 = vsub.f32 0.0, %v3014_v21 }
 0x7a4   : > { %v6916_v8 = vpop.f32.mrb[147].mxu0  ;;  %v6918_v27 = vpop.eup %5549  ;;  %4295 = vst [vmem:[%s6793_s26 + $0x8c] sm:$0xff] %v4660_v56  ;;  %5569 = vpow2.f32 %v3593_v62  ;;  %v3435_v56 = vsub.f32 0.0, %v3125_v60 }
 0x7a5   : > { %v5552_v30 = vpop.eup %5551  ;;  %4296 = vst [vmem:[%s6793_s26 + $0x94] sm:$0xff] %v4661_v34  ;;  %5571 = vpow2.f32 %v3601_v20  ;;  %v6930_v32 = vpop.f32.mrb[132].mxu1 }
 0x7a6   : > { %v5554_v9 = vpop.eup %5553  ;;  %v3742_v35 = vadd.f32 1.0, %v5552_v30  ;;  %5573 = vpow2.f32 %v3605_v7  ;;  %v6932_v48 = vpop.f32.mrb[148].mxu0  ;;  %v3619_v21 = vmul.f32 1.442695, %v3435_v56  ;;  %v3131_v56 = vadd.f32 %v6836_v58, %v6751_v55 }
 0x7a7   : > { %v5556_v43 = vpop.eup %5555  ;;  %v3744_v47 = vadd.f32 1.0, %v5554_v9  ;;  %5575 = vpow2.f32 %v3603_v39  ;;  %v6934_v38 = vpop.f32.mrb[133].mxu1 }
 0x7a8   : > { %v5558_v50 = vpop.eup %5557  ;;  %5577 = vrcp.f32 %v3742_v35  ;;  %v3748_v15 = vadd.f32 1.0, %v5556_v43  ;;  %v6936_v53 = vpop.f32.mrb[149].mxu0  ;;  %v3607_v43 = vmul.f32 1.442695, %v3429_v61 }
 0x7a9   : > { %v5560_v18 = vpop.eup %5559  ;;  %5579 = vrcp.f32 %v3744_v47  ;;  %v3750_v59 = vadd.f32 1.0, %v5558_v50  ;;  %v6938_v20 = vpop.f32.mrb[134].mxu1  ;;  %v3127_v47 = vadd.f32 %v6823_v40, %v6751_v55  ;;  %v3018_v40 = vadd.f32 %v6834_v29, %v6749_v23 }
 0x7aa   : > { %v5562_v6 = vpop.eup %5561  ;;  %5581 = vrcp.f32 %v3748_v15  ;;  %v3749_v62 = vadd.f32 1.0, %v5560_v18  ;;  %v6940_v7 = vpop.f32.mrb[150].mxu0  ;;  %v3615_v15 = vmul.f32 1.442695, %v3433_v41  ;;  %v3016_v18 = vadd.f32 %v6827_v45, %v6745_v51 }
 0x7ab   : > { %v5564_v5 = vpop.eup %5563  ;;  %5583 = vrcp.f32 %v3750_v59  ;;  %v3751_v44 = vadd.f32 1.0, %v5562_v6  ;;  %v6942_v34 = vpop.f32.mrb[135].mxu1  ;;  %v3022_v29 = vadd.f32 %v6843_v10, %v6745_v51 }
 0x7ac   : > { %v5566_v39 = vpop.eup %5565  ;;  %5585 = vrcp.f32 %v3749_v62  ;;  %v3755_v30 = vadd.f32 1.0, %v5564_v5  ;;  %v6944_v9 = vpop.f32.mrb[151].mxu0  ;;  %v3129_v62 = vadd.f32 %v6829_v46, %v6747_v54 }
 0x7ad   : > { %v5568_v35 = vpop.eup %5567  ;;  %5587 = vrcp.f32 %v3751_v44  ;;  %v3757_v14 = vadd.f32 1.0, %v5566_v39  ;;  %v3617_v44 = vmul.f32 1.442695, %v3434_v36  ;;  %v6954_v39 = vpop.f32.mrb[136].mxu1 }
 0x7ae   : > { %v5570_v50 = vpop.eup %5569  ;;  %5589 = vrcp.f32 %v3755_v30  ;;  %v3756_v60 = vadd.f32 1.0, %v5568_v35  ;;  %v6956_v41 = vpop.f32.mrb[152].mxu0  ;;  %v3436_v35 = vsub.f32 0.0, %v3127_v47  ;;  %v3442_v58 = vsub.f32 0.0, %v3129_v62 }
 0x7af   : > { %v5572_v59 = vpop.eup %5571  ;;  %5591 = vrcp.f32 %v3757_v14  ;;  %v3758_v6 = vadd.f32 1.0, %v5570_v50  ;;  %v6960_v14 = vpop.f32.mrb[137].mxu1  ;;  %v3443_v62 = vsub.f32 0.0, %v3131_v56 }
 0x7b0   : > { %v5574_v5 = vpop.eup %5573  ;;  %5593 = vrcp.f32 %v3756_v60  ;;  %v3762_v61 = vadd.f32 1.0, %v5572_v59  ;;  %7277 = vst [vmem:[#allocation2_spill] sm:$0xff] %v6960_v14  ;;  %v6962_v46 = vpop.f32.mrb[153].mxu0  ;;  %v3440_v60 = vsub.f32 0.0, %v3016_v18 }
 0x7b1   : > { %v5576_v30 = vpop.eup %5575  ;;  %5595 = vrcp.f32 %v3758_v6  ;;  %v3764_v45 = vadd.f32 1.0, %v5574_v5  ;;  %7278 = vst [vmem:[#allocation3_spill] sm:$0xff] %v6962_v46  ;;  %v6966_v59 = vpop.f32.mrb[138].mxu1  ;;  %v3135_v46 = vadd.f32 %v6845_v22, %v6747_v54  ;;  %v3137_v22 = vadd.f32 %v6853_v17, %v6751_v55 }
 0x7b2   : > { %v5578_v50 = vpop.eup %5577  ;;  %5597 = vrcp.f32 %v3762_v61  ;;  %v3763_v36 = vadd.f32 1.0, %v5576_v30  ;;  %7279 = vst [vmem:[#allocation4_spill] sm:$0xff] %v6966_v59  ;;  %v6968_v6 = vpop.f32.mrb[154].mxu0  ;;  %v3441_v59 = vsub.f32 0.0, %v3018_v40  ;;  %v3633_v40 = vmul.f32 1.442695, %v3442_v58 }
 0x7b3   : > { %7280 = vst [vmem:[#allocation5_spill] sm:$0xff] %v6968_v6  ;;  %v5580_v47 = vpop.eup %5579  ;;  %v4664_v5 = vpack.c.bf16 %v5578_v50, %v6912_v28  ;;  %5599 = vrcp.f32 %v3764_v45  ;;  %v6973_v61 = vpop.f32.mrb[139].mxu1  ;;  %v3024_v6 = vadd.f32 %v6851_v42, %v6749_v23  ;;  %v3621_v28 = vmul.f32 1.442695, %v3436_v35 }
 0x7b4   : > { %v6975_v18 = vpop.f32.mrb[155].mxu0  ;;  %v5582_v30 = vpop.eup %5581  ;;  %v4665_v10 = vpack.c.bf16 %v5580_v47, %v6918_v27  ;;  %5601 = vrcp.f32 %v3763_v36  ;;  %v3629_v50 = vmul.f32 1.442695, %v3440_v60  ;;  %v3449_v47 = vsub.f32 0.0, %v3135_v46 }
 0x7b5   : > { %7281 = vst [vmem:[#allocation6_spill] sm:$0xff] %v6975_v18  ;;  %v5584_v14 = vpop.eup %5583  ;;  %4299 = vst [vmem:[%s6793_s26 + $0xa8] sm:$0xff] %v4664_v5  ;;  %5603 = vpow2.f32 %v3607_v43  ;;  %v3447_v18 = vsub.f32 0.0, %v3022_v29  ;;  %v3631_v43 = vmul.f32 1.442695, %v3441_v59  ;;  %v3448_v35 = vsub.f32 0.0, %v3024_v6 }
 0x7b6   : > { %v5586_v45 = vpop.eup %5585  ;;  %4300 = vst [vmem:[%s6793_s26 + $0xb0] sm:$0xff] %v4665_v10  ;;  %5605 = vpow2.f32 %v3615_v15  ;;  %v6984_v56 = vpop.f32.mrb[140].mxu1  ;;  %v3635_v15 = vmul.f32 1.442695, %v3443_v62  ;;  %v3450_v60 = vsub.f32 0.0, %v3137_v22 }
 0x7b7   : > { %v5588_v27 = vpop.eup %5587  ;;  %v4668_v36 = vpack.c.bf16 %v5586_v45, %v5582_v30  ;;  %5607 = vpow2.f32 %v3619_v21  ;;  %v6986_v17 = vpop.f32.mrb[156].mxu0  ;;  %v3647_v30 = vmul.f32 1.442695, %v3449_v47  ;;  %v3026_v47 = vadd.f32 %v6855_v52, %v6745_v51 }
 0x7b8   : > { %v5590_v42 = vpop.eup %5589  ;;  %v4669_v5 = vpack.c.bf16 %v5588_v27, %v5584_v14  ;;  %5609 = vpow2.f32 %v3617_v44  ;;  %v6989_v29 = vpop.f32.mrb[141].mxu1  ;;  %v3643_v44 = vmul.f32 1.442695, %v3447_v18  ;;  %v3645_v27 = vmul.f32 1.442695, %v3448_v35 }
 0x7b9   : > { %v5592_v10 = vpop.eup %5591  ;;  %4303 = vst [vmem:[%s6793_s26 + $0xc4] sm:$0xff] %v4668_v36  ;;  %5611 = vpow2.f32 %v3621_v28  ;;  %v6991_v21 = vpop.f32.mrb[157].mxu0  ;;  %v3649_v18 = vmul.f32 1.442695, %v3450_v60  ;;  %v2622_v60 = vsub.s32 4, %v6736_v11 }
 0x7ba   : > { %v5594_v46 = vpop.eup %5593  ;;  %4304 = vst [vmem:[%s6793_s26 + $0xcc] sm:$0xff] %v4669_v5  ;;  %5613 = vpow2.f32 %v3629_v50  ;;  %v6994_v14 = vpop.f32.mrb[142].mxu1 }
 0x7bb   : > { %v6996_v59 = vpop.f32.mrb[158].mxu0  ;;  %v5596_v6 = vpop.eup %5595  ;;  %v4672_v58 = vpack.c.bf16 %v5594_v46, %v5590_v42  ;;  %5615 = vpow2.f32 %v3633_v40 }
 0x7bc   : > { %v6998_v28 = vpop.f32.mrb[143].mxu1  ;;  %v7000_v62 = vpop.f32.mrb[159].mxu0  ;;  %v4673_v45 = vpack.c.bf16 %v5596_v6, %v5592_v10  ;;  %5617 = vpow2.f32 %v3631_v43  ;;  %v3139_v43 = vadd.f32 %v6857_v25, %v6747_v54  ;;  %v3028_v25 = vadd.f32 %v6861_v37, %v6749_v23 }
 0x7bd   : > { %v5598_v22 = vpop.eup %5597  ;;  %4307 = vst [vmem:[%s6793_s26 + $0xe0] sm:$0xff] %v4672_v58  ;;  %5619 = vpow2.f32 %v3635_v15  ;;  %v7010_v35 = vpop.f32.mrb[144].mxu1 }
 0x7be   : > { %v7002_v36 = vpop.eup %5599  ;;  %4308 = vst [vmem:[%s6793_s26 + $0xe8] sm:$0xff] %v4673_v45  ;;  %5621 = vpow2.f32 %v3643_v44  ;;  %v7014_v44 = vpop.f32.mrb[145].mxu1  ;;  %v3454_v45 = vsub.f32 0.0, %v3026_v47  ;;  %v7028_v47 = vld [vmem:[%s7275_s10] sm:$0xff] }
 0x7bf   : > { %v5602_v50 = vpop.eup %5601  ;;  %5623 = vpow2.f32 %v3647_v30  ;;  %7282 = vst [vmem:[#allocation7_spill] sm:$0xff] %v7014_v44  ;;  %v7016_v52 = vpop.f32.mrb[146].mxu1  ;;  %v7031_v37 = vrot.slane %v7028_v47, %v2622_v60  ;;  %v3145_v60 = vadd.f32 %v6875_v4, %v6747_v54 }
 0x7c0   : > { %v5604_v42 = vpop.eup %5603  ;;  %v4676_v40 = vpack.c.bf16 %v5602_v50, %v5598_v22  ;;  %5625 = vpow2.f32 %v3645_v27  ;;  %7283 = vst [vmem:[#allocation8_spill] sm:$0xff] %v7016_v52  ;;  %v7020_v27 = vpop.f32.mrb[147].mxu1 }
 0x7c1   : > { %v5606_v5 = vpop.eup %5605  ;;  %v3765_v46 = vadd.f32 1.0, %v5604_v42  ;;  %5627 = vpow2.f32 %v3649_v18  ;;  %7284 = vst [vmem:[#allocation9_spill] sm:$0xff] %v7020_v27  ;;  %v3456_v42 = vsub.f32 0.0, %v3139_v43  ;;  %v3032_v43 = vadd.f32 %v6873_v2, %v6745_v51 }
 0x7c2   : > { %v5608_v10 = vpop.eup %5607  ;;  %4311 = vst [vmem:[%s6793_s26 + $0xfc] sm:$0xff] %v4676_v40  ;;  %v3769_v15 = vadd.f32 1.0, %v5606_v5 }
 0x7c3   : > { %v5610_v6 = vpop.eup %5609  ;;  %5629 = vrcp.f32 %v3765_v46  ;;  %v3771_v58 = vadd.f32 1.0, %v5608_v10  ;;  %v3141_v10 = vadd.f32 %v6863_v31, %v6751_v55  ;;  %v3657_v31 = vmul.f32 1.442695, %v3454_v45 }
 0x7c4   : > { %v5612_v30 = vpop.eup %5611  ;;  %5631 = vrcp.f32 %v3769_v15  ;;  %v3770_v22 = vadd.f32 1.0, %v5610_v6  ;;  %v3661_v52 = vmul.f32 1.442695, %v3456_v42  ;;  %v3147_v42 = vadd.f32 %v6881_v1, %v6751_v55 }
 0x7c5   : > { %v5614_v50 = vpop.eup %5613  ;;  %5633 = vrcp.f32 %v3771_v58  ;;  %v3772_v18 = vadd.f32 1.0, %v5612_v30  ;;  %v7038_v44 = vpop.f32.mrb[148].mxu1  ;;  %v3457_v2 = vsub.f32 0.0, %v3141_v10  ;;  %v3034_v58 = vadd.f32 %v6879_v13, %v6749_v23 }
 0x7c6   : > { %v5616_v5 = vpop.eup %5615  ;;  %5635 = vrcp.f32 %v3770_v22  ;;  %v3776_v46 = vadd.f32 1.0, %v5614_v50  ;;  %v3455_v50 = vsub.f32 0.0, %v3028_v25 }
 0x7c7   : > { %v5618_v15 = vpop.eup %5617  ;;  %5637 = vrcp.f32 %v3772_v18  ;;  %v3778_v6 = vadd.f32 1.0, %v5616_v5 }
 0x7c8   : > { %v5620_v30 = vpop.eup %5619  ;;  %5639 = vrcp.f32 %v3776_v46  ;;  %v3777_v22 = vadd.f32 1.0, %v5618_v15  ;;  %v7042_v46 = vpop.f32.mrb[149].mxu1  ;;  %v3461_v15 = vsub.f32 0.0, %v3032_v43  ;;  %v3149_v43 = vadd.f32 %v6888_v19, %v6747_v54 }
 0x7c9   : > { %v5622_v40 = vpop.eup %5621  ;;  %5641 = vrcp.f32 %v3778_v6  ;;  %v3779_v27 = vadd.f32 1.0, %v5620_v30  ;;  %7285 = vst [vmem:[#allocation10_spill] sm:$0xff] %v7042_v46  ;;  %v7046_v6 = vpop.f32.mrb[150].mxu1  ;;  %v3188_v19 = vadd.f32 %v6899_v63, %v7031_v37 }
 0x7ca   : > { %v5624_v18 = vpop.eup %5623  ;;  %5643 = vrcp.f32 %v3777_v22  ;;  %v3783_v5 = vadd.f32 1.0, %v5622_v40  ;;  %v3659_v22 = vmul.f32 1.442695, %v3455_v50  ;;  %v3036_v40 = vadd.f32 %v6886_v49, %v6745_v51  ;;  %v7050_v10 = vpop.f32.mrb[151].mxu1 }
 0x7cb   : > { %v5626_v45 = vpop.eup %5625  ;;  %5645 = vrcp.f32 %v3779_v27  ;;  %v3785_v25 = vadd.f32 1.0, %v5624_v18  ;;  %v3463_v18 = vsub.f32 0.0, %v3145_v60  ;;  %v3038_v50 = vadd.f32 %v6892_v33, %v6749_v23 }
 0x7cc   : > { %v5628_v4 = vpop.eup %5627  ;;  %5647 = vrcp.f32 %v3783_v5  ;;  %v3784_v30 = vadd.f32 1.0, %v5626_v45  ;;  %v3462_v5 = vsub.f32 0.0, %v3034_v58  ;;  %v3663_v51 = vmul.f32 1.442695, %v3457_v2 }
 0x7cd   : > { %v5630_v13 = vpop.eup %5629  ;;  %5649 = vrcp.f32 %v3785_v25  ;;  %v3786_v27 = vadd.f32 1.0, %v5628_v4  ;;  %v3464_v49 = vsub.f32 0.0, %v3147_v42  ;;  %v3151_v25 = vadd.f32 %v6894_v57, %v6751_v55  ;;  %v7062_v2 = vpop.f32.mrb[152].mxu1 }
 0x7ce   : > { %v5632_v1 = vpop.eup %5631  ;;  %v4677_v46 = vpack.c.bf16 %v5630_v13, %v7002_v36  ;;  %5651 = vrcp.f32 %v3784_v30  ;;  %v3671_v60 = vmul.f32 1.442695, %v3461_v15  ;;  %v3468_v54 = vsub.f32 0.0, %v3036_v40 }
 0x7cf   : > { %v5634_v45 = vpop.eup %5633  ;;  %5653 = vrcp.f32 %v3786_v27  ;;  %v3675_v23 = vmul.f32 1.442695, %v3463_v18  ;;  %v3470_v33 = vsub.f32 0.0, %v3149_v43  ;;  %v3673_v55 = vmul.f32 1.442695, %v3462_v5 }
 0x7d0   : > { %v5636_v4 = vpop.eup %5635  ;;  %4312 = vst [vmem:[%s6793_s26 + $0x104] sm:$0xff] %v4677_v46  ;;  %5655 = vpow2.f32 %v3657_v31  ;;  %v3469_v57 = vsub.f32 0.0, %v3038_v50  ;;  %v7064_v31 = vpop.f32.mrb[153].mxu1  ;;  %v3677_v15 = vmul.f32 1.442695, %v3464_v49  ;;  %v3471_v63 = vsub.f32 0.0, %v3151_v25 }
 0x7d1   : > { %v5638_v36 = vpop.eup %5637  ;;  %v4680_v58 = vpack.c.bf16 %v5636_v4, %v5632_v1  ;;  %5657 = vpow2.f32 %v3661_v52  ;;  %v7067_v40 = vpop.f32.mrb[154].mxu1  ;;  %v3685_v13 = vmul.f32 1.442695, %v3468_v54  ;;  %v3367_v27 = vsub.f32 0.0, %v3188_v19 }
 0x7d2   : > { %v5640_v42 = vpop.eup %5639  ;;  %v4681_v30 = vpack.c.bf16 %v5638_v36, %v5634_v45  ;;  %5659 = vpow2.f32 %v3659_v22  ;;  %v7286_v18 = vsub.s32 6, %v6736_v11  ;;  %v7075_v43 = vpop.f32.mrb[155].mxu1  ;;  %v3689_v50 = vmul.f32 1.442695, %v3470_v33 }
 0x7d3   : > { %v5642_v46 = vpop.eup %5641  ;;  %4315 = vst [vmem:[%s6793_s26 + $0x118] sm:$0xff] %v4680_v58  ;;  %5661 = vpow2.f32 %v3663_v51  ;;  %v7287_v45 = vsub.s32 5, %v6736_v11  ;;  %v3687_v4 = vmul.f32 1.442695, %v3469_v57  ;;  %v3691_v54 = vmul.f32 1.442695, %v3471_v63 }
 0x7d4   : > { %v5644_v52 = vpop.eup %5643  ;;  %4316 = vst [vmem:[%s6793_s26 + $0x120] sm:$0xff] %v4681_v30  ;;  %5663 = vpow2.f32 %v3671_v60  ;;  %v7073_v22 = vrot.slane %v7028_v47, %v7286_v18  ;;  %v3483_v36 = vmul.f32 1.442695, %v3367_v27 }
 0x7d5   : > { %v5646_v1 = vpop.eup %5645  ;;  %v4684_v5 = vpack.c.bf16 %v5644_v52, %v5640_v42  ;;  %5665 = vpow2.f32 %v3675_v23  ;;  %v7080_v51 = vrot.slane %v7028_v47, %v7287_v45  ;;  %v7088_v33 = vpop.f32.mrb[156].mxu1 }
 0x7d6   : > { %v5648_v49 = vpop.eup %5647  ;;  %v4685_v25 = vpack.c.bf16 %v5646_v1, %v5642_v46  ;;  %5667 = vpow2.f32 %v3673_v55  ;;  %v3309_v58 = vadd.f32 %v6901_v3, %v7073_v22  ;;  %v3301_v55 = vadd.f32 %v6906_v0, %v7073_v22  ;;  %v7092_v57 = vpop.f32.mrb[157].mxu1 }
 0x7d7   : > { %v5650_v60 = vpop.eup %5649  ;;  %4319 = vst [vmem:[%s6793_s26 + $0x134] sm:$0xff] %v4684_v5  ;;  %5669 = vpow2.f32 %v3677_v15  ;;  %v3190_v47 = vadd.f32 %v6904_v24, %v7080_v51  ;;  %v3192_v15 = vadd.f32 %v6908_v12, %v7031_v37  ;;  %v7097_v63 = vpop.f32.mrb[158].mxu1  ;;  %v3312_v27 = vadd.f32 %v6910_v16, %v7073_v22 }
 0x7d8   : > { %v5652_v19 = vpop.eup %5651  ;;  %4320 = vst [vmem:[%s6793_s26 + $0x13c] sm:$0xff] %v4685_v25  ;;  %5671 = vpow2.f32 %v3685_v13  ;;  %v3383_v13 = vsub.f32 0.0, %v3309_v58  ;;  %v7102_v0 = vpop.f32.mrb[159].mxu1  ;;  %v3369_v12 = vsub.f32 0.0, %v3301_v55  ;;  %v3304_v55 = vadd.f32 %v6916_v8, %v7073_v22 }
 0x7d9   : > { %v5654_v11 = vpop.eup %5653  ;;  %v4688_v23 = vpack.c.bf16 %v5652_v19, %v5648_v49  ;;  %5673 = vpow2.f32 %v3689_v50  ;;  %v3368_v5 = vsub.f32 0.0, %v3190_v47  ;;  %v7114_v8 = vadd.f32 %v7046_v6, %v7031_v37 }
 0x7da   : > { %v5656_v42 = vpop.eup %5655  ;;  %v4689_v30 = vpack.c.bf16 %v5654_v11, %v5650_v60  ;;  %5675 = vpow2.f32 %v3687_v4  ;;  %v3374_v4 = vsub.f32 0.0, %v3192_v15  ;;  %v3515_v19 = vmul.f32 1.442695, %v3383_v13 }
 0x7db   : > { %v5658_v46 = vpop.eup %5657  ;;  %4323 = vst [vmem:[%s6793_s26 + $0x150] sm:$0xff] %v4688_v23  ;;  %v3790_v3 = vadd.f32 1.0, %v5656_v42  ;;  %5677 = vpow2.f32 %v3691_v54  ;;  %v3485_v11 = vmul.f32 1.442695, %v3368_v5  ;;  %v3194_v23 = vadd.f32 %v6914_v26, %v7080_v51 }
 0x7dc   : > { %v5660_v24 = vpop.eup %5659  ;;  %4324 = vst [vmem:[%s6793_s26 + $0x158] sm:$0xff] %v4689_v30  ;;  %v3792_v52 = vadd.f32 1.0, %v5658_v46  ;;  %5679 = vpow2.f32 %v3483_v36  ;;  %v3390_v36 = vsub.f32 0.0, %v3312_v27  ;;  %v3487_v30 = vmul.f32 1.442695, %v3369_v12 }
 0x7dd   : > { %v5662_v18 = vpop.eup %5661  ;;  %5681 = vrcp.f32 %v3790_v3  ;;  %v3791_v1 = vadd.f32 1.0, %v5660_v24  ;;  %v3497_v15 = vmul.f32 1.442695, %v3374_v4  ;;  %v3198_v24 = vadd.f32 %v6930_v32, %v7031_v37 }
 0x7de   : > { %v5664_v50 = vpop.eup %5663  ;;  %5683 = vrcp.f32 %v3792_v52  ;;  %v3793_v45 = vadd.f32 1.0, %v5662_v18  ;;  %v3529_v27 = vmul.f32 1.442695, %v3390_v36  ;;  %v3325_v26 = vadd.f32 %v6932_v48, %v7073_v22 }
 0x7df   : > { %v5666_v49 = vpop.eup %5665  ;;  %5685 = vrcp.f32 %v3791_v1  ;;  %v3797_v25 = vadd.f32 1.0, %v5664_v50  ;;  %v3375_v5 = vsub.f32 0.0, %v3194_v23  ;;  %v3376_v12 = vsub.f32 0.0, %v3304_v55 }
 0x7e0   : > { %v5668_v60 = vpop.eup %5667  ;;  %5687 = vrcp.f32 %v3793_v45  ;;  %v3799_v54 = vadd.f32 1.0, %v5666_v49  ;;  %v3200_v32 = vadd.f32 %v6934_v38, %v7080_v51  ;;  %v3381_v4 = vsub.f32 0.0, %v3198_v24 }
 0x7e1   : > { %v5670_v16 = vpop.eup %5669  ;;  %5689 = vrcp.f32 %v3797_v25  ;;  %v3798_v58 = vadd.f32 1.0, %v5668_v60  ;;  %v3317_v48 = vadd.f32 %v6936_v53, %v7073_v22  ;;  %v7122_v6 = vadd.f32 %v7050_v10, %v7080_v51 }
 0x7e2   : > { %v5672_v47 = vpop.eup %5671  ;;  %5691 = vrcp.f32 %v3799_v54  ;;  %v3800_v42 = vadd.f32 1.0, %v5670_v16  ;;  %v3411_v54 = vsub.f32 0.0, %v3325_v26  ;;  %v7126_v36 = vadd.f32 %v7062_v2, %v7031_v37 }
 0x7e3   : > { %v5674_v46 = vpop.eup %5673  ;;  %5693 = vrcp.f32 %v3798_v58  ;;  %v3804_v3 = vadd.f32 1.0, %v5672_v47  ;;  %v3202_v38 = vadd.f32 %v6938_v20, %v7031_v37  ;;  %v7132_v53 = vadd.f32 %v7064_v31, %v7080_v51 }
 0x7e4   : > { %v5676_v52 = vpop.eup %5675  ;;  %5695 = vrcp.f32 %v3800_v42  ;;  %v3806_v13 = vadd.f32 1.0, %v5674_v46  ;;  %v7136_v58 = vadd.f32 %v7067_v40, %v7031_v37  ;;  %v3499_v2 = vmul.f32 1.442695, %v3375_v5 }
 0x7e5   : > { %v5678_v18 = vpop.eup %5677  ;;  %5697 = vrcp.f32 %v3804_v3  ;;  %v3805_v1 = vadd.f32 1.0, %v5676_v52  ;;  %v3328_v47 = vadd.f32 %v6940_v7, %v7073_v22  ;;  %v3501_v20 = vmul.f32 1.442695, %v3376_v12 }
 0x7e6   : > { %v5680_v50 = vpop.eup %5679  ;;  %5699 = vrcp.f32 %v3806_v13  ;;  %v3807_v45 = vadd.f32 1.0, %v5678_v18  ;;  %v3382_v46 = vsub.f32 0.0, %v3200_v32  ;;  %v3511_v31 = vmul.f32 1.442695, %v3381_v4 }
 0x7e7   : > { %v5682_v49 = vpop.eup %5681  ;;  %5701 = vrcp.f32 %v3805_v1  ;;  %v3703_v25 = vadd.f32 1.0, %v5680_v50  ;;  %v3397_v24 = vsub.f32 0.0, %v3317_v48  ;;  %v7143_v40 = vadd.f32 %v7075_v43, %v7080_v51 }
 0x7e8   : > { %v5684_v60 = vpop.eup %5683  ;;  %5703 = vrcp.f32 %v3807_v45  ;;  %v3388_v7 = vsub.f32 0.0, %v3202_v38  ;;  %v7152_v18 = vadd.f32 %v7092_v57, %v7080_v51  ;;  %v3513_v5 = vmul.f32 1.442695, %v3382_v46 }
 0x7e9   : > { %v5686_v16 = vpop.eup %5685  ;;  %5705 = vrcp.f32 %v3703_v25 }
 0x7ea   : > { %v5688_v10 = vpop.eup %5687  ;;  %v4692_v23 = vpack.c.bf16 %v5686_v16, %v5682_v49  ;;  %5707 = vpow2.f32 %v3515_v19  ;;  %v3571_v19 = vmul.f32 1.442695, %v3411_v54  ;;  %v3525_v57 = vmul.f32 1.442695, %v3388_v7 }
 0x7eb   : > { %v5690_v42 = vpop.eup %5689  ;;  %v4693_v55 = vpack.c.bf16 %v5688_v10, %v5684_v60  ;;  %5709 = vpow2.f32 %v3485_v11  ;;  %v7148_v11 = vadd.f32 %v7088_v33, %v7031_v37  ;;  %v3543_v33 = vmul.f32 1.442695, %v3397_v24 }
 0x7ec   : > { %v5692_v3 = vpop.eup %5691  ;;  %4327 = vst [vmem:[%s6793_s26 + $0x16c] sm:$0xff] %v4692_v23  ;;  %5711 = vpow2.f32 %v3487_v30  ;;  %v3418_v30 = vsub.f32 0.0, %v3328_v47  ;;  %v3320_v54 = vadd.f32 %v6944_v9, %v7073_v22  ;;  %v3208_v10 = vadd.f32 %v6954_v39, %v7031_v37 }
 0x7ed   : > { %v5694_v52 = vpop.eup %5693  ;;  %4328 = vst [vmem:[%s6793_s26 + $0x174] sm:$0xff] %v4693_v55  ;;  %5713 = vpow2.f32 %v3497_v15  ;;  %v7156_v15 = vadd.f32 %v7097_v63, %v7031_v37  ;;  %v3341_v55 = vadd.f32 %v6956_v41, %v7073_v22 }
 0x7ee   : > { %v5696_v13 = vpop.eup %5695  ;;  %v4696_v26 = vpack.c.bf16 %v5694_v52, %v5690_v42  ;;  %5715 = vpow2.f32 %v3529_v27  ;;  %v7161_v27 = vadd.f32 %v7102_v0, %v7080_v51  ;;  %v3585_v49 = vmul.f32 1.442695, %v3418_v30 }
 0x7ef   : > { %v5698_v43 = vpop.eup %5697  ;;  %v4697_v1 = vpack.c.bf16 %v5696_v13, %v5692_v3  ;;  %5717 = vpow2.f32 %v3499_v2  ;;  %v3204_v0 = vadd.f32 %v6942_v34, %v7080_v51  ;;  %v3404_v9 = vsub.f32 0.0, %v3320_v54  ;;  %v7288_v3 = vld [vmem:[#allocation2_spill] sm:$0xff]  ;;  %v7289_v13 = vld [vmem:[#allocation3_spill] sm:$0xff] }
 0x7f0   : > { %v5700_v50 = vpop.eup %5699  ;;  %4331 = vst [vmem:[%s6793_s26 + $0x188] sm:$0xff] %v4696_v26  ;;  %5719 = vpow2.f32 %v3501_v20  ;;  %v3395_v52 = vsub.f32 0.0, %v3208_v10  ;;  %v3333_v26 = vadd.f32 %v7289_v13, %v7073_v22  ;;  %v3220_v13 = vadd.f32 %v6989_v29, %v7080_v51 }
 0x7f1   : > { %v5702_v45 = vpop.eup %5701  ;;  %4332 = vst [vmem:[%s6793_s26 + $0x190] sm:$0xff] %v4697_v1  ;;  %5721 = vpow2.f32 %v3511_v31  ;;  %v3389_v34 = vsub.f32 0.0, %v3204_v0  ;;  %v3210_v31 = vadd.f32 %v7288_v3, %v7080_v51  ;;  %v3439_v1 = vsub.f32 0.0, %v3341_v55 }
 0x7f2   : > { %v5704_v12 = vpop.eup %5703  ;;  %v4700_v32 = vpack.c.bf16 %v5702_v45, %v5698_v43  ;;  %5723 = vpow2.f32 %v3571_v19  ;;  %v3218_v3 = vadd.f32 %v6984_v56, %v7031_v37 }
 0x7f3   : > { %v7164_v63 = vpop.eup %5705  ;;  %v4701_v25 = vpack.c.bf16 %v5704_v12, %v5700_v50  ;;  %5725 = vpow2.f32 %v3513_v5  ;;  %v3527_v43 = vmul.f32 1.442695, %v3389_v34  ;;  %v3396_v45 = vsub.f32 0.0, %v3210_v31  ;;  %v7292_v34 = vld [vmem:[#allocation6_spill] sm:$0xff] }
 0x7f4   : > { %v5708_v4 = vpop.eup %5707  ;;  %4335 = vst [vmem:[%s6793_s26 + $0x1a4] sm:$0xff] %v4700_v32  ;;  %5727 = vpow2.f32 %v3543_v33  ;;  %v3557_v33 = vmul.f32 1.442695, %v3404_v9  ;;  %v3539_v32 = vmul.f32 1.442695, %v3395_v52  ;;  %v3336_v55 = vadd.f32 %v7292_v34, %v7073_v22 }
 0x7f5   : > { %v5710_v48 = vpop.eup %5709  ;;  %4336 = vst [vmem:[%s6793_s26 + $0x1ac] sm:$0xff] %v4701_v25  ;;  %v3719_v60 = vadd.f32 1.0, %v5708_v4  ;;  %5729 = vpow2.f32 %v3525_v57  ;;  %v3627_v10 = vmul.f32 1.442695, %v3439_v1  ;;  %v3409_v1 = vsub.f32 0.0, %v3218_v3 }
 0x7f6   : > { %v5712_v16 = vpop.eup %5711  ;;  %v3704_v38 = vadd.f32 1.0, %v5710_v48  ;;  %5731 = vpow2.f32 %v3585_v49  ;;  %v7290_v49 = vld [vmem:[#allocation4_spill] sm:$0xff]  ;;  %v3425_v48 = vsub.f32 0.0, %v3333_v26 }
 0x7f7   : > { %v5714_v23 = vpop.eup %5713  ;;  %5733 = vrcp.f32 %v3719_v60  ;;  %v3705_v2 = vadd.f32 1.0, %v5712_v16  ;;  %v3212_v25 = vadd.f32 %v7290_v49, %v7031_v37  ;;  %v7291_v60 = vld [vmem:[#allocation5_spill] sm:$0xff] }
 0x7f8   : > { %v5716_v47 = vpop.eup %5715  ;;  %5735 = vrcp.f32 %v3704_v38  ;;  %v3710_v42 = vadd.f32 1.0, %v5714_v23  ;;  %v3344_v54 = vadd.f32 %v7291_v60, %v7073_v22  ;;  %v3214_v23 = vadd.f32 %v6973_v61, %v7080_v51 }
 0x7f9   : > { %v5718_v20 = vpop.eup %5717  ;;  %5737 = vrcp.f32 %v3705_v2  ;;  %v3726_v46 = vadd.f32 1.0, %v5716_v47  ;;  %v3402_v9 = vsub.f32 0.0, %v3212_v25  ;;  %v3599_v56 = vmul.f32 1.442695, %v3425_v48 }
 0x7fa   : > { %v5720_v24 = vpop.eup %5719  ;;  %5739 = vrcp.f32 %v3710_v42  ;;  %v3711_v39 = vadd.f32 1.0, %v5718_v20  ;;  %v3541_v42 = vmul.f32 1.442695, %v3396_v45  ;;  %v3446_v61 = vsub.f32 0.0, %v3344_v54 }
 0x7fb   : > { %v5722_v19 = vpop.eup %5721  ;;  %5741 = vrcp.f32 %v3726_v46  ;;  %v3712_v7 = vadd.f32 1.0, %v5720_v24 }
 0x7fc   : > { %v5724_v30 = vpop.eup %5723  ;;  %5743 = vrcp.f32 %v3711_v39  ;;  %v3717_v41 = vadd.f32 1.0, %v5722_v19  ;;  %v3357_v39 = vadd.f32 %v6986_v17, %v7073_v22  ;;  %v3553_v17 = vmul.f32 1.442695, %v3402_v9 }
 0x7fd   : > { %v5726_v5 = vpop.eup %5725  ;;  %5745 = vrcp.f32 %v3712_v7  ;;  %v3747_v50 = vadd.f32 1.0, %v5724_v30  ;;  %v3403_v7 = vsub.f32 0.0, %v3214_v23 }
 0x7fe   : > { %v5728_v57 = vpop.eup %5727  ;;  %5747 = vrcp.f32 %v3717_v41  ;;  %v3718_v12 = vadd.f32 1.0, %v5726_v5  ;;  %v3467_v45 = vsub.f32 0.0, %v3357_v39 }
 0x7ff   : > { %v5730_v4 = vpop.eup %5729  ;;  %5749 = vrcp.f32 %v3747_v50  ;;  %v3733_v0 = vadd.f32 1.0, %v5728_v57  ;;  %v3641_v50 = vmul.f32 1.442695, %v3446_v61 }
 0x800   : > { %v5732_v16 = vpop.eup %5731  ;;  %5751 = vrcp.f32 %v3718_v12  ;;  %v3724_v38 = vadd.f32 1.0, %v5730_v4  ;;  %v3410_v12 = vsub.f32 0.0, %v3220_v13  ;;  %v3683_v54 = vmul.f32 1.442695, %v3467_v45 }
 0x801   : > { %v5734_v2 = vpop.eup %5733  ;;  %5753 = vrcp.f32 %v3733_v0  ;;  %v3754_v47 = vadd.f32 1.0, %v5732_v16  ;;  %v3567_v0 = vmul.f32 1.442695, %v3409_v1  ;;  %v3352_v1 = vadd.f32 %v7000_v62, %v7073_v22  ;;  %v7294_v62 = vld [vmem:[#allocation8_spill] sm:$0xff] }
 0x802   : > { %v5736_v20 = vpop.eup %5735  ;;  %v4651_v46 = vpack.c.bf16 %v5734_v2, %v5734_v2  ;;  %5755 = vrcp.f32 %v3724_v38  ;;  %v3228_v45 = vadd.f32 %v7010_v35, %v7031_v37  ;;  %v7295_v35 = vld [vmem:[#allocation9_spill] sm:$0xff] }
 0x803   : > { %v5738_v31 = vpop.eup %5737  ;;  %v4642_v24 = vpack.c.bf16 %v5736_v20, %v7164_v63  ;;  %5757 = vrcp.f32 %v3754_v47  ;;  %v3432_v63 = vsub.f32 0.0, %v3336_v55  ;;  %v3222_v20 = vadd.f32 %v6994_v14, %v7031_v37 }
 0x804   : > { %v5740_v52 = vpop.eup %5739  ;;  %4286 = vst [vmem:[%s6793_s26 + $0x50] sm:$0xf] %v4651_v46  ;;  %v4643_v19 = vpack.c.bf16 %v5738_v31, %v5738_v31  ;;  %5759 = vpow2.f32 %v3527_v43 }
 0x805   : > { %v5742_v26 = vpop.eup %5741  ;;  %4277 = vst [vmem:[%s6793_s26 + $0x10] sm:$0xff] %v4642_v24  ;;  %5761 = vpow2.f32 %v3557_v33  ;;  %v3555_v33 = vmul.f32 1.442695, %v3403_v7  ;;  %v3613_v25 = vmul.f32 1.442695, %v3432_v63  ;;  %v3360_v24 = vadd.f32 %v6996_v59, %v7073_v22 }
 0x806   : > { %v5744_v30 = vpop.eup %5743  ;;  %4278 = vst [vmem:[%s6793_s26 + $0x18] sm:$0xf] %v4643_v19  ;;  %v4655_v41 = vpack.c.bf16 %v5742_v26, %v5742_v26  ;;  %5763 = vpow2.f32 %v3539_v32  ;;  %v3416_v7 = vsub.f32 0.0, %v3222_v20  ;;  %v3224_v26 = vadd.f32 %v6998_v28, %v7080_v51 }
 0x807   : > { %v5746_v5 = vpop.eup %5745  ;;  %v4646_v43 = vpack.c.bf16 %v5744_v30, %v5740_v52  ;;  %5765 = vpow2.f32 %v3627_v10  ;;  %v3569_v10 = vmul.f32 1.442695, %v3410_v12  ;;  %v3474_v30 = vsub.f32 0.0, %v3360_v24 }
 0x808   : > { %v5748_v29 = vpop.eup %5747  ;;  %4290 = vst [vmem:[%s6793_s26 + $0x6c] sm:$0xf] %v4655_v41  ;;  %v4647_v57 = vpack.c.bf16 %v5746_v5, %v5746_v5  ;;  %5767 = vpow2.f32 %v3541_v42  ;;  %v3349_v42 = vadd.f32 %v6991_v21, %v7073_v22  ;;  %v3232_v22 = vadd.f32 %v7294_v62, %v7031_v37 }
 0x809   : > { %v5750_v49 = vpop.eup %5749  ;;  %4281 = vst [vmem:[%s6793_s26 + $0x2c] sm:$0xff] %v4646_v43  ;;  %5769 = vpow2.f32 %v3599_v56 }
 0x80a   : > { %v5752_v32 = vpop.eup %5751  ;;  %4282 = vst [vmem:[%s6793_s26 + $0x34] sm:$0xf] %v4647_v57  ;;  %v4667_v4 = vpack.c.bf16 %v5750_v49, %v5750_v49  ;;  %5771 = vpow2.f32 %v3553_v17  ;;  %v3453_v21 = vsub.f32 0.0, %v3349_v42  ;;  %v3417_v57 = vsub.f32 0.0, %v3224_v26 }
 0x80b   : > { %v5754_v48 = vpop.eup %5753  ;;  %v4650_v60 = vpack.c.bf16 %v5752_v32, %v5748_v29  ;;  %5773 = vpow2.f32 %v3641_v50  ;;  %v3581_v50 = vmul.f32 1.442695, %v3416_v7  ;;  %v3697_v32 = vmul.f32 1.442695, %v3474_v30 }
 0x80c   : > { %v7201_v16 = vpop.eup %5755  ;;  %4302 = vst [vmem:[%s6793_s26 + $0xc0] sm:$0xf] %v4667_v4  ;;  %v4659_v38 = vpack.c.bf16 %v5754_v48, %v5754_v48  ;;  %5775 = vpow2.f32 %v3555_v33  ;;  %v3655_v17 = vmul.f32 1.442695, %v3453_v21  ;;  %v7293_v33 = vld [vmem:[#allocation7_spill] sm:$0xff]  ;;  %v3460_v48 = vsub.f32 0.0, %v3352_v1 }
 0x80d   : > { %v5758_v23 = vpop.eup %5757  ;;  %4285 = vst [vmem:[%s6793_s26 + $0x48] sm:$0xff] %v4650_v60  ;;  %5777 = vpow2.f32 %v3613_v25  ;;  %v3230_v12 = vadd.f32 %v7293_v33, %v7080_v51  ;;  %v3234_v60 = vadd.f32 %v7295_v35, %v7080_v51  ;;  %v3444_v26 = vsub.f32 0.0, %v7114_v8 }
 0x80e   : > { %v5760_v2 = vpop.eup %5759  ;;  %4294 = vst [vmem:[%s6793_s26 + $0x88] sm:$0xf] %v4659_v38  ;;  %v4671_v47 = vpack.c.bf16 %v5758_v23, %v5758_v23  ;;  %5779 = vpow2.f32 %v3567_v0  ;;  %v3238_v23 = vadd.f32 %v7038_v44, %v7031_v37  ;;  %v3669_v24 = vmul.f32 1.442695, %v3460_v48 }
 0x80f   : > { %v5762_v34 = vpop.eup %5761  ;;  %v3725_v55 = vadd.f32 1.0, %v5760_v2  ;;  %5781 = vpow2.f32 %v3683_v54  ;;  %v3424_v42 = vsub.f32 0.0, %v3230_v12  ;;  %v3431_v44 = vsub.f32 0.0, %v3234_v60 }
 0x810   : > { %v5764_v46 = vpop.eup %5763  ;;  %4306 = vst [vmem:[%s6793_s26 + $0xdc] sm:$0xf] %v4671_v47  ;;  %v3740_v9 = vadd.f32 1.0, %v5762_v34  ;;  %5783 = vpow2.f32 %v3569_v10  ;;  %v3423_v10 = vsub.f32 0.0, %v3228_v45  ;;  %v7296_v34 = vld [vmem:[#allocation10_spill] sm:$0xff]  ;;  %v3445_v30 = vsub.f32 0.0, %v7122_v6 }
 0x811   : > { %v5766_v3 = vpop.eup %5765  ;;  %5785 = vrcp.f32 %v3725_v55  ;;  %v3731_v31 = vadd.f32 1.0, %v5764_v46  ;;  %v3240_v55 = vadd.f32 %v7296_v34, %v7080_v51  ;;  %v3637_v45 = vmul.f32 1.442695, %v3444_v26 }
 0x812   : > { %v5768_v61 = vpop.eup %5767  ;;  %5787 = vrcp.f32 %v3740_v9  ;;  %v3775_v39 = vadd.f32 1.0, %v5766_v3  ;;  %v3583_v9 = vmul.f32 1.442695, %v3417_v57  ;;  %v3430_v3 = vsub.f32 0.0, %v3232_v22 }
 0x813   : > { %v5770_v52 = vpop.eup %5769  ;;  %5789 = vrcp.f32 %v3731_v31  ;;  %v3732_v19 = vadd.f32 1.0, %v5768_v61  ;;  %v3639_v6 = vmul.f32 1.442695, %v3445_v30 }
 0x814   : > { %v5772_v13 = vpop.eup %5771  ;;  %5791 = vrcp.f32 %v3775_v39  ;;  %v3761_v14 = vadd.f32 1.0, %v5770_v52  ;;  %v3437_v39 = vsub.f32 0.0, %v3238_v23  ;;  %v3597_v52 = vmul.f32 1.442695, %v3424_v42 }
 0x815   : > { %v5774_v56 = vpop.eup %5773  ;;  %5793 = vrcp.f32 %v3732_v19  ;;  %v3738_v63 = vadd.f32 1.0, %v5772_v13  ;;  %v3438_v19 = vsub.f32 0.0, %v3240_v55  ;;  %v3451_v42 = vsub.f32 0.0, %v7126_v36 }
 0x816   : > { %v5776_v41 = vpop.eup %5775  ;;  %5795 = vrcp.f32 %v3761_v14  ;;  %v3782_v59 = vadd.f32 1.0, %v5774_v56  ;;  %v3609_v14 = vmul.f32 1.442695, %v3430_v3  ;;  %v3458_v3 = vsub.f32 0.0, %v7136_v58 }
 0x817   : > { %v5778_v5 = vpop.eup %5777  ;;  %5797 = vrcp.f32 %v3738_v63  ;;  %v3739_v43 = vadd.f32 1.0, %v5776_v41  ;;  %v3611_v63 = vmul.f32 1.442695, %v3431_v44  ;;  %v3459_v44 = vsub.f32 0.0, %v7143_v40 }
 0x818   : > { %v5780_v29 = vpop.eup %5779  ;;  %5799 = vrcp.f32 %v3782_v59  ;;  %v3768_v28 = vadd.f32 1.0, %v5778_v5  ;;  %v3465_v36 = vsub.f32 0.0, %v7148_v11  ;;  %v3472_v40 = vsub.f32 0.0, %v7156_v15 }
 0x819   : > { %v5782_v49 = vpop.eup %5781  ;;  %5801 = vrcp.f32 %v3739_v43  ;;  %v3745_v25 = vadd.f32 1.0, %v5780_v29  ;;  %v3625_v43 = vmul.f32 1.442695, %v3438_v19  ;;  %v3665_v19 = vmul.f32 1.442695, %v3458_v3 }
 0x81a   : > { %v5784_v4 = vpop.eup %5783  ;;  %5803 = vrcp.f32 %v3768_v28  ;;  %v3803_v0 = vadd.f32 1.0, %v5782_v49 }
 0x81b   : > { %v5786_v54 = vpop.eup %5785  ;;  %5805 = vrcp.f32 %v3745_v25  ;;  %v3746_v38 = vadd.f32 1.0, %v5784_v4 }
 0x81c   : > { %v5788_v2 = vpop.eup %5787  ;;  %v4654_v47 = vpack.c.bf16 %v5786_v54, %v7201_v16  ;;  %5807 = vrcp.f32 %v3803_v0  ;;  %v3595_v16 = vmul.f32 1.442695, %v3423_v10 }
 0x81d   : > { %v5790_v20 = vpop.eup %5789  ;;  %v4663_v46 = vpack.c.bf16 %v5788_v2, %v5788_v2  ;;  %5809 = vrcp.f32 %v3746_v38 }
 0x81e   : > { %v5792_v31 = vpop.eup %5791  ;;  %4289 = vst [vmem:[%s6793_s26 + $0x64] sm:$0xff] %v4654_v47  ;;  %5811 = vpow2.f32 %v3655_v17  ;;  %v3623_v17 = vmul.f32 1.442695, %v3437_v39 }
 0x81f   : > { %v5794_v37 = vpop.eup %5793  ;;  %4298 = vst [vmem:[%s6793_s26 + $0xa4] sm:$0xf] %v4663_v46  ;;  %v4683_v61 = vpack.c.bf16 %v5792_v31, %v5792_v31  ;;  %5813 = vpow2.f32 %v3581_v50 }
 0x820   : > { %v5796_v21 = vpop.eup %5795  ;;  %v4658_v51 = vpack.c.bf16 %v5794_v37, %v5790_v20  ;;  %5815 = vpow2.f32 %v3697_v32  ;;  %v3452_v20 = vsub.f32 0.0, %v7132_v53 }
 0x821   : > { %v5798_v7 = vpop.eup %5797  ;;  %4318 = vst [vmem:[%s6793_s26 + $0x130] sm:$0xf] %v4683_v61  ;;  %v4675_v13 = vpack.c.bf16 %v5796_v21, %v5796_v21  ;;  %5817 = vpow2.f32 %v3583_v9 }
 0x822   : > { %v5800_v56 = vpop.eup %5799  ;;  %4293 = vst [vmem:[%s6793_s26 + $0x80] sm:$0xff] %v4658_v51  ;;  %5819 = vpow2.f32 %v3669_v24  ;;  %v3653_v21 = vmul.f32 1.442695, %v3452_v20  ;;  %v3466_v51 = vsub.f32 0.0, %v7152_v18 }
 0x823   : > { %v5802_v41 = vpop.eup %5801  ;;  %4310 = vst [vmem:[%s6793_s26 + $0xf8] sm:$0xf] %v4675_v13  ;;  %v4687_v59 = vpack.c.bf16 %v5800_v56, %v5800_v56  ;;  %5821 = vpow2.f32 %v3595_v16  ;;  %v3651_v16 = vmul.f32 1.442695, %v3451_v42  ;;  %v3667_v13 = vmul.f32 1.442695, %v3459_v44 }
 0x824   : > { %v5804_v1 = vpop.eup %5803  ;;  %v4662_v5 = vpack.c.bf16 %v5802_v41, %v5798_v7  ;;  %5823 = vpow2.f32 %v3597_v52  ;;  %v3679_v56 = vmul.f32 1.442695, %v3465_v36  ;;  %v3681_v30 = vmul.f32 1.442695, %v3466_v51 }
 0x825   : > { %v5806_v50 = vpop.eup %5805  ;;  %4322 = vst [vmem:[%s6793_s26 + $0x14c] sm:$0xf] %v4687_v59  ;;  %v4679_v8 = vpack.c.bf16 %v5804_v1, %v5804_v1  ;;  %5825 = vpow2.f32 %v3609_v14  ;;  %v3473_v14 = vsub.f32 0.0, %v7161_v27  ;;  %v3693_v59 = vmul.f32 1.442695, %v3472_v40 }
 0x826   : > { %v5808_v29 = vpop.eup %5807  ;;  %4297 = vst [vmem:[%s6793_s26 + $0x9c] sm:$0xff] %v4662_v5  ;;  %5827 = vpow2.f32 %v3611_v63 }
 0x827   : > { %v5810_v28 = vpop.eup %5809  ;;  %4314 = vst [vmem:[%s6793_s26 + $0x114] sm:$0xf] %v4679_v8  ;;  %v4699_v57 = vpack.c.bf16 %v5808_v29, %v5808_v29  ;;  %5829 = vpow2.f32 %v3623_v17  ;;  %v3695_v27 = vmul.f32 1.442695, %v3473_v14 }
 0x828   : > { %v5812_v33 = vpop.eup %5811  ;;  %v4666_v12 = vpack.c.bf16 %v5810_v28, %v5806_v50  ;;  %5831 = vpow2.f32 %v3625_v43 }
 0x829   : > { %v5814_v49 = vpop.eup %5813  ;;  %4334 = vst [vmem:[%s6793_s26 + $0x1a0] sm:$0xf] %v4699_v57  ;;  %v3789_v25 = vadd.f32 1.0, %v5812_v33  ;;  %5833 = vpow2.f32 %v3637_v45 }
 0x82a   : > { %v5816_v32 = vpop.eup %5815  ;;  %4301 = vst [vmem:[%s6793_s26 + $0xb8] sm:$0xff] %v4666_v12  ;;  %v3752_v62 = vadd.f32 1.0, %v5814_v49  ;;  %5835 = vpow2.f32 %v3639_v6 }
 0x82b   : > { %v5818_v22 = vpop.eup %5817  ;;  %5837 = vrcp.f32 %v3789_v25  ;;  %v3810_v4 = vadd.f32 1.0, %v5816_v32 }
 0x82c   : > { %v5820_v0 = vpop.eup %5819  ;;  %5839 = vrcp.f32 %v3752_v62  ;;  %v3753_v48 = vadd.f32 1.0, %v5818_v22 }
 0x82d   : > { %v5822_v35 = vpop.eup %5821  ;;  %5841 = vrcp.f32 %v3810_v4  ;;  %v3796_v60 = vadd.f32 1.0, %v5820_v0 }
 0x82e   : > { %v5824_v54 = vpop.eup %5823  ;;  %5843 = vrcp.f32 %v3753_v48  ;;  %v3759_v38 = vadd.f32 1.0, %v5822_v35 }
 0x82f   : > { %v5826_v10 = vpop.eup %5825  ;;  %5845 = vrcp.f32 %v3796_v60  ;;  %v3760_v23 = vadd.f32 1.0, %v5824_v54 }
 0x830   : > { %v5828_v2 = vpop.eup %5827  ;;  %5847 = vrcp.f32 %v3759_v38  ;;  %v3766_v47 = vadd.f32 1.0, %v5826_v10 }
 0x831   : > { %v5830_v34 = vpop.eup %5829  ;;  %5849 = vrcp.f32 %v3760_v23  ;;  %v3767_v55 = vadd.f32 1.0, %v5828_v2 }
 0x832   : > { %v5832_v46 = vpop.eup %5831  ;;  %5851 = vrcp.f32 %v3766_v47  ;;  %v3773_v9 = vadd.f32 1.0, %v5830_v34 }
 0x833   : > { %v5834_v31 = vpop.eup %5833  ;;  %5853 = vrcp.f32 %v3767_v55  ;;  %v3774_v24 = vadd.f32 1.0, %v5832_v46 }
 0x834   : > { %v5836_v37 = vpop.eup %5835  ;;  %5855 = vrcp.f32 %v3773_v9  ;;  %v3780_v61 = vadd.f32 1.0, %v5834_v31 }
 0x835   : > { %v5838_v39 = vpop.eup %5837  ;;  %5857 = vrcp.f32 %v3774_v24  ;;  %v3781_v53 = vadd.f32 1.0, %v5836_v37 }
 0x836   : > { %v5840_v52 = vpop.eup %5839  ;;  %v4691_v58 = vpack.c.bf16 %v5838_v39, %v5838_v39  ;;  %5859 = vrcp.f32 %v3780_v61 }
 0x837   : > { %v5842_v7 = vpop.eup %5841  ;;  %5861 = vrcp.f32 %v3781_v53 }
 0x838   : > { %v5844_v11 = vpop.eup %5843  ;;  %4326 = vst [vmem:[%s6793_s26 + $0x168] sm:$0xf] %v4691_v58  ;;  %v4703_v26 = vpack.c.bf16 %v5842_v7, %v5842_v7  ;;  %5863 = vpow2.f32 %v3651_v16 }
 0x839   : > { %v5846_v18 = vpop.eup %5845  ;;  %v4670_v63 = vpack.c.bf16 %v5844_v11, %v5840_v52  ;;  %5865 = vpow2.f32 %v3653_v21 }
 0x83a   : > { %v5848_v41 = vpop.eup %5847  ;;  %4338 = vst [vmem:[%s6793_s26 + $0x1bc] sm:$0xf] %v4703_v26  ;;  %v4695_v15 = vpack.c.bf16 %v5846_v18, %v5846_v18  ;;  %5867 = vpow2.f32 %v3665_v19 }
 0x83b   : > { %v5850_v17 = vpop.eup %5849  ;;  %4305 = vst [vmem:[%s6793_s26 + $0xd4] sm:$0xff] %v4670_v63  ;;  %5869 = vpow2.f32 %v3667_v13 }
 0x83c   : > { %v5852_v1 = vpop.eup %5851  ;;  %4330 = vst [vmem:[%s6793_s26 + $0x184] sm:$0xf] %v4695_v15  ;;  %v4674_v5 = vpack.c.bf16 %v5850_v17, %v5848_v41  ;;  %5871 = vpow2.f32 %v3679_v56 }
 0x83d   : > { %v5854_v43 = vpop.eup %5853  ;;  %5873 = vpow2.f32 %v3681_v30 }
 0x83e   : > { %v5856_v50 = vpop.eup %5855  ;;  %4309 = vst [vmem:[%s6793_s26 + $0xf0] sm:$0xff] %v4674_v5  ;;  %v4678_v8 = vpack.c.bf16 %v5854_v43, %v5852_v1  ;;  %5875 = vpow2.f32 %v3693_v59 }
 0x83f   : > { %v5858_v45 = vpop.eup %5857  ;;  %5877 = vpow2.f32 %v3695_v27 }
 0x840   : > { %v5860_v29 = vpop.eup %5859  ;;  %4313 = vst [vmem:[%s6793_s26 + $0x10c] sm:$0xff] %v4678_v8  ;;  %v4682_v6 = vpack.c.bf16 %v5858_v45, %v5856_v50 }
 0x841   : > { %v5862_v28 = vpop.eup %5861 }
 0x842   : > { %v5864_v57 = vpop.eup %5863  ;;  %4317 = vst [vmem:[%s6793_s26 + $0x128] sm:$0xff] %v4682_v6  ;;  %v4686_v33 = vpack.c.bf16 %v5862_v28, %v5860_v29 }
 0x843   : > { %v5866_v12 = vpop.eup %5865  ;;  %v3787_v49 = vadd.f32 1.0, %v5864_v57 }
 0x844   : > { %v5868_v25 = vpop.eup %5867  ;;  %4321 = vst [vmem:[%s6793_s26 + $0x144] sm:$0xff] %v4686_v33  ;;  %v3788_v32 = vadd.f32 1.0, %v5866_v12 }
 0x845   : > { %v5870_v62 = vpop.eup %5869  ;;  %5879 = vrcp.f32 %v3787_v49  ;;  %v3794_v22 = vadd.f32 1.0, %v5868_v25 }
 0x846   : > { %v5872_v4 = vpop.eup %5871  ;;  %5881 = vrcp.f32 %v3788_v32  ;;  %v3795_v0 = vadd.f32 1.0, %v5870_v62 }
 0x847   : > { %v5874_v48 = vpop.eup %5873  ;;  %5883 = vrcp.f32 %v3794_v22  ;;  %v3801_v35 = vadd.f32 1.0, %v5872_v4 }
 0x848   : > { %v5876_v60 = vpop.eup %5875  ;;  %5885 = vrcp.f32 %v3795_v0  ;;  %v3802_v54 = vadd.f32 1.0, %v5874_v48 }
 0x849   : > { %v5878_v38 = vpop.eup %5877  ;;  %5887 = vrcp.f32 %v3801_v35  ;;  %v3808_v10 = vadd.f32 1.0, %v5876_v60 }
 0x84a   : > { %5889 = vrcp.f32 %v3802_v54  ;;  %v3809_v23 = vadd.f32 1.0, %v5878_v38 }
 0x84b   : > { %5891 = vrcp.f32 %v3808_v10 }
 0x84c   : > { %5893 = vrcp.f32 %v3809_v23 }
 0x84f   : > { %v5880_v2 = vpop.eup %5879 }
 0x850   : > { %v5882_v47 = vpop.eup %5881 }
 0x851   : > { %v5884_v42 = vpop.eup %5883  ;;  %v4690_v34 = vpack.c.bf16 %v5882_v47, %v5880_v2 }
 0x852   : > { %v5886_v55 = vpop.eup %5885 }
 0x853   : > { %v5888_v20 = vpop.eup %5887  ;;  %4325 = vst [vmem:[%s6793_s26 + $0x160] sm:$0xff] %v4690_v34  ;;  %v4694_v46 = vpack.c.bf16 %v5886_v55, %v5884_v42 }
 0x854   : > { %v5890_v9 = vpop.eup %5889 }
 0x855   : > { %v5892_v3 = vpop.eup %5891  ;;  %4329 = vst [vmem:[%s6793_s26 + $0x17c] sm:$0xff] %v4694_v46  ;;  %v4698_v31 = vpack.c.bf16 %v5890_v9, %v5888_v20 }
 0x856   : > { %v5894_v24 = vpop.eup %5893 }
 0x857   : > { %4333 = vst [vmem:[%s6793_s26 + $0x198] sm:$0xff] %v4698_v31  ;;  %v4702_v44 = vpack.c.bf16 %v5894_v24, %v5892_v3 }
 0x859   : > { %4337 = vst [vmem:[%s6793_s26 + $0x1b4] sm:$0xff] %v4702_v44 }
 0x85a PF: > { %s21_s17 = sadd.s32 1, %s5902_s17  }
 0x85b   : > { %p18_p4 = scmp.ge.s32.totalorder %s21_s17, 6  }
 0x85d   :  { %20 = sbr.rel (!%p18_p4) target bundleno = 1 (0x1), region = 94 }

</bundles_post_ra>
